<compile_context>
chip_gen: v7x
topology: tpu7x:2x2x1
jax: 0.10.0
libtpu: 0.0.40
codegen_flags: <defaults>
</compile_context>

<pallas_src>
import jax
import jax.numpy as jnp
from jax.experimental import pallas as pl
from jax.experimental.pallas import tpu as pltpu


# --------------------------------------------------------------------------
# Fused sNet (Conv3d+BN+ReLU) + AdaptiveAvgPool3d(1) kernel for both modalities
# --------------------------------------------------------------------------
def fused_snet_pool(xw, w_full, shift_full, *, dim, cin, d_out, h_out, w_out):
    """xw        : (2, B, D+2, 9*cin, H*W) bf16  padded input; the 9 in-plane (kh,kw)
                                                shifted windows pre-flattened onto lanes
       w_full    : (2, 27*cin, dim, H*W)   f32   conv weight with BN scale folded in,
                                                pre-broadcast along the lane axis;
                                                tap index = ((kd*3+kh)*3+kw)*cin + ci
       shift_full: (2, dim, H*W)           f32   folded BN/conv-bias shift, pre-broadcast
       returns   : (2, B, dim)             f32   mean over (D,H,W) of relu(bn(conv(x)))"""
    n_mod, batch, dp, taps, hw = xw.shape
    assert dp == d_out + 2 and taps == 9 * cin and hw == h_out * w_out
    inv_count = 1.0 / float(d_out * h_out * w_out)

    def kernel(x_ref, w_ref, s_ref, o_ref):
        shift_b = s_ref[0]                                    # (dim, HW) f32, hoisted

        win_cache = {}

        def plane_windows(z):
            # 9*cin flattened windows of padded input plane z, cast to f32 and
            # broadcast over the dim (sublane) axis.  Memoized: each input plane
            # is prepared once and reused by the (up to) 3 output depths using it.
            if z not in win_cache:
                wz = x_ref[0, 0, z].astype(jnp.float32)       # (9*cin, HW)
                win_cache[z] = [jnp.broadcast_to(wz[t:t + 1, :], (dim, hw))
                                for t in range(taps)]
            return win_cache[z]

        pooled = jnp.zeros((dim, 1), jnp.float32)
        for d in range(d_out):                                # depth: in-kernel loop
            acc = jnp.zeros((dim, hw), jnp.float32)
            for kd in range(3):
                wins = plane_windows(d + kd)
                for t in range(taps):
                    # one lane-dense (dim, HW) VPU FMA covers all output channels
                    acc = acc + w_ref[0, kd * taps + t] * wins[t]
            zp = jnp.maximum(acc + shift_b, 0.0)              # BN shift + ReLU (f32)
            pooled = pooled + jnp.sum(zp, axis=1, keepdims=True)   # lane reduce (XLU)

        # single store per (modality, sample)
        o_ref[...] = (pooled * inv_count).reshape(1, 1, dim, 1)

    out = pl.pallas_call(
        kernel,
        out_shape=jax.ShapeDtypeStruct((n_mod, batch, dim, 1), jnp.float32),
        grid=(n_mod, batch),
        in_specs=[
            pl.BlockSpec((1, 1, dp, taps, hw), lambda m, b: (m, b, 0, 0, 0)),
            pl.BlockSpec((1, 3 * taps, dim, hw), lambda m, b: (m, 0, 0, 0)),
            pl.BlockSpec((1, dim, hw), lambda m, b: (m, 0, 0)),
        ],
        out_specs=pl.BlockSpec((1, 1, dim, 1), lambda m, b: (m, b, 0, 0)),
        compiler_params=pltpu.CompilerParams(
            dimension_semantics=("parallel", "parallel")),
    )(xw, w_full, shift_full)
    return out[..., 0]                                        # (2, B, dim)


# --------------------------------------------------------------------------
# model_CNN forward
# --------------------------------------------------------------------------
def model_cnn_forward(mri, pet, params, *, eps=1e-5):
    b, cin, d, h, w = mri.shape
    dim = params["conv_w"].shape[1]
    hw = h * w

    # ---- host-side layout prep (tiny: ~46 KB bf16 activations, ~110 KB f32 weights) ----
    x = jnp.stack([mri, pet], axis=0)                                     # (2,B,cin,D,H,W)
    xp = jnp.pad(x, ((0, 0), (0, 0), (0, 0), (1, 1), (1, 1), (1, 1)))      # pad D,H,W by 1
    # 9 in-plane (kh,kw) shifted windows, flattened so H*W sits on the lane axis.
    wins = jnp.stack([xp[..., kh:kh + h, kw:kw + w]
                      for kh in range(3) for kw in range(3)], axis=3)      # (2,B,cin,9,D+2,H,W)
    xw = jnp.transpose(wins, (0, 1, 4, 3, 2, 5, 6)).reshape(
        2, b, d + 2, 9 * cin, hw).astype(jnp.bfloat16)

    # Fold BatchNorm (eval running stats) and conv bias into a scale / shift.
    scale = params["bn_gamma"] / jnp.sqrt(params["bn_var"] + eps)          # (2, dim)
    w_sc = params["conv_w"] * scale[:, :, None, None, None, None]          # (2,dim,cin,3,3,3)
    shift = params["bn_beta"] + scale * (params["conv_b"] - params["bn_mean"])
    # (2, 27*cin, dim) with tap index ((kd*3+kh)*3+kw)*cin + ci, pre-broadcast over lanes
    w_r = jnp.transpose(w_sc, (0, 3, 4, 5, 2, 1)).reshape(2, 27 * cin, dim)
    w_full = jnp.broadcast_to(w_r[..., None], (2, 27 * cin, dim, hw)).astype(jnp.float32)
    shift_full = jnp.broadcast_to(shift[:, :, None], (2, dim, hw)).astype(jnp.float32)

    pooled = fused_snet_pool(xw, w_full, shift_full,
                             dim=dim, cin=cin, d_out=d, h_out=h, w_out=w)   # (2,B,dim)

    feats = jnp.concatenate([pooled[0], pooled[1]], axis=1)                 # (B, 2*dim)
    fc = params["fc"]
    hidden = jnp.maximum(feats @ fc["w1"] + fc["b1"], 0.0)                  # tiny head: plain JAX
    return hidden @ fc["w2"] + fc["b2"]                                     # (B, 2)


# --------------------------------------------------------------------------
# Deterministic parameter init (mirrors the PyTorch __init__ intent)
# --------------------------------------------------------------------------
def init_params(key, dim, cin):
    # TODO(synk): sNet's definition is not given in the reference module; it is modeled as
    # Conv3d(cin, dim, k=3, pad=1, bias=True) -> BatchNorm3d(dim, eval stats) -> ReLU.
    keys = jax.random.split(key, 4)

    def conv(k):
        kw_, kb = jax.random.split(k)
        std = (2.0 / (dim * 27)) ** 0.5                      # kaiming_normal_, fan_out, relu
        wgt = jax.random.normal(kw_, (dim, cin, 3, 3, 3), jnp.float32) * std
        bound = 1.0 / ((cin * 27) ** 0.5)                    # PyTorch default conv bias init
        bias = jax.random.uniform(kb, (dim,), jnp.float32, -bound, bound)
        return wgt, bias

    wm, bm = conv(keys[0])
    wp, bp = conv(keys[1])

    def linear(k, fan_in, fan_out):
        kw_, kb = jax.random.split(k)
        bound = 1.0 / (fan_in ** 0.5)
        wgt = jax.random.uniform(kw_, (fan_in, fan_out), jnp.float32, -bound, bound)
        bias = jax.random.uniform(kb, (fan_out,), jnp.float32, -bound, bound)
        return wgt, bias

    w1, b1 = linear(keys[2], dim * 2, 128)
    w2, b2 = linear(keys[3], 128, 2)

    return {
        "conv_w": jnp.stack([wm, wp], 0),                 # (2, dim, cin, 3, 3, 3)
        "conv_b": jnp.stack([bm, bp], 0),                 # (2, dim)
        "bn_gamma": jnp.ones((2, dim), jnp.float32),      # BN weight = 1 (module init)
        "bn_beta": jnp.zeros((2, dim), jnp.float32),      # BN bias = 0
        "bn_mean": jnp.zeros((2, dim), jnp.float32),      # eval running stats
        "bn_var": jnp.ones((2, dim), jnp.float32),
        "fc": {"w1": w1, "b1": b1, "w2": w2, "b2": b2},
    }


if __name__ == "__main__":
    key = jax.random.PRNGKey(0)
    dim, batch, cin, D, H, W = 8, 2, 1, 8, 8, 8

    k_params, k_mri, k_pet = jax.random.split(key, 3)
    params = init_params(k_params, dim, cin)
    mri = jax.random.normal(k_mri, (batch, cin, D, H, W), jnp.float32)
    pet = jax.random.normal(k_pet, (batch, cin, D, H, W), jnp.float32)

    logits = jax.jit(model_cnn_forward)(mri, pet, params)
    logits = jax.block_until_ready(logits)
    assert logits.shape == (batch, 2)
    assert bool(jnp.all(jnp.isfinite(logits)))
    print("KERNEL_OK")
</pallas_src>

<mosaic_0001>
module attributes {stable_mosaic.version = 11 : i64} {
  func.func @kernel(%arg0: i32, %arg1: i32, %arg2: memref<1x1x10x9x64xbf16, #tpu.memory_space<vmem>>, %arg3: memref<1x27x8x64xf32, #tpu.memory_space<vmem>>, %arg4: memref<1x8x64xf32, #tpu.memory_space<vmem>>, %arg5: memref<1x1x8x1xf32, #tpu.memory_space<vmem>>) attributes {dimension_semantics = [#tpu.dimension_semantics<parallel>, #tpu.dimension_semantics<parallel>], iteration_bounds = array<i64: 2, 2>, scalar_prefetch = 0 : i64, scratch_operands = 0 : i64, tpu.core_type = #tpu.core_type<tc>, window_params = [{transform_indices = @transform_0, window_bounds = array<i64: 1, 1, 10, 9, 64>}, {transform_indices = @transform_1, window_bounds = array<i64: 1, 27, 8, 64>}, {transform_indices = @transform_2, window_bounds = array<i64: 1, 8, 64>}, {transform_indices = @transform_3, window_bounds = array<i64: 1, 1, 8, 1>}]} {
    %c0 = arith.constant 0 : index
    %c0_0 = arith.constant 0 : index
    %c0_1 = arith.constant 0 : index
    %0 = vector.load %arg4[%c0, %c0_0, %c0_1] : memref<1x8x64xf32, #tpu.memory_space<vmem>>, vector<1x8x64xf32>
    %1 = vector.shape_cast %0 : vector<1x8x64xf32> to vector<8x64xf32>
    %cst = arith.constant 0.000000e+00 : f32
    %2 = vector.broadcast %cst : f32 to vector<8x1xf32>
    %cst_2 = arith.constant 0.000000e+00 : f32
    %3 = vector.broadcast %cst_2 : f32 to vector<8x64xf32>
    %c0_3 = arith.constant 0 : index
    %c0_4 = arith.constant 0 : index
    %c0_5 = arith.constant 0 : index
    %c0_6 = arith.constant 0 : index
    %c0_7 = arith.constant 0 : index
    %4 = vector.load %arg2[%c0_3, %c0_4, %c0_5, %c0_6, %c0_7] : memref<1x1x10x9x64xbf16, #tpu.memory_space<vmem>>, vector<1x1x1x9x64xbf16>
    %5 = vector.shape_cast %4 : vector<1x1x1x9x64xbf16> to vector<9x64xbf16>
    %6 = arith.extf %5 : vector<9x64xbf16> to vector<9x64xf32>
    %7 = vector.extract_strided_slice %6 {offsets = [0, 0], sizes = [1, 64], strides = [1, 1]} : vector<9x64xf32> to vector<1x64xf32>
    %8 = vector.shape_cast %7 : vector<1x64xf32> to vector<1x64xf32>
    %9 = vector.broadcast %8 : vector<1x64xf32> to vector<8x64xf32>
    %10 = vector.extract_strided_slice %6 {offsets = [1, 0], sizes = [1, 64], strides = [1, 1]} : vector<9x64xf32> to vector<1x64xf32>
    %11 = vector.shape_cast %10 : vector<1x64xf32> to vector<1x64xf32>
    %12 = vector.broadcast %11 : vector<1x64xf32> to vector<8x64xf32>
    %13 = vector.extract_strided_slice %6 {offsets = [2, 0], sizes = [1, 64], strides = [1, 1]} : vector<9x64xf32> to vector<1x64xf32>
    %14 = vector.shape_cast %13 : vector<1x64xf32> to vector<1x64xf32>
    %15 = vector.broadcast %14 : vector<1x64xf32> to vector<8x64xf32>
    %16 = vector.extract_strided_slice %6 {offsets = [3, 0], sizes = [1, 64], strides = [1, 1]} : vector<9x64xf32> to vector<1x64xf32>
    %17 = vector.shape_cast %16 : vector<1x64xf32> to vector<1x64xf32>
    %18 = vector.broadcast %17 : vector<1x64xf32> to vector<8x64xf32>
    %19 = vector.extract_strided_slice %6 {offsets = [4, 0], sizes = [1, 64], strides = [1, 1]} : vector<9x64xf32> to vector<1x64xf32>
    %20 = vector.shape_cast %19 : vector<1x64xf32> to vector<1x64xf32>
    %21 = vector.broadcast %20 : vector<1x64xf32> to vector<8x64xf32>
    %22 = vector.extract_strided_slice %6 {offsets = [5, 0], sizes = [1, 64], strides = [1, 1]} : vector<9x64xf32> to vector<1x64xf32>
    %23 = vector.shape_cast %22 : vector<1x64xf32> to vector<1x64xf32>
    %24 = vector.broadcast %23 : vector<1x64xf32> to vector<8x64xf32>
    %25 = vector.extract_strided_slice %6 {offsets = [6, 0], sizes = [1, 64], strides = [1, 1]} : vector<9x64xf32> to vector<1x64xf32>
    %26 = vector.shape_cast %25 : vector<1x64xf32> to vector<1x64xf32>
    %27 = vector.broadcast %26 : vector<1x64xf32> to vector<8x64xf32>
    %28 = vector.extract_strided_slice %6 {offsets = [7, 0], sizes = [1, 64], strides = [1, 1]} : vector<9x64xf32> to vector<1x64xf32>
    %29 = vector.shape_cast %28 : vector<1x64xf32> to vector<1x64xf32>
    %30 = vector.broadcast %29 : vector<1x64xf32> to vector<8x64xf32>
    %31 = vector.extract_strided_slice %6 {offsets = [8, 0], sizes = [1, 64], strides = [1, 1]} : vector<9x64xf32> to vector<1x64xf32>
    %32 = vector.shape_cast %31 : vector<1x64xf32> to vector<1x64xf32>
    %33 = vector.broadcast %32 : vector<1x64xf32> to vector<8x64xf32>
    %c0_8 = arith.constant 0 : index
    %c0_9 = arith.constant 0 : index
    %c0_10 = arith.constant 0 : index
    %c0_11 = arith.constant 0 : index
    %34 = vector.load %arg3[%c0_8, %c0_9, %c0_10, %c0_11] : memref<1x27x8x64xf32, #tpu.memory_space<vmem>>, vector<1x1x8x64xf32>
    %35 = vector.shape_cast %34 : vector<1x1x8x64xf32> to vector<8x64xf32>
    %36 = arith.mulf %35, %9 : vector<8x64xf32>
    %37 = arith.addf %3, %36 : vector<8x64xf32>
    %c0_12 = arith.constant 0 : index
    %c1 = arith.constant 1 : index
    %c0_13 = arith.constant 0 : index
    %c0_14 = arith.constant 0 : index
    %38 = vector.load %arg3[%c0_12, %c1, %c0_13, %c0_14] : memref<1x27x8x64xf32, #tpu.memory_space<vmem>>, vector<1x1x8x64xf32>
    %39 = vector.shape_cast %38 : vector<1x1x8x64xf32> to vector<8x64xf32>
    %40 = arith.mulf %39, %12 : vector<8x64xf32>
    %41 = arith.addf %37, %40 : vector<8x64xf32>
    %c0_15 = arith.constant 0 : index
    %c2 = arith.constant 2 : index
    %c0_16 = arith.constant 0 : index
    %c0_17 = arith.constant 0 : index
    %42 = vector.load %arg3[%c0_15, %c2, %c0_16, %c0_17] : memref<1x27x8x64xf32, #tpu.memory_space<vmem>>, vector<1x1x8x64xf32>
    %43 = vector.shape_cast %42 : vector<1x1x8x64xf32> to vector<8x64xf32>
    %44 = arith.mulf %43, %15 : vector<8x64xf32>
    %45 = arith.addf %41, %44 : vector<8x64xf32>
    %c0_18 = arith.constant 0 : index
    %c3 = arith.constant 3 : index
    %c0_19 = arith.constant 0 : index
    %c0_20 = arith.constant 0 : index
    %46 = vector.load %arg3[%c0_18, %c3, %c0_19, %c0_20] : memref<1x27x8x64xf32, #tpu.memory_space<vmem>>, vector<1x1x8x64xf32>
    %47 = vector.shape_cast %46 : vector<1x1x8x64xf32> to vector<8x64xf32>
    %48 = arith.mulf %47, %18 : vector<8x64xf32>
    %49 = arith.addf %45, %48 : vector<8x64xf32>
    %c0_21 = arith.constant 0 : index
    %c4 = arith.constant 4 : index
    %c0_22 = arith.constant 0 : index
    %c0_23 = arith.constant 0 : index
    %50 = vector.load %arg3[%c0_21, %c4, %c0_22, %c0_23] : memref<1x27x8x64xf32, #tpu.memory_space<vmem>>, vector<1x1x8x64xf32>
    %51 = vector.shape_cast %50 : vector<1x1x8x64xf32> to vector<8x64xf32>
    %52 = arith.mulf %51, %21 : vector<8x64xf32>
    %53 = arith.addf %49, %52 : vector<8x64xf32>
    %c0_24 = arith.constant 0 : index
    %c5 = arith.constant 5 : index
    %c0_25 = arith.constant 0 : index
    %c0_26 = arith.constant 0 : index
    %54 = vector.load %arg3[%c0_24, %c5, %c0_25, %c0_26] : memref<1x27x8x64xf32, #tpu.memory_space<vmem>>, vector<1x1x8x64xf32>
    %55 = vector.shape_cast %54 : vector<1x1x8x64xf32> to vector<8x64xf32>
    %56 = arith.mulf %55, %24 : vector<8x64xf32>
    %57 = arith.addf %53, %56 : vector<8x64xf32>
    %c0_27 = arith.constant 0 : index
    %c6 = arith.constant 6 : index
    %c0_28 = arith.constant 0 : index
    %c0_29 = arith.constant 0 : index
    %58 = vector.load %arg3[%c0_27, %c6, %c0_28, %c0_29] : memref<1x27x8x64xf32, #tpu.memory_space<vmem>>, vector<1x1x8x64xf32>
    %59 = vector.shape_cast %58 : vector<1x1x8x64xf32> to vector<8x64xf32>
    %60 = arith.mulf %59, %27 : vector<8x64xf32>
    %61 = arith.addf %57, %60 : vector<8x64xf32>
    %c0_30 = arith.constant 0 : index
    %c7 = arith.constant 7 : index
    %c0_31 = arith.constant 0 : index
    %c0_32 = arith.constant 0 : index
    %62 = vector.load %arg3[%c0_30, %c7, %c0_31, %c0_32] : memref<1x27x8x64xf32, #tpu.memory_space<vmem>>, vector<1x1x8x64xf32>
    %63 = vector.shape_cast %62 : vector<1x1x8x64xf32> to vector<8x64xf32>
    %64 = arith.mulf %63, %30 : vector<8x64xf32>
    %65 = arith.addf %61, %64 : vector<8x64xf32>
    %c0_33 = arith.constant 0 : index
    %c8 = arith.constant 8 : index
    %c0_34 = arith.constant 0 : index
    %c0_35 = arith.constant 0 : index
    %66 = vector.load %arg3[%c0_33, %c8, %c0_34, %c0_35] : memref<1x27x8x64xf32, #tpu.memory_space<vmem>>, vector<1x1x8x64xf32>
    %67 = vector.shape_cast %66 : vector<1x1x8x64xf32> to vector<8x64xf32>
    %68 = arith.mulf %67, %33 : vector<8x64xf32>
    %69 = arith.addf %65, %68 : vector<8x64xf32>
    %c0_36 = arith.constant 0 : index
    %c0_37 = arith.constant 0 : index
    %c1_38 = arith.constant 1 : index
    %c0_39 = arith.constant 0 : index
    %c0_40 = arith.constant 0 : index
    %70 = vector.load %arg2[%c0_36, %c0_37, %c1_38, %c0_39, %c0_40] : memref<1x1x10x9x64xbf16, #tpu.memory_space<vmem>>, vector<1x1x1x9x64xbf16>
    %71 = vector.shape_cast %70 : vector<1x1x1x9x64xbf16> to vector<9x64xbf16>
    %72 = arith.extf %71 : vector<9x64xbf16> to vector<9x64xf32>
    %73 = vector.extract_strided_slice %72 {offsets = [0, 0], sizes = [1, 64], strides = [1, 1]} : vector<9x64xf32> to vector<1x64xf32>
    %74 = vector.shape_cast %73 : vector<1x64xf32> to vector<1x64xf32>
    %75 = vector.broadcast %74 : vector<1x64xf32> to vector<8x64xf32>
    %76 = vector.extract_strided_slice %72 {offsets = [1, 0], sizes = [1, 64], strides = [1, 1]} : vector<9x64xf32> to vector<1x64xf32>
    %77 = vector.shape_cast %76 : vector<1x64xf32> to vector<1x64xf32>
    %78 = vector.broadcast %77 : vector<1x64xf32> to vector<8x64xf32>
    %79 = vector.extract_strided_slice %72 {offsets = [2, 0], sizes = [1, 64], strides = [1, 1]} : vector<9x64xf32> to vector<1x64xf32>
    %80 = vector.shape_cast %79 : vector<1x64xf32> to vector<1x64xf32>
    %81 = vector.broadcast %80 : vector<1x64xf32> to vector<8x64xf32>
    %82 = vector.extract_strided_slice %72 {offsets = [3, 0], sizes = [1, 64], strides = [1, 1]} : vector<9x64xf32> to vector<1x64xf32>
    %83 = vector.shape_cast %82 : vector<1x64xf32> to vector<1x64xf32>
    %84 = vector.broadcast %83 : vector<1x64xf32> to vector<8x64xf32>
    %85 = vector.extract_strided_slice %72 {offsets = [4, 0], sizes = [1, 64], strides = [1, 1]} : vector<9x64xf32> to vector<1x64xf32>
    %86 = vector.shape_cast %85 : vector<1x64xf32> to vector<1x64xf32>
    %87 = vector.broadcast %86 : vector<1x64xf32> to vector<8x64xf32>
    %88 = vector.extract_strided_slice %72 {offsets = [5, 0], sizes = [1, 64], strides = [1, 1]} : vector<9x64xf32> to vector<1x64xf32>
    %89 = vector.shape_cast %88 : vector<1x64xf32> to vector<1x64xf32>
    %90 = vector.broadcast %89 : vector<1x64xf32> to vector<8x64xf32>
    %91 = vector.extract_strided_slice %72 {offsets = [6, 0], sizes = [1, 64], strides = [1, 1]} : vector<9x64xf32> to vector<1x64xf32>
    %92 = vector.shape_cast %91 : vector<1x64xf32> to vector<1x64xf32>
    %93 = vector.broadcast %92 : vector<1x64xf32> to vector<8x64xf32>
    %94 = vector.extract_strided_slice %72 {offsets = [7, 0], sizes = [1, 64], strides = [1, 1]} : vector<9x64xf32> to vector<1x64xf32>
    %95 = vector.shape_cast %94 : vector<1x64xf32> to vector<1x64xf32>
    %96 = vector.broadcast %95 : vector<1x64xf32> to vector<8x64xf32>
    %97 = vector.extract_strided_slice %72 {offsets = [8, 0], sizes = [1, 64], strides = [1, 1]} : vector<9x64xf32> to vector<1x64xf32>
    %98 = vector.shape_cast %97 : vector<1x64xf32> to vector<1x64xf32>
    %99 = vector.broadcast %98 : vector<1x64xf32> to vector<8x64xf32>
    %c0_41 = arith.constant 0 : index
    %c9 = arith.constant 9 : index
    %c0_42 = arith.constant 0 : index
    %c0_43 = arith.constant 0 : index
    %100 = vector.load %arg3[%c0_41, %c9, %c0_42, %c0_43] : memref<1x27x8x64xf32, #tpu.memory_space<vmem>>, vector<1x1x8x64xf32>
    %101 = vector.shape_cast %100 : vector<1x1x8x64xf32> to vector<8x64xf32>
    %102 = arith.mulf %101, %75 : vector<8x64xf32>
    %103 = arith.addf %69, %102 : vector<8x64xf32>
    %c0_44 = arith.constant 0 : index
    %c10 = arith.constant 10 : index
    %c0_45 = arith.constant 0 : index
    %c0_46 = arith.constant 0 : index
    %104 = vector.load %arg3[%c0_44, %c10, %c0_45, %c0_46] : memref<1x27x8x64xf32, #tpu.memory_space<vmem>>, vector<1x1x8x64xf32>
    %105 = vector.shape_cast %104 : vector<1x1x8x64xf32> to vector<8x64xf32>
    %106 = arith.mulf %105, %78 : vector<8x64xf32>
    %107 = arith.addf %103, %106 : vector<8x64xf32>
    %c0_47 = arith.constant 0 : index
    %c11 = arith.constant 11 : index
    %c0_48 = arith.constant 0 : index
    %c0_49 = arith.constant 0 : index
    %108 = vector.load %arg3[%c0_47, %c11, %c0_48, %c0_49] : memref<1x27x8x64xf32, #tpu.memory_space<vmem>>, vector<1x1x8x64xf32>
    %109 = vector.shape_cast %108 : vector<1x1x8x64xf32> to vector<8x64xf32>
    %110 = arith.mulf %109, %81 : vector<8x64xf32>
    %111 = arith.addf %107, %110 : vector<8x64xf32>
    %c0_50 = arith.constant 0 : index
    %c12 = arith.constant 12 : index
    %c0_51 = arith.constant 0 : index
    %c0_52 = arith.constant 0 : index
    %112 = vector.load %arg3[%c0_50, %c12, %c0_51, %c0_52] : memref<1x27x8x64xf32, #tpu.memory_space<vmem>>, vector<1x1x8x64xf32>
    %113 = vector.shape_cast %112 : vector<1x1x8x64xf32> to vector<8x64xf32>
    %114 = arith.mulf %113, %84 : vector<8x64xf32>
    %115 = arith.addf %111, %114 : vector<8x64xf32>
    %c0_53 = arith.constant 0 : index
    %c13 = arith.constant 13 : index
    %c0_54 = arith.constant 0 : index
    %c0_55 = arith.constant 0 : index
    %116 = vector.load %arg3[%c0_53, %c13, %c0_54, %c0_55] : memref<1x27x8x64xf32, #tpu.memory_space<vmem>>, vector<1x1x8x64xf32>
    %117 = vector.shape_cast %116 : vector<1x1x8x64xf32> to vector<8x64xf32>
    %118 = arith.mulf %117, %87 : vector<8x64xf32>
    %119 = arith.addf %115, %118 : vector<8x64xf32>
    %c0_56 = arith.constant 0 : index
    %c14 = arith.constant 14 : index
    %c0_57 = arith.constant 0 : index
    %c0_58 = arith.constant 0 : index
    %120 = vector.load %arg3[%c0_56, %c14, %c0_57, %c0_58] : memref<1x27x8x64xf32, #tpu.memory_space<vmem>>, vector<1x1x8x64xf32>
    %121 = vector.shape_cast %120 : vector<1x1x8x64xf32> to vector<8x64xf32>
    %122 = arith.mulf %121, %90 : vector<8x64xf32>
    %123 = arith.addf %119, %122 : vector<8x64xf32>
    %c0_59 = arith.constant 0 : index
    %c15 = arith.constant 15 : index
    %c0_60 = arith.constant 0 : index
    %c0_61 = arith.constant 0 : index
    %124 = vector.load %arg3[%c0_59, %c15, %c0_60, %c0_61] : memref<1x27x8x64xf32, #tpu.memory_space<vmem>>, vector<1x1x8x64xf32>
    %125 = vector.shape_cast %124 : vector<1x1x8x64xf32> to vector<8x64xf32>
    %126 = arith.mulf %125, %93 : vector<8x64xf32>
    %127 = arith.addf %123, %126 : vector<8x64xf32>
    %c0_62 = arith.constant 0 : index
    %c16 = arith.constant 16 : index
    %c0_63 = arith.constant 0 : index
    %c0_64 = arith.constant 0 : index
    %128 = vector.load %arg3[%c0_62, %c16, %c0_63, %c0_64] : memref<1x27x8x64xf32, #tpu.memory_space<vmem>>, vector<1x1x8x64xf32>
    %129 = vector.shape_cast %128 : vector<1x1x8x64xf32> to vector<8x64xf32>
    %130 = arith.mulf %129, %96 : vector<8x64xf32>
    %131 = arith.addf %127, %130 : vector<8x64xf32>
    %c0_65 = arith.constant 0 : index
    %c17 = arith.constant 17 : index
    %c0_66 = arith.constant 0 : index
    %c0_67 = arith.constant 0 : index
    %132 = vector.load %arg3[%c0_65, %c17, %c0_66, %c0_67] : memref<1x27x8x64xf32, #tpu.memory_space<vmem>>, vector<1x1x8x64xf32>
    %133 = vector.shape_cast %132 : vector<1x1x8x64xf32> to vector<8x64xf32>
    %134 = arith.mulf %133, %99 : vector<8x64xf32>
    %135 = arith.addf %131, %134 : vector<8x64xf32>
    %c0_68 = arith.constant 0 : index
    %c0_69 = arith.constant 0 : index
    %c2_70 = arith.constant 2 : index
    %c0_71 = arith.constant 0 : index
    %c0_72 = arith.constant 0 : index
    %136 = vector.load %arg2[%c0_68, %c0_69, %c2_70, %c0_71, %c0_72] : memref<1x1x10x9x64xbf16, #tpu.memory_space<vmem>>, vector<1x1x1x9x64xbf16>
    %137 = vector.shape_cast %136 : vector<1x1x1x9x64xbf16> to vector<9x64xbf16>
    %138 = arith.extf %137 : vector<9x64xbf16> to vector<9x64xf32>
    %139 = vector.extract_strided_slice %138 {offsets = [0, 0], sizes = [1, 64], strides = [1, 1]} : vector<9x64xf32> to vector<1x64xf32>
    %140 = vector.shape_cast %139 : vector<1x64xf32> to vector<1x64xf32>
    %141 = vector.broadcast %140 : vector<1x64xf32> to vector<8x64xf32>
    %142 = vector.extract_strided_slice %138 {offsets = [1, 0], sizes = [1, 64], strides = [1, 1]} : vector<9x64xf32> to vector<1x64xf32>
    %143 = vector.shape_cast %142 : vector<1x64xf32> to vector<1x64xf32>
    %144 = vector.broadcast %143 : vector<1x64xf32> to vector<8x64xf32>
    %145 = vector.extract_strided_slice %138 {offsets = [2, 0], sizes = [1, 64], strides = [1, 1]} : vector<9x64xf32> to vector<1x64xf32>
    %146 = vector.shape_cast %145 : vector<1x64xf32> to vector<1x64xf32>
    %147 = vector.broadcast %146 : vector<1x64xf32> to vector<8x64xf32>
    %148 = vector.extract_strided_slice %138 {offsets = [3, 0], sizes = [1, 64], strides = [1, 1]} : vector<9x64xf32> to vector<1x64xf32>
    %149 = vector.shape_cast %148 : vector<1x64xf32> to vector<1x64xf32>
    %150 = vector.broadcast %149 : vector<1x64xf32> to vector<8x64xf32>
    %151 = vector.extract_strided_slice %138 {offsets = [4, 0], sizes = [1, 64], strides = [1, 1]} : vector<9x64xf32> to vector<1x64xf32>
    %152 = vector.shape_cast %151 : vector<1x64xf32> to vector<1x64xf32>
    %153 = vector.broadcast %152 : vector<1x64xf32> to vector<8x64xf32>
    %154 = vector.extract_strided_slice %138 {offsets = [5, 0], sizes = [1, 64], strides = [1, 1]} : vector<9x64xf32> to vector<1x64xf32>
    %155 = vector.shape_cast %154 : vector<1x64xf32> to vector<1x64xf32>
    %156 = vector.broadcast %155 : vector<1x64xf32> to vector<8x64xf32>
    %157 = vector.extract_strided_slice %138 {offsets = [6, 0], sizes = [1, 64], strides = [1, 1]} : vector<9x64xf32> to vector<1x64xf32>
    %158 = vector.shape_cast %157 : vector<1x64xf32> to vector<1x64xf32>
    %159 = vector.broadcast %158 : vector<1x64xf32> to vector<8x64xf32>
    %160 = vector.extract_strided_slice %138 {offsets = [7, 0], sizes = [1, 64], strides = [1, 1]} : vector<9x64xf32> to vector<1x64xf32>
    %161 = vector.shape_cast %160 : vector<1x64xf32> to vector<1x64xf32>
    %162 = vector.broadcast %161 : vector<1x64xf32> to vector<8x64xf32>
    %163 = vector.extract_strided_slice %138 {offsets = [8, 0], sizes = [1, 64], strides = [1, 1]} : vector<9x64xf32> to vector<1x64xf32>
    %164 = vector.shape_cast %163 : vector<1x64xf32> to vector<1x64xf32>
    %165 = vector.broadcast %164 : vector<1x64xf32> to vector<8x64xf32>
    %c0_73 = arith.constant 0 : index
    %c18 = arith.constant 18 : index
    %c0_74 = arith.constant 0 : index
    %c0_75 = arith.constant 0 : index
    %166 = vector.load %arg3[%c0_73, %c18, %c0_74, %c0_75] : memref<1x27x8x64xf32, #tpu.memory_space<vmem>>, vector<1x1x8x64xf32>
    %167 = vector.shape_cast %166 : vector<1x1x8x64xf32> to vector<8x64xf32>
    %168 = arith.mulf %167, %141 : vector<8x64xf32>
    %169 = arith.addf %135, %168 : vector<8x64xf32>
    %c0_76 = arith.constant 0 : index
    %c19 = arith.constant 19 : index
    %c0_77 = arith.constant 0 : index
    %c0_78 = arith.constant 0 : index
    %170 = vector.load %arg3[%c0_76, %c19, %c0_77, %c0_78] : memref<1x27x8x64xf32, #tpu.memory_space<vmem>>, vector<1x1x8x64xf32>
    %171 = vector.shape_cast %170 : vector<1x1x8x64xf32> to vector<8x64xf32>
    %172 = arith.mulf %171, %144 : vector<8x64xf32>
    %173 = arith.addf %169, %172 : vector<8x64xf32>
    %c0_79 = arith.constant 0 : index
    %c20 = arith.constant 20 : index
    %c0_80 = arith.constant 0 : index
    %c0_81 = arith.constant 0 : index
    %174 = vector.load %arg3[%c0_79, %c20, %c0_80, %c0_81] : memref<1x27x8x64xf32, #tpu.memory_space<vmem>>, vector<1x1x8x64xf32>
    %175 = vector.shape_cast %174 : vector<1x1x8x64xf32> to vector<8x64xf32>
    %176 = arith.mulf %175, %147 : vector<8x64xf32>
    %177 = arith.addf %173, %176 : vector<8x64xf32>
    %c0_82 = arith.constant 0 : index
    %c21 = arith.constant 21 : index
    %c0_83 = arith.constant 0 : index
    %c0_84 = arith.constant 0 : index
    %178 = vector.load %arg3[%c0_82, %c21, %c0_83, %c0_84] : memref<1x27x8x64xf32, #tpu.memory_space<vmem>>, vector<1x1x8x64xf32>
    %179 = vector.shape_cast %178 : vector<1x1x8x64xf32> to vector<8x64xf32>
    %180 = arith.mulf %179, %150 : vector<8x64xf32>
    %181 = arith.addf %177, %180 : vector<8x64xf32>
    %c0_85 = arith.constant 0 : index
    %c22 = arith.constant 22 : index
    %c0_86 = arith.constant 0 : index
    %c0_87 = arith.constant 0 : index
    %182 = vector.load %arg3[%c0_85, %c22, %c0_86, %c0_87] : memref<1x27x8x64xf32, #tpu.memory_space<vmem>>, vector<1x1x8x64xf32>
    %183 = vector.shape_cast %182 : vector<1x1x8x64xf32> to vector<8x64xf32>
    %184 = arith.mulf %183, %153 : vector<8x64xf32>
    %185 = arith.addf %181, %184 : vector<8x64xf32>
    %c0_88 = arith.constant 0 : index
    %c23 = arith.constant 23 : index
    %c0_89 = arith.constant 0 : index
    %c0_90 = arith.constant 0 : index
    %186 = vector.load %arg3[%c0_88, %c23, %c0_89, %c0_90] : memref<1x27x8x64xf32, #tpu.memory_space<vmem>>, vector<1x1x8x64xf32>
    %187 = vector.shape_cast %186 : vector<1x1x8x64xf32> to vector<8x64xf32>
    %188 = arith.mulf %187, %156 : vector<8x64xf32>
    %189 = arith.addf %185, %188 : vector<8x64xf32>
    %c0_91 = arith.constant 0 : index
    %c24 = arith.constant 24 : index
    %c0_92 = arith.constant 0 : index
    %c0_93 = arith.constant 0 : index
    %190 = vector.load %arg3[%c0_91, %c24, %c0_92, %c0_93] : memref<1x27x8x64xf32, #tpu.memory_space<vmem>>, vector<1x1x8x64xf32>
    %191 = vector.shape_cast %190 : vector<1x1x8x64xf32> to vector<8x64xf32>
    %192 = arith.mulf %191, %159 : vector<8x64xf32>
    %193 = arith.addf %189, %192 : vector<8x64xf32>
    %c0_94 = arith.constant 0 : index
    %c25 = arith.constant 25 : index
    %c0_95 = arith.constant 0 : index
    %c0_96 = arith.constant 0 : index
    %194 = vector.load %arg3[%c0_94, %c25, %c0_95, %c0_96] : memref<1x27x8x64xf32, #tpu.memory_space<vmem>>, vector<1x1x8x64xf32>
    %195 = vector.shape_cast %194 : vector<1x1x8x64xf32> to vector<8x64xf32>
    %196 = arith.mulf %195, %162 : vector<8x64xf32>
    %197 = arith.addf %193, %196 : vector<8x64xf32>
    %c0_97 = arith.constant 0 : index
    %c26 = arith.constant 26 : index
    %c0_98 = arith.constant 0 : index
    %c0_99 = arith.constant 0 : index
    %198 = vector.load %arg3[%c0_97, %c26, %c0_98, %c0_99] : memref<1x27x8x64xf32, #tpu.memory_space<vmem>>, vector<1x1x8x64xf32>
    %199 = vector.shape_cast %198 : vector<1x1x8x64xf32> to vector<8x64xf32>
    %200 = arith.mulf %199, %165 : vector<8x64xf32>
    %201 = arith.addf %197, %200 : vector<8x64xf32>
    %202 = arith.addf %201, %1 : vector<8x64xf32>
    %cst_100 = arith.constant 0.000000e+00 : f32
    %203 = vector.broadcast %cst_100 : f32 to vector<8x64xf32>
    %204 = arith.maximumf %202, %203 : vector<8x64xf32>
    %cst_101 = arith.constant dense<0.000000e+00> : vector<8xf32>
    %205 = vector.multi_reduction <add>, %204, %cst_101 [1] : vector<8x64xf32> to vector<8xf32>
    %206 = vector.shape_cast %205 : vector<8xf32> to vector<8x1xf32>
    %207 = arith.addf %2, %206 : vector<8x1xf32>
    %cst_102 = arith.constant 0.000000e+00 : f32
    %208 = vector.broadcast %cst_102 : f32 to vector<8x64xf32>
    %c0_103 = arith.constant 0 : index
    %c0_104 = arith.constant 0 : index
    %c0_105 = arith.constant 0 : index
    %c0_106 = arith.constant 0 : index
    %209 = vector.load %arg3[%c0_103, %c0_104, %c0_105, %c0_106] : memref<1x27x8x64xf32, #tpu.memory_space<vmem>>, vector<1x1x8x64xf32>
    %210 = vector.shape_cast %209 : vector<1x1x8x64xf32> to vector<8x64xf32>
    %211 = arith.mulf %210, %75 : vector<8x64xf32>
    %212 = arith.addf %208, %211 : vector<8x64xf32>
    %c0_107 = arith.constant 0 : index
    %c1_108 = arith.constant 1 : index
    %c0_109 = arith.constant 0 : index
    %c0_110 = arith.constant 0 : index
    %213 = vector.load %arg3[%c0_107, %c1_108, %c0_109, %c0_110] : memref<1x27x8x64xf32, #tpu.memory_space<vmem>>, vector<1x1x8x64xf32>
    %214 = vector.shape_cast %213 : vector<1x1x8x64xf32> to vector<8x64xf32>
    %215 = arith.mulf %214, %78 : vector<8x64xf32>
    %216 = arith.addf %212, %215 : vector<8x64xf32>
    %c0_111 = arith.constant 0 : index
    %c2_112 = arith.constant 2 : index
    %c0_113 = arith.constant 0 : index
    %c0_114 = arith.constant 0 : index
    %217 = vector.load %arg3[%c0_111, %c2_112, %c0_113, %c0_114] : memref<1x27x8x64xf32, #tpu.memory_space<vmem>>, vector<1x1x8x64xf32>
    %218 = vector.shape_cast %217 : vector<1x1x8x64xf32> to vector<8x64xf32>
    %219 = arith.mulf %218, %81 : vector<8x64xf32>
    %220 = arith.addf %216, %219 : vector<8x64xf32>
    %c0_115 = arith.constant 0 : index
    %c3_116 = arith.constant 3 : index
    %c0_117 = arith.constant 0 : index
    %c0_118 = arith.constant 0 : index
    %221 = vector.load %arg3[%c0_115, %c3_116, %c0_117, %c0_118] : memref<1x27x8x64xf32, #tpu.memory_space<vmem>>, vector<1x1x8x64xf32>
    %222 = vector.shape_cast %221 : vector<1x1x8x64xf32> to vector<8x64xf32>
    %223 = arith.mulf %222, %84 : vector<8x64xf32>
    %224 = arith.addf %220, %223 : vector<8x64xf32>
    %c0_119 = arith.constant 0 : index
    %c4_120 = arith.constant 4 : index
    %c0_121 = arith.constant 0 : index
    %c0_122 = arith.constant 0 : index
    %225 = vector.load %arg3[%c0_119, %c4_120, %c0_121, %c0_122] : memref<1x27x8x64xf32, #tpu.memory_space<vmem>>, vector<1x1x8x64xf32>
    %226 = vector.shape_cast %225 : vector<1x1x8x64xf32> to vector<8x64xf32>
    %227 = arith.mulf %226, %87 : vector<8x64xf32>
    %228 = arith.addf %224, %227 : vector<8x64xf32>
    %c0_123 = arith.constant 0 : index
    %c5_124 = arith.constant 5 : index
    %c0_125 = arith.constant 0 : index
    %c0_126 = arith.constant 0 : index
    %229 = vector.load %arg3[%c0_123, %c5_124, %c0_125, %c0_126] : memref<1x27x8x64xf32, #tpu.memory_space<vmem>>, vector<1x1x8x64xf32>
    %230 = vector.shape_cast %229 : vector<1x1x8x64xf32> to vector<8x64xf32>
    %231 = arith.mulf %230, %90 : vector<8x64xf32>
    %232 = arith.addf %228, %231 : vector<8x64xf32>
    %c0_127 = arith.constant 0 : index
    %c6_128 = arith.constant 6 : index
    %c0_129 = arith.constant 0 : index
    %c0_130 = arith.constant 0 : index
    %233 = vector.load %arg3[%c0_127, %c6_128, %c0_129, %c0_130] : memref<1x27x8x64xf32, #tpu.memory_space<vmem>>, vector<1x1x8x64xf32>
    %234 = vector.shape_cast %233 : vector<1x1x8x64xf32> to vector<8x64xf32>
    %235 = arith.mulf %234, %93 : vector<8x64xf32>
    %236 = arith.addf %232, %235 : vector<8x64xf32>
    %c0_131 = arith.constant 0 : index
    %c7_132 = arith.constant 7 : index
    %c0_133 = arith.constant 0 : index
    %c0_134 = arith.constant 0 : index
    %237 = vector.load %arg3[%c0_131, %c7_132, %c0_133, %c0_134] : memref<1x27x8x64xf32, #tpu.memory_space<vmem>>, vector<1x1x8x64xf32>
    %238 = vector.shape_cast %237 : vector<1x1x8x64xf32> to vector<8x64xf32>
    %239 = arith.mulf %238, %96 : vector<8x64xf32>
    %240 = arith.addf %236, %239 : vector<8x64xf32>
    %c0_135 = arith.constant 0 : index
    %c8_136 = arith.constant 8 : index
    %c0_137 = arith.constant 0 : index
    %c0_138 = arith.constant 0 : index
    %241 = vector.load %arg3[%c0_135, %c8_136, %c0_137, %c0_138] : memref<1x27x8x64xf32, #tpu.memory_space<vmem>>, vector<1x1x8x64xf32>
    %242 = vector.shape_cast %241 : vector<1x1x8x64xf32> to vector<8x64xf32>
    %243 = arith.mulf %242, %99 : vector<8x64xf32>
    %244 = arith.addf %240, %243 : vector<8x64xf32>
    %c0_139 = arith.constant 0 : index
    %c9_140 = arith.constant 9 : index
    %c0_141 = arith.constant 0 : index
    %c0_142 = arith.constant 0 : index
    %245 = vector.load %arg3[%c0_139, %c9_140, %c0_141, %c0_142] : memref<1x27x8x64xf32, #tpu.memory_space<vmem>>, vector<1x1x8x64xf32>
    %246 = vector.shape_cast %245 : vector<1x1x8x64xf32> to vector<8x64xf32>
    %247 = arith.mulf %246, %141 : vector<8x64xf32>
    %248 = arith.addf %244, %247 : vector<8x64xf32>
    %c0_143 = arith.constant 0 : index
    %c10_144 = arith.constant 10 : index
    %c0_145 = arith.constant 0 : index
    %c0_146 = arith.constant 0 : index
    %249 = vector.load %arg3[%c0_143, %c10_144, %c0_145, %c0_146] : memref<1x27x8x64xf32, #tpu.memory_space<vmem>>, vector<1x1x8x64xf32>
    %250 = vector.shape_cast %249 : vector<1x1x8x64xf32> to vector<8x64xf32>
    %251 = arith.mulf %250, %144 : vector<8x64xf32>
    %252 = arith.addf %248, %251 : vector<8x64xf32>
    %c0_147 = arith.constant 0 : index
    %c11_148 = arith.constant 11 : index
    %c0_149 = arith.constant 0 : index
    %c0_150 = arith.constant 0 : index
    %253 = vector.load %arg3[%c0_147, %c11_148, %c0_149, %c0_150] : memref<1x27x8x64xf32, #tpu.memory_space<vmem>>, vector<1x1x8x64xf32>
    %254 = vector.shape_cast %253 : vector<1x1x8x64xf32> to vector<8x64xf32>
    %255 = arith.mulf %254, %147 : vector<8x64xf32>
    %256 = arith.addf %252, %255 : vector<8x64xf32>
    %c0_151 = arith.constant 0 : index
    %c12_152 = arith.constant 12 : index
    %c0_153 = arith.constant 0 : index
    %c0_154 = arith.constant 0 : index
    %257 = vector.load %arg3[%c0_151, %c12_152, %c0_153, %c0_154] : memref<1x27x8x64xf32, #tpu.memory_space<vmem>>, vector<1x1x8x64xf32>
    %258 = vector.shape_cast %257 : vector<1x1x8x64xf32> to vector<8x64xf32>
    %259 = arith.mulf %258, %150 : vector<8x64xf32>
    %260 = arith.addf %256, %259 : vector<8x64xf32>
    %c0_155 = arith.constant 0 : index
    %c13_156 = arith.constant 13 : index
    %c0_157 = arith.constant 0 : index
    %c0_158 = arith.constant 0 : index
    %261 = vector.load %arg3[%c0_155, %c13_156, %c0_157, %c0_158] : memref<1x27x8x64xf32, #tpu.memory_space<vmem>>, vector<1x1x8x64xf32>
    %262 = vector.shape_cast %261 : vector<1x1x8x64xf32> to vector<8x64xf32>
    %263 = arith.mulf %262, %153 : vector<8x64xf32>
    %264 = arith.addf %260, %263 : vector<8x64xf32>
    %c0_159 = arith.constant 0 : index
    %c14_160 = arith.constant 14 : index
    %c0_161 = arith.constant 0 : index
    %c0_162 = arith.constant 0 : index
    %265 = vector.load %arg3[%c0_159, %c14_160, %c0_161, %c0_162] : memref<1x27x8x64xf32, #tpu.memory_space<vmem>>, vector<1x1x8x64xf32>
    %266 = vector.shape_cast %265 : vector<1x1x8x64xf32> to vector<8x64xf32>
    %267 = arith.mulf %266, %156 : vector<8x64xf32>
    %268 = arith.addf %264, %267 : vector<8x64xf32>
    %c0_163 = arith.constant 0 : index
    %c15_164 = arith.constant 15 : index
    %c0_165 = arith.constant 0 : index
    %c0_166 = arith.constant 0 : index
    %269 = vector.load %arg3[%c0_163, %c15_164, %c0_165, %c0_166] : memref<1x27x8x64xf32, #tpu.memory_space<vmem>>, vector<1x1x8x64xf32>
    %270 = vector.shape_cast %269 : vector<1x1x8x64xf32> to vector<8x64xf32>
    %271 = arith.mulf %270, %159 : vector<8x64xf32>
    %272 = arith.addf %268, %271 : vector<8x64xf32>
    %c0_167 = arith.constant 0 : index
    %c16_168 = arith.constant 16 : index
    %c0_169 = arith.constant 0 : index
    %c0_170 = arith.constant 0 : index
    %273 = vector.load %arg3[%c0_167, %c16_168, %c0_169, %c0_170] : memref<1x27x8x64xf32, #tpu.memory_space<vmem>>, vector<1x1x8x64xf32>
    %274 = vector.shape_cast %273 : vector<1x1x8x64xf32> to vector<8x64xf32>
    %275 = arith.mulf %274, %162 : vector<8x64xf32>
    %276 = arith.addf %272, %275 : vector<8x64xf32>
    %c0_171 = arith.constant 0 : index
    %c17_172 = arith.constant 17 : index
    %c0_173 = arith.constant 0 : index
    %c0_174 = arith.constant 0 : index
    %277 = vector.load %arg3[%c0_171, %c17_172, %c0_173, %c0_174] : memref<1x27x8x64xf32, #tpu.memory_space<vmem>>, vector<1x1x8x64xf32>
    %278 = vector.shape_cast %277 : vector<1x1x8x64xf32> to vector<8x64xf32>
    %279 = arith.mulf %278, %165 : vector<8x64xf32>
    %280 = arith.addf %276, %279 : vector<8x64xf32>
    %c0_175 = arith.constant 0 : index
    %c0_176 = arith.constant 0 : index
    %c3_177 = arith.constant 3 : index
    %c0_178 = arith.constant 0 : index
    %c0_179 = arith.constant 0 : index
    %281 = vector.load %arg2[%c0_175, %c0_176, %c3_177, %c0_178, %c0_179] : memref<1x1x10x9x64xbf16, #tpu.memory_space<vmem>>, vector<1x1x1x9x64xbf16>
    %282 = vector.shape_cast %281 : vector<1x1x1x9x64xbf16> to vector<9x64xbf16>
    %283 = arith.extf %282 : vector<9x64xbf16> to vector<9x64xf32>
    %284 = vector.extract_strided_slice %283 {offsets = [0, 0], sizes = [1, 64], strides = [1, 1]} : vector<9x64xf32> to vector<1x64xf32>
    %285 = vector.shape_cast %284 : vector<1x64xf32> to vector<1x64xf32>
    %286 = vector.broadcast %285 : vector<1x64xf32> to vector<8x64xf32>
    %287 = vector.extract_strided_slice %283 {offsets = [1, 0], sizes = [1, 64], strides = [1, 1]} : vector<9x64xf32> to vector<1x64xf32>
    %288 = vector.shape_cast %287 : vector<1x64xf32> to vector<1x64xf32>
    %289 = vector.broadcast %288 : vector<1x64xf32> to vector<8x64xf32>
    %290 = vector.extract_strided_slice %283 {offsets = [2, 0], sizes = [1, 64], strides = [1, 1]} : vector<9x64xf32> to vector<1x64xf32>
    %291 = vector.shape_cast %290 : vector<1x64xf32> to vector<1x64xf32>
    %292 = vector.broadcast %291 : vector<1x64xf32> to vector<8x64xf32>
    %293 = vector.extract_strided_slice %283 {offsets = [3, 0], sizes = [1, 64], strides = [1, 1]} : vector<9x64xf32> to vector<1x64xf32>
    %294 = vector.shape_cast %293 : vector<1x64xf32> to vector<1x64xf32>
    %295 = vector.broadcast %294 : vector<1x64xf32> to vector<8x64xf32>
    %296 = vector.extract_strided_slice %283 {offsets = [4, 0], sizes = [1, 64], strides = [1, 1]} : vector<9x64xf32> to vector<1x64xf32>
    %297 = vector.shape_cast %296 : vector<1x64xf32> to vector<1x64xf32>
    %298 = vector.broadcast %297 : vector<1x64xf32> to vector<8x64xf32>
    %299 = vector.extract_strided_slice %283 {offsets = [5, 0], sizes = [1, 64], strides = [1, 1]} : vector<9x64xf32> to vector<1x64xf32>
    %300 = vector.shape_cast %299 : vector<1x64xf32> to vector<1x64xf32>
    %301 = vector.broadcast %300 : vector<1x64xf32> to vector<8x64xf32>
    %302 = vector.extract_strided_slice %283 {offsets = [6, 0], sizes = [1, 64], strides = [1, 1]} : vector<9x64xf32> to vector<1x64xf32>
    %303 = vector.shape_cast %302 : vector<1x64xf32> to vector<1x64xf32>
    %304 = vector.broadcast %303 : vector<1x64xf32> to vector<8x64xf32>
    %305 = vector.extract_strided_slice %283 {offsets = [7, 0], sizes = [1, 64], strides = [1, 1]} : vector<9x64xf32> to vector<1x64xf32>
    %306 = vector.shape_cast %305 : vector<1x64xf32> to vector<1x64xf32>
    %307 = vector.broadcast %306 : vector<1x64xf32> to vector<8x64xf32>
    %308 = vector.extract_strided_slice %283 {offsets = [8, 0], sizes = [1, 64], strides = [1, 1]} : vector<9x64xf32> to vector<1x64xf32>
    %309 = vector.shape_cast %308 : vector<1x64xf32> to vector<1x64xf32>
    %310 = vector.broadcast %309 : vector<1x64xf32> to vector<8x64xf32>
    %c0_180 = arith.constant 0 : index
    %c18_181 = arith.constant 18 : index
    %c0_182 = arith.constant 0 : index
    %c0_183 = arith.constant 0 : index
    %311 = vector.load %arg3[%c0_180, %c18_181, %c0_182, %c0_183] : memref<1x27x8x64xf32, #tpu.memory_space<vmem>>, vector<1x1x8x64xf32>
    %312 = vector.shape_cast %311 : vector<1x1x8x64xf32> to vector<8x64xf32>
    %313 = arith.mulf %312, %286 : vector<8x64xf32>
    %314 = arith.addf %280, %313 : vector<8x64xf32>
    %c0_184 = arith.constant 0 : index
    %c19_185 = arith.constant 19 : index
    %c0_186 = arith.constant 0 : index
    %c0_187 = arith.constant 0 : index
    %315 = vector.load %arg3[%c0_184, %c19_185, %c0_186, %c0_187] : memref<1x27x8x64xf32, #tpu.memory_space<vmem>>, vector<1x1x8x64xf32>
    %316 = vector.shape_cast %315 : vector<1x1x8x64xf32> to vector<8x64xf32>
    %317 = arith.mulf %316, %289 : vector<8x64xf32>
    %318 = arith.addf %314, %317 : vector<8x64xf32>
    %c0_188 = arith.constant 0 : index
    %c20_189 = arith.constant 20 : index
    %c0_190 = arith.constant 0 : index
    %c0_191 = arith.constant 0 : index
    %319 = vector.load %arg3[%c0_188, %c20_189, %c0_190, %c0_191] : memref<1x27x8x64xf32, #tpu.memory_space<vmem>>, vector<1x1x8x64xf32>
    %320 = vector.shape_cast %319 : vector<1x1x8x64xf32> to vector<8x64xf32>
    %321 = arith.mulf %320, %292 : vector<8x64xf32>
    %322 = arith.addf %318, %321 : vector<8x64xf32>
    %c0_192 = arith.constant 0 : index
    %c21_193 = arith.constant 21 : index
    %c0_194 = arith.constant 0 : index
    %c0_195 = arith.constant 0 : index
    %323 = vector.load %arg3[%c0_192, %c21_193, %c0_194, %c0_195] : memref<1x27x8x64xf32, #tpu.memory_space<vmem>>, vector<1x1x8x64xf32>
    %324 = vector.shape_cast %323 : vector<1x1x8x64xf32> to vector<8x64xf32>
    %325 = arith.mulf %324, %295 : vector<8x64xf32>
    %326 = arith.addf %322, %325 : vector<8x64xf32>
    %c0_196 = arith.constant 0 : index
    %c22_197 = arith.constant 22 : index
    %c0_198 = arith.constant 0 : index
    %c0_199 = arith.constant 0 : index
    %327 = vector.load %arg3[%c0_196, %c22_197, %c0_198, %c0_199] : memref<1x27x8x64xf32, #tpu.memory_space<vmem>>, vector<1x1x8x64xf32>
    %328 = vector.shape_cast %327 : vector<1x1x8x64xf32> to vector<8x64xf32>
    %329 = arith.mulf %328, %298 : vector<8x64xf32>
    %330 = arith.addf %326, %329 : vector<8x64xf32>
    %c0_200 = arith.constant 0 : index
    %c23_201 = arith.constant 23 : index
    %c0_202 = arith.constant 0 : index
    %c0_203 = arith.constant 0 : index
    %331 = vector.load %arg3[%c0_200, %c23_201, %c0_202, %c0_203] : memref<1x27x8x64xf32, #tpu.memory_space<vmem>>, vector<1x1x8x64xf32>
    %332 = vector.shape_cast %331 : vector<1x1x8x64xf32> to vector<8x64xf32>
    %333 = arith.mulf %332, %301 : vector<8x64xf32>
    %334 = arith.addf %330, %333 : vector<8x64xf32>
    %c0_204 = arith.constant 0 : index
    %c24_205 = arith.constant 24 : index
    %c0_206 = arith.constant 0 : index
    %c0_207 = arith.constant 0 : index
    %335 = vector.load %arg3[%c0_204, %c24_205, %c0_206, %c0_207] : memref<1x27x8x64xf32, #tpu.memory_space<vmem>>, vector<1x1x8x64xf32>
    %336 = vector.shape_cast %335 : vector<1x1x8x64xf32> to vector<8x64xf32>
    %337 = arith.mulf %336, %304 : vector<8x64xf32>
    %338 = arith.addf %334, %337 : vector<8x64xf32>
    %c0_208 = arith.constant 0 : index
    %c25_209 = arith.constant 25 : index
    %c0_210 = arith.constant 0 : index
    %c0_211 = arith.constant 0 : index
    %339 = vector.load %arg3[%c0_208, %c25_209, %c0_210, %c0_211] : memref<1x27x8x64xf32, #tpu.memory_space<vmem>>, vector<1x1x8x64xf32>
    %340 = vector.shape_cast %339 : vector<1x1x8x64xf32> to vector<8x64xf32>
    %341 = arith.mulf %340, %307 : vector<8x64xf32>
    %342 = arith.addf %338, %341 : vector<8x64xf32>
    %c0_212 = arith.constant 0 : index
    %c26_213 = arith.constant 26 : index
    %c0_214 = arith.constant 0 : index
    %c0_215 = arith.constant 0 : index
    %343 = vector.load %arg3[%c0_212, %c26_213, %c0_214, %c0_215] : memref<1x27x8x64xf32, #tpu.memory_space<vmem>>, vector<1x1x8x64xf32>
    %344 = vector.shape_cast %343 : vector<1x1x8x64xf32> to vector<8x64xf32>
    %345 = arith.mulf %344, %310 : vector<8x64xf32>
    %346 = arith.addf %342, %345 : vector<8x64xf32>
    %347 = arith.addf %346, %1 : vector<8x64xf32>
    %cst_216 = arith.constant 0.000000e+00 : f32
    %348 = vector.broadcast %cst_216 : f32 to vector<8x64xf32>
    %349 = arith.maximumf %347, %348 : vector<8x64xf32>
    %cst_217 = arith.constant dense<0.000000e+00> : vector<8xf32>
    %350 = vector.multi_reduction <add>, %349, %cst_217 [1] : vector<8x64xf32> to vector<8xf32>
    %351 = vector.shape_cast %350 : vector<8xf32> to vector<8x1xf32>
    %352 = arith.addf %207, %351 : vector<8x1xf32>
    %cst_218 = arith.constant 0.000000e+00 : f32
    %353 = vector.broadcast %cst_218 : f32 to vector<8x64xf32>
    %c0_219 = arith.constant 0 : index
    %c0_220 = arith.constant 0 : index
    %c0_221 = arith.constant 0 : index
    %c0_222 = arith.constant 0 : index
    %354 = vector.load %arg3[%c0_219, %c0_220, %c0_221, %c0_222] : memref<1x27x8x64xf32, #tpu.memory_space<vmem>>, vector<1x1x8x64xf32>
    %355 = vector.shape_cast %354 : vector<1x1x8x64xf32> to vector<8x64xf32>
    %356 = arith.mulf %355, %141 : vector<8x64xf32>
    %357 = arith.addf %353, %356 : vector<8x64xf32>
    %c0_223 = arith.constant 0 : index
    %c1_224 = arith.constant 1 : index
    %c0_225 = arith.constant 0 : index
    %c0_226 = arith.constant 0 : index
    %358 = vector.load %arg3[%c0_223, %c1_224, %c0_225, %c0_226] : memref<1x27x8x64xf32, #tpu.memory_space<vmem>>, vector<1x1x8x64xf32>
    %359 = vector.shape_cast %358 : vector<1x1x8x64xf32> to vector<8x64xf32>
    %360 = arith.mulf %359, %144 : vector<8x64xf32>
    %361 = arith.addf %357, %360 : vector<8x64xf32>
    %c0_227 = arith.constant 0 : index
    %c2_228 = arith.constant 2 : index
    %c0_229 = arith.constant 0 : index
    %c0_230 = arith.constant 0 : index
    %362 = vector.load %arg3[%c0_227, %c2_228, %c0_229, %c0_230] : memref<1x27x8x64xf32, #tpu.memory_space<vmem>>, vector<1x1x8x64xf32>
    %363 = vector.shape_cast %362 : vector<1x1x8x64xf32> to vector<8x64xf32>
    %364 = arith.mulf %363, %147 : vector<8x64xf32>
    %365 = arith.addf %361, %364 : vector<8x64xf32>
    %c0_231 = arith.constant 0 : index
    %c3_232 = arith.constant 3 : index
    %c0_233 = arith.constant 0 : index
    %c0_234 = arith.constant 0 : index
    %366 = vector.load %arg3[%c0_231, %c3_232, %c0_233, %c0_234] : memref<1x27x8x64xf32, #tpu.memory_space<vmem>>, vector<1x1x8x64xf32>
    %367 = vector.shape_cast %366 : vector<1x1x8x64xf32> to vector<8x64xf32>
    %368 = arith.mulf %367, %150 : vector<8x64xf32>
    %369 = arith.addf %365, %368 : vector<8x64xf32>
    %c0_235 = arith.constant 0 : index
    %c4_236 = arith.constant 4 : index
    %c0_237 = arith.constant 0 : index
    %c0_238 = arith.constant 0 : index
    %370 = vector.load %arg3[%c0_235, %c4_236, %c0_237, %c0_238] : memref<1x27x8x64xf32, #tpu.memory_space<vmem>>, vector<1x1x8x64xf32>
    %371 = vector.shape_cast %370 : vector<1x1x8x64xf32> to vector<8x64xf32>
    %372 = arith.mulf %371, %153 : vector<8x64xf32>
    %373 = arith.addf %369, %372 : vector<8x64xf32>
    %c0_239 = arith.constant 0 : index
    %c5_240 = arith.constant 5 : index
    %c0_241 = arith.constant 0 : index
    %c0_242 = arith.constant 0 : index
    %374 = vector.load %arg3[%c0_239, %c5_240, %c0_241, %c0_242] : memref<1x27x8x64xf32, #tpu.memory_space<vmem>>, vector<1x1x8x64xf32>
    %375 = vector.shape_cast %374 : vector<1x1x8x64xf32> to vector<8x64xf32>
    %376 = arith.mulf %375, %156 : vector<8x64xf32>
    %377 = arith.addf %373, %376 : vector<8x64xf32>
    %c0_243 = arith.constant 0 : index
    %c6_244 = arith.constant 6 : index
    %c0_245 = arith.constant 0 : index
    %c0_246 = arith.constant 0 : index
    %378 = vector.load %arg3[%c0_243, %c6_244, %c0_245, %c0_246] : memref<1x27x8x64xf32, #tpu.memory_space<vmem>>, vector<1x1x8x64xf32>
    %379 = vector.shape_cast %378 : vector<1x1x8x64xf32> to vector<8x64xf32>
    %380 = arith.mulf %379, %159 : vector<8x64xf32>
    %381 = arith.addf %377, %380 : vector<8x64xf32>
    %c0_247 = arith.constant 0 : index
    %c7_248 = arith.constant 7 : index
    %c0_249 = arith.constant 0 : index
    %c0_250 = arith.constant 0 : index
    %382 = vector.load %arg3[%c0_247, %c7_248, %c0_249, %c0_250] : memref<1x27x8x64xf32, #tpu.memory_space<vmem>>, vector<1x1x8x64xf32>
    %383 = vector.shape_cast %382 : vector<1x1x8x64xf32> to vector<8x64xf32>
    %384 = arith.mulf %383, %162 : vector<8x64xf32>
    %385 = arith.addf %381, %384 : vector<8x64xf32>
    %c0_251 = arith.constant 0 : index
    %c8_252 = arith.constant 8 : index
    %c0_253 = arith.constant 0 : index
    %c0_254 = arith.constant 0 : index
    %386 = vector.load %arg3[%c0_251, %c8_252, %c0_253, %c0_254] : memref<1x27x8x64xf32, #tpu.memory_space<vmem>>, vector<1x1x8x64xf32>
    %387 = vector.shape_cast %386 : vector<1x1x8x64xf32> to vector<8x64xf32>
    %388 = arith.mulf %387, %165 : vector<8x64xf32>
    %389 = arith.addf %385, %388 : vector<8x64xf32>
    %c0_255 = arith.constant 0 : index
    %c9_256 = arith.constant 9 : index
    %c0_257 = arith.constant 0 : index
    %c0_258 = arith.constant 0 : index
    %390 = vector.load %arg3[%c0_255, %c9_256, %c0_257, %c0_258] : memref<1x27x8x64xf32, #tpu.memory_space<vmem>>, vector<1x1x8x64xf32>
    %391 = vector.shape_cast %390 : vector<1x1x8x64xf32> to vector<8x64xf32>
    %392 = arith.mulf %391, %286 : vector<8x64xf32>
    %393 = arith.addf %389, %392 : vector<8x64xf32>
    %c0_259 = arith.constant 0 : index
    %c10_260 = arith.constant 10 : index
    %c0_261 = arith.constant 0 : index
    %c0_262 = arith.constant 0 : index
    %394 = vector.load %arg3[%c0_259, %c10_260, %c0_261, %c0_262] : memref<1x27x8x64xf32, #tpu.memory_space<vmem>>, vector<1x1x8x64xf32>
    %395 = vector.shape_cast %394 : vector<1x1x8x64xf32> to vector<8x64xf32>
    %396 = arith.mulf %395, %289 : vector<8x64xf32>
    %397 = arith.addf %393, %396 : vector<8x64xf32>
    %c0_263 = arith.constant 0 : index
    %c11_264 = arith.constant 11 : index
    %c0_265 = arith.constant 0 : index
    %c0_266 = arith.constant 0 : index
    %398 = vector.load %arg3[%c0_263, %c11_264, %c0_265, %c0_266] : memref<1x27x8x64xf32, #tpu.memory_space<vmem>>, vector<1x1x8x64xf32>
    %399 = vector.shape_cast %398 : vector<1x1x8x64xf32> to vector<8x64xf32>
    %400 = arith.mulf %399, %292 : vector<8x64xf32>
    %401 = arith.addf %397, %400 : vector<8x64xf32>
    %c0_267 = arith.constant 0 : index
    %c12_268 = arith.constant 12 : index
    %c0_269 = arith.constant 0 : index
    %c0_270 = arith.constant 0 : index
    %402 = vector.load %arg3[%c0_267, %c12_268, %c0_269, %c0_270] : memref<1x27x8x64xf32, #tpu.memory_space<vmem>>, vector<1x1x8x64xf32>
    %403 = vector.shape_cast %402 : vector<1x1x8x64xf32> to vector<8x64xf32>
    %404 = arith.mulf %403, %295 : vector<8x64xf32>
    %405 = arith.addf %401, %404 : vector<8x64xf32>
    %c0_271 = arith.constant 0 : index
    %c13_272 = arith.constant 13 : index
    %c0_273 = arith.constant 0 : index
    %c0_274 = arith.constant 0 : index
    %406 = vector.load %arg3[%c0_271, %c13_272, %c0_273, %c0_274] : memref<1x27x8x64xf32, #tpu.memory_space<vmem>>, vector<1x1x8x64xf32>
    %407 = vector.shape_cast %406 : vector<1x1x8x64xf32> to vector<8x64xf32>
    %408 = arith.mulf %407, %298 : vector<8x64xf32>
    %409 = arith.addf %405, %408 : vector<8x64xf32>
    %c0_275 = arith.constant 0 : index
    %c14_276 = arith.constant 14 : index
    %c0_277 = arith.constant 0 : index
    %c0_278 = arith.constant 0 : index
    %410 = vector.load %arg3[%c0_275, %c14_276, %c0_277, %c0_278] : memref<1x27x8x64xf32, #tpu.memory_space<vmem>>, vector<1x1x8x64xf32>
    %411 = vector.shape_cast %410 : vector<1x1x8x64xf32> to vector<8x64xf32>
    %412 = arith.mulf %411, %301 : vector<8x64xf32>
    %413 = arith.addf %409, %412 : vector<8x64xf32>
    %c0_279 = arith.constant 0 : index
    %c15_280 = arith.constant 15 : index
    %c0_281 = arith.constant 0 : index
    %c0_282 = arith.constant 0 : index
    %414 = vector.load %arg3[%c0_279, %c15_280, %c0_281, %c0_282] : memref<1x27x8x64xf32, #tpu.memory_space<vmem>>, vector<1x1x8x64xf32>
    %415 = vector.shape_cast %414 : vector<1x1x8x64xf32> to vector<8x64xf32>
    %416 = arith.mulf %415, %304 : vector<8x64xf32>
    %417 = arith.addf %413, %416 : vector<8x64xf32>
    %c0_283 = arith.constant 0 : index
    %c16_284 = arith.constant 16 : index
    %c0_285 = arith.constant 0 : index
    %c0_286 = arith.constant 0 : index
    %418 = vector.load %arg3[%c0_283, %c16_284, %c0_285, %c0_286] : memref<1x27x8x64xf32, #tpu.memory_space<vmem>>, vector<1x1x8x64xf32>
    %419 = vector.shape_cast %418 : vector<1x1x8x64xf32> to vector<8x64xf32>
    %420 = arith.mulf %419, %307 : vector<8x64xf32>
    %421 = arith.addf %417, %420 : vector<8x64xf32>
    %c0_287 = arith.constant 0 : index
    %c17_288 = arith.constant 17 : index
    %c0_289 = arith.constant 0 : index
    %c0_290 = arith.constant 0 : index
    %422 = vector.load %arg3[%c0_287, %c17_288, %c0_289, %c0_290] : memref<1x27x8x64xf32, #tpu.memory_space<vmem>>, vector<1x1x8x64xf32>
    %423 = vector.shape_cast %422 : vector<1x1x8x64xf32> to vector<8x64xf32>
    %424 = arith.mulf %423, %310 : vector<8x64xf32>
    %425 = arith.addf %421, %424 : vector<8x64xf32>
    %c0_291 = arith.constant 0 : index
    %c0_292 = arith.constant 0 : index
    %c4_293 = arith.constant 4 : index
    %c0_294 = arith.constant 0 : index
    %c0_295 = arith.constant 0 : index
    %426 = vector.load %arg2[%c0_291, %c0_292, %c4_293, %c0_294, %c0_295] : memref<1x1x10x9x64xbf16, #tpu.memory_space<vmem>>, vector<1x1x1x9x64xbf16>
    %427 = vector.shape_cast %426 : vector<1x1x1x9x64xbf16> to vector<9x64xbf16>
    %428 = arith.extf %427 : vector<9x64xbf16> to vector<9x64xf32>
    %429 = vector.extract_strided_slice %428 {offsets = [0, 0], sizes = [1, 64], strides = [1, 1]} : vector<9x64xf32> to vector<1x64xf32>
    %430 = vector.shape_cast %429 : vector<1x64xf32> to vector<1x64xf32>
    %431 = vector.broadcast %430 : vector<1x64xf32> to vector<8x64xf32>
    %432 = vector.extract_strided_slice %428 {offsets = [1, 0], sizes = [1, 64], strides = [1, 1]} : vector<9x64xf32> to vector<1x64xf32>
    %433 = vector.shape_cast %432 : vector<1x64xf32> to vector<1x64xf32>
    %434 = vector.broadcast %433 : vector<1x64xf32> to vector<8x64xf32>
    %435 = vector.extract_strided_slice %428 {offsets = [2, 0], sizes = [1, 64], strides = [1, 1]} : vector<9x64xf32> to vector<1x64xf32>
    %436 = vector.shape_cast %435 : vector<1x64xf32> to vector<1x64xf32>
    %437 = vector.broadcast %436 : vector<1x64xf32> to vector<8x64xf32>
    %438 = vector.extract_strided_slice %428 {offsets = [3, 0], sizes = [1, 64], strides = [1, 1]} : vector<9x64xf32> to vector<1x64xf32>
    %439 = vector.shape_cast %438 : vector<1x64xf32> to vector<1x64xf32>
    %440 = vector.broadcast %439 : vector<1x64xf32> to vector<8x64xf32>
    %441 = vector.extract_strided_slice %428 {offsets = [4, 0], sizes = [1, 64], strides = [1, 1]} : vector<9x64xf32> to vector<1x64xf32>
    %442 = vector.shape_cast %441 : vector<1x64xf32> to vector<1x64xf32>
    %443 = vector.broadcast %442 : vector<1x64xf32> to vector<8x64xf32>
    %444 = vector.extract_strided_slice %428 {offsets = [5, 0], sizes = [1, 64], strides = [1, 1]} : vector<9x64xf32> to vector<1x64xf32>
    %445 = vector.shape_cast %444 : vector<1x64xf32> to vector<1x64xf32>
    %446 = vector.broadcast %445 : vector<1x64xf32> to vector<8x64xf32>
    %447 = vector.extract_strided_slice %428 {offsets = [6, 0], sizes = [1, 64], strides = [1, 1]} : vector<9x64xf32> to vector<1x64xf32>
    %448 = vector.shape_cast %447 : vector<1x64xf32> to vector<1x64xf32>
    %449 = vector.broadcast %448 : vector<1x64xf32> to vector<8x64xf32>
    %450 = vector.extract_strided_slice %428 {offsets = [7, 0], sizes = [1, 64], strides = [1, 1]} : vector<9x64xf32> to vector<1x64xf32>
    %451 = vector.shape_cast %450 : vector<1x64xf32> to vector<1x64xf32>
    %452 = vector.broadcast %451 : vector<1x64xf32> to vector<8x64xf32>
    %453 = vector.extract_strided_slice %428 {offsets = [8, 0], sizes = [1, 64], strides = [1, 1]} : vector<9x64xf32> to vector<1x64xf32>
    %454 = vector.shape_cast %453 : vector<1x64xf32> to vector<1x64xf32>
    %455 = vector.broadcast %454 : vector<1x64xf32> to vector<8x64xf32>
    %c0_296 = arith.constant 0 : index
    %c18_297 = arith.constant 18 : index
    %c0_298 = arith.constant 0 : index
    %c0_299 = arith.constant 0 : index
    %456 = vector.load %arg3[%c0_296, %c18_297, %c0_298, %c0_299] : memref<1x27x8x64xf32, #tpu.memory_space<vmem>>, vector<1x1x8x64xf32>
    %457 = vector.shape_cast %456 : vector<1x1x8x64xf32> to vector<8x64xf32>
    %458 = arith.mulf %457, %431 : vector<8x64xf32>
    %459 = arith.addf %425, %458 : vector<8x64xf32>
    %c0_300 = arith.constant 0 : index
    %c19_301 = arith.constant 19 : index
    %c0_302 = arith.constant 0 : index
    %c0_303 = arith.constant 0 : index
    %460 = vector.load %arg3[%c0_300, %c19_301, %c0_302, %c0_303] : memref<1x27x8x64xf32, #tpu.memory_space<vmem>>, vector<1x1x8x64xf32>
    %461 = vector.shape_cast %460 : vector<1x1x8x64xf32> to vector<8x64xf32>
    %462 = arith.mulf %461, %434 : vector<8x64xf32>
    %463 = arith.addf %459, %462 : vector<8x64xf32>
    %c0_304 = arith.constant 0 : index
    %c20_305 = arith.constant 20 : index
    %c0_306 = arith.constant 0 : index
    %c0_307 = arith.constant 0 : index
    %464 = vector.load %arg3[%c0_304, %c20_305, %c0_306, %c0_307] : memref<1x27x8x64xf32, #tpu.memory_space<vmem>>, vector<1x1x8x64xf32>
    %465 = vector.shape_cast %464 : vector<1x1x8x64xf32> to vector<8x64xf32>
    %466 = arith.mulf %465, %437 : vector<8x64xf32>
    %467 = arith.addf %463, %466 : vector<8x64xf32>
    %c0_308 = arith.constant 0 : index
    %c21_309 = arith.constant 21 : index
    %c0_310 = arith.constant 0 : index
    %c0_311 = arith.constant 0 : index
    %468 = vector.load %arg3[%c0_308, %c21_309, %c0_310, %c0_311] : memref<1x27x8x64xf32, #tpu.memory_space<vmem>>, vector<1x1x8x64xf32>
    %469 = vector.shape_cast %468 : vector<1x1x8x64xf32> to vector<8x64xf32>
    %470 = arith.mulf %469, %440 : vector<8x64xf32>
    %471 = arith.addf %467, %470 : vector<8x64xf32>
    %c0_312 = arith.constant 0 : index
    %c22_313 = arith.constant 22 : index
    %c0_314 = arith.constant 0 : index
    %c0_315 = arith.constant 0 : index
    %472 = vector.load %arg3[%c0_312, %c22_313, %c0_314, %c0_315] : memref<1x27x8x64xf32, #tpu.memory_space<vmem>>, vector<1x1x8x64xf32>
    %473 = vector.shape_cast %472 : vector<1x1x8x64xf32> to vector<8x64xf32>
    %474 = arith.mulf %473, %443 : vector<8x64xf32>
    %475 = arith.addf %471, %474 : vector<8x64xf32>
    %c0_316 = arith.constant 0 : index
    %c23_317 = arith.constant 23 : index
    %c0_318 = arith.constant 0 : index
    %c0_319 = arith.constant 0 : index
    %476 = vector.load %arg3[%c0_316, %c23_317, %c0_318, %c0_319] : memref<1x27x8x64xf32, #tpu.memory_space<vmem>>, vector<1x1x8x64xf32>
    %477 = vector.shape_cast %476 : vector<1x1x8x64xf32> to vector<8x64xf32>
    %478 = arith.mulf %477, %446 : vector<8x64xf32>
    %479 = arith.addf %475, %478 : vector<8x64xf32>
    %c0_320 = arith.constant 0 : index
    %c24_321 = arith.constant 24 : index
    %c0_322 = arith.constant 0 : index
    %c0_323 = arith.constant 0 : index
    %480 = vector.load %arg3[%c0_320, %c24_321, %c0_322, %c0_323] : memref<1x27x8x64xf32, #tpu.memory_space<vmem>>, vector<1x1x8x64xf32>
    %481 = vector.shape_cast %480 : vector<1x1x8x64xf32> to vector<8x64xf32>
    %482 = arith.mulf %481, %449 : vector<8x64xf32>
    %483 = arith.addf %479, %482 : vector<8x64xf32>
    %c0_324 = arith.constant 0 : index
    %c25_325 = arith.constant 25 : index
    %c0_326 = arith.constant 0 : index
    %c0_327 = arith.constant 0 : index
    %484 = vector.load %arg3[%c0_324, %c25_325, %c0_326, %c0_327] : memref<1x27x8x64xf32, #tpu.memory_space<vmem>>, vector<1x1x8x64xf32>
    %485 = vector.shape_cast %484 : vector<1x1x8x64xf32> to vector<8x64xf32>
    %486 = arith.mulf %485, %452 : vector<8x64xf32>
    %487 = arith.addf %483, %486 : vector<8x64xf32>
    %c0_328 = arith.constant 0 : index
    %c26_329 = arith.constant 26 : index
    %c0_330 = arith.constant 0 : index
    %c0_331 = arith.constant 0 : index
    %488 = vector.load %arg3[%c0_328, %c26_329, %c0_330, %c0_331] : memref<1x27x8x64xf32, #tpu.memory_space<vmem>>, vector<1x1x8x64xf32>
    %489 = vector.shape_cast %488 : vector<1x1x8x64xf32> to vector<8x64xf32>
    %490 = arith.mulf %489, %455 : vector<8x64xf32>
    %491 = arith.addf %487, %490 : vector<8x64xf32>
    %492 = arith.addf %491, %1 : vector<8x64xf32>
    %cst_332 = arith.constant 0.000000e+00 : f32
    %493 = vector.broadcast %cst_332 : f32 to vector<8x64xf32>
    %494 = arith.maximumf %492, %493 : vector<8x64xf32>
    %cst_333 = arith.constant dense<0.000000e+00> : vector<8xf32>
    %495 = vector.multi_reduction <add>, %494, %cst_333 [1] : vector<8x64xf32> to vector<8xf32>
    %496 = vector.shape_cast %495 : vector<8xf32> to vector<8x1xf32>
    %497 = arith.addf %352, %496 : vector<8x1xf32>
    %cst_334 = arith.constant 0.000000e+00 : f32
    %498 = vector.broadcast %cst_334 : f32 to vector<8x64xf32>
    %c0_335 = arith.constant 0 : index
    %c0_336 = arith.constant 0 : index
    %c0_337 = arith.constant 0 : index
    %c0_338 = arith.constant 0 : index
    %499 = vector.load %arg3[%c0_335, %c0_336, %c0_337, %c0_338] : memref<1x27x8x64xf32, #tpu.memory_space<vmem>>, vector<1x1x8x64xf32>
    %500 = vector.shape_cast %499 : vector<1x1x8x64xf32> to vector<8x64xf32>
    %501 = arith.mulf %500, %286 : vector<8x64xf32>
    %502 = arith.addf %498, %501 : vector<8x64xf32>
    %c0_339 = arith.constant 0 : index
    %c1_340 = arith.constant 1 : index
    %c0_341 = arith.constant 0 : index
    %c0_342 = arith.constant 0 : index
    %503 = vector.load %arg3[%c0_339, %c1_340, %c0_341, %c0_342] : memref<1x27x8x64xf32, #tpu.memory_space<vmem>>, vector<1x1x8x64xf32>
    %504 = vector.shape_cast %503 : vector<1x1x8x64xf32> to vector<8x64xf32>
    %505 = arith.mulf %504, %289 : vector<8x64xf32>
    %506 = arith.addf %502, %505 : vector<8x64xf32>
    %c0_343 = arith.constant 0 : index
    %c2_344 = arith.constant 2 : index
    %c0_345 = arith.constant 0 : index
    %c0_346 = arith.constant 0 : index
    %507 = vector.load %arg3[%c0_343, %c2_344, %c0_345, %c0_346] : memref<1x27x8x64xf32, #tpu.memory_space<vmem>>, vector<1x1x8x64xf32>
    %508 = vector.shape_cast %507 : vector<1x1x8x64xf32> to vector<8x64xf32>
    %509 = arith.mulf %508, %292 : vector<8x64xf32>
    %510 = arith.addf %506, %509 : vector<8x64xf32>
    %c0_347 = arith.constant 0 : index
    %c3_348 = arith.constant 3 : index
    %c0_349 = arith.constant 0 : index
    %c0_350 = arith.constant 0 : index
    %511 = vector.load %arg3[%c0_347, %c3_348, %c0_349, %c0_350] : memref<1x27x8x64xf32, #tpu.memory_space<vmem>>, vector<1x1x8x64xf32>
    %512 = vector.shape_cast %511 : vector<1x1x8x64xf32> to vector<8x64xf32>
    %513 = arith.mulf %512, %295 : vector<8x64xf32>
    %514 = arith.addf %510, %513 : vector<8x64xf32>
    %c0_351 = arith.constant 0 : index
    %c4_352 = arith.constant 4 : index
    %c0_353 = arith.constant 0 : index
    %c0_354 = arith.constant 0 : index
    %515 = vector.load %arg3[%c0_351, %c4_352, %c0_353, %c0_354] : memref<1x27x8x64xf32, #tpu.memory_space<vmem>>, vector<1x1x8x64xf32>
    %516 = vector.shape_cast %515 : vector<1x1x8x64xf32> to vector<8x64xf32>
    %517 = arith.mulf %516, %298 : vector<8x64xf32>
    %518 = arith.addf %514, %517 : vector<8x64xf32>
    %c0_355 = arith.constant 0 : index
    %c5_356 = arith.constant 5 : index
    %c0_357 = arith.constant 0 : index
    %c0_358 = arith.constant 0 : index
    %519 = vector.load %arg3[%c0_355, %c5_356, %c0_357, %c0_358] : memref<1x27x8x64xf32, #tpu.memory_space<vmem>>, vector<1x1x8x64xf32>
    %520 = vector.shape_cast %519 : vector<1x1x8x64xf32> to vector<8x64xf32>
    %521 = arith.mulf %520, %301 : vector<8x64xf32>
    %522 = arith.addf %518, %521 : vector<8x64xf32>
    %c0_359 = arith.constant 0 : index
    %c6_360 = arith.constant 6 : index
    %c0_361 = arith.constant 0 : index
    %c0_362 = arith.constant 0 : index
    %523 = vector.load %arg3[%c0_359, %c6_360, %c0_361, %c0_362] : memref<1x27x8x64xf32, #tpu.memory_space<vmem>>, vector<1x1x8x64xf32>
    %524 = vector.shape_cast %523 : vector<1x1x8x64xf32> to vector<8x64xf32>
    %525 = arith.mulf %524, %304 : vector<8x64xf32>
    %526 = arith.addf %522, %525 : vector<8x64xf32>
    %c0_363 = arith.constant 0 : index
    %c7_364 = arith.constant 7 : index
    %c0_365 = arith.constant 0 : index
    %c0_366 = arith.constant 0 : index
    %527 = vector.load %arg3[%c0_363, %c7_364, %c0_365, %c0_366] : memref<1x27x8x64xf32, #tpu.memory_space<vmem>>, vector<1x1x8x64xf32>
    %528 = vector.shape_cast %527 : vector<1x1x8x64xf32> to vector<8x64xf32>
    %529 = arith.mulf %528, %307 : vector<8x64xf32>
    %530 = arith.addf %526, %529 : vector<8x64xf32>
    %c0_367 = arith.constant 0 : index
    %c8_368 = arith.constant 8 : index
    %c0_369 = arith.constant 0 : index
    %c0_370 = arith.constant 0 : index
    %531 = vector.load %arg3[%c0_367, %c8_368, %c0_369, %c0_370] : memref<1x27x8x64xf32, #tpu.memory_space<vmem>>, vector<1x1x8x64xf32>
    %532 = vector.shape_cast %531 : vector<1x1x8x64xf32> to vector<8x64xf32>
    %533 = arith.mulf %532, %310 : vector<8x64xf32>
    %534 = arith.addf %530, %533 : vector<8x64xf32>
    %c0_371 = arith.constant 0 : index
    %c9_372 = arith.constant 9 : index
    %c0_373 = arith.constant 0 : index
    %c0_374 = arith.constant 0 : index
    %535 = vector.load %arg3[%c0_371, %c9_372, %c0_373, %c0_374] : memref<1x27x8x64xf32, #tpu.memory_space<vmem>>, vector<1x1x8x64xf32>
    %536 = vector.shape_cast %535 : vector<1x1x8x64xf32> to vector<8x64xf32>
    %537 = arith.mulf %536, %431 : vector<8x64xf32>
    %538 = arith.addf %534, %537 : vector<8x64xf32>
    %c0_375 = arith.constant 0 : index
    %c10_376 = arith.constant 10 : index
    %c0_377 = arith.constant 0 : index
    %c0_378 = arith.constant 0 : index
    %539 = vector.load %arg3[%c0_375, %c10_376, %c0_377, %c0_378] : memref<1x27x8x64xf32, #tpu.memory_space<vmem>>, vector<1x1x8x64xf32>
    %540 = vector.shape_cast %539 : vector<1x1x8x64xf32> to vector<8x64xf32>
    %541 = arith.mulf %540, %434 : vector<8x64xf32>
    %542 = arith.addf %538, %541 : vector<8x64xf32>
    %c0_379 = arith.constant 0 : index
    %c11_380 = arith.constant 11 : index
    %c0_381 = arith.constant 0 : index
    %c0_382 = arith.constant 0 : index
    %543 = vector.load %arg3[%c0_379, %c11_380, %c0_381, %c0_382] : memref<1x27x8x64xf32, #tpu.memory_space<vmem>>, vector<1x1x8x64xf32>
    %544 = vector.shape_cast %543 : vector<1x1x8x64xf32> to vector<8x64xf32>
    %545 = arith.mulf %544, %437 : vector<8x64xf32>
    %546 = arith.addf %542, %545 : vector<8x64xf32>
    %c0_383 = arith.constant 0 : index
    %c12_384 = arith.constant 12 : index
    %c0_385 = arith.constant 0 : index
    %c0_386 = arith.constant 0 : index
    %547 = vector.load %arg3[%c0_383, %c12_384, %c0_385, %c0_386] : memref<1x27x8x64xf32, #tpu.memory_space<vmem>>, vector<1x1x8x64xf32>
    %548 = vector.shape_cast %547 : vector<1x1x8x64xf32> to vector<8x64xf32>
    %549 = arith.mulf %548, %440 : vector<8x64xf32>
    %550 = arith.addf %546, %549 : vector<8x64xf32>
    %c0_387 = arith.constant 0 : index
    %c13_388 = arith.constant 13 : index
    %c0_389 = arith.constant 0 : index
    %c0_390 = arith.constant 0 : index
    %551 = vector.load %arg3[%c0_387, %c13_388, %c0_389, %c0_390] : memref<1x27x8x64xf32, #tpu.memory_space<vmem>>, vector<1x1x8x64xf32>
    %552 = vector.shape_cast %551 : vector<1x1x8x64xf32> to vector<8x64xf32>
    %553 = arith.mulf %552, %443 : vector<8x64xf32>
    %554 = arith.addf %550, %553 : vector<8x64xf32>
    %c0_391 = arith.constant 0 : index
    %c14_392 = arith.constant 14 : index
    %c0_393 = arith.constant 0 : index
    %c0_394 = arith.constant 0 : index
    %555 = vector.load %arg3[%c0_391, %c14_392, %c0_393, %c0_394] : memref<1x27x8x64xf32, #tpu.memory_space<vmem>>, vector<1x1x8x64xf32>
    %556 = vector.shape_cast %555 : vector<1x1x8x64xf32> to vector<8x64xf32>
    %557 = arith.mulf %556, %446 : vector<8x64xf32>
    %558 = arith.addf %554, %557 : vector<8x64xf32>
    %c0_395 = arith.constant 0 : index
    %c15_396 = arith.constant 15 : index
    %c0_397 = arith.constant 0 : index
    %c0_398 = arith.constant 0 : index
    %559 = vector.load %arg3[%c0_395, %c15_396, %c0_397, %c0_398] : memref<1x27x8x64xf32, #tpu.memory_space<vmem>>, vector<1x1x8x64xf32>
    %560 = vector.shape_cast %559 : vector<1x1x8x64xf32> to vector<8x64xf32>
    %561 = arith.mulf %560, %449 : vector<8x64xf32>
    %562 = arith.addf %558, %561 : vector<8x64xf32>
    %c0_399 = arith.constant 0 : index
    %c16_400 = arith.constant 16 : index
    %c0_401 = arith.constant 0 : index
    %c0_402 = arith.constant 0 : index
    %563 = vector.load %arg3[%c0_399, %c16_400, %c0_401, %c0_402] : memref<1x27x8x64xf32, #tpu.memory_space<vmem>>, vector<1x1x8x64xf32>
    %564 = vector.shape_cast %563 : vector<1x1x8x64xf32> to vector<8x64xf32>
    %565 = arith.mulf %564, %452 : vector<8x64xf32>
    %566 = arith.addf %562, %565 : vector<8x64xf32>
    %c0_403 = arith.constant 0 : index
    %c17_404 = arith.constant 17 : index
    %c0_405 = arith.constant 0 : index
    %c0_406 = arith.constant 0 : index
    %567 = vector.load %arg3[%c0_403, %c17_404, %c0_405, %c0_406] : memref<1x27x8x64xf32, #tpu.memory_space<vmem>>, vector<1x1x8x64xf32>
    %568 = vector.shape_cast %567 : vector<1x1x8x64xf32> to vector<8x64xf32>
    %569 = arith.mulf %568, %455 : vector<8x64xf32>
    %570 = arith.addf %566, %569 : vector<8x64xf32>
    %c0_407 = arith.constant 0 : index
    %c0_408 = arith.constant 0 : index
    %c5_409 = arith.constant 5 : index
    %c0_410 = arith.constant 0 : index
    %c0_411 = arith.constant 0 : index
    %571 = vector.load %arg2[%c0_407, %c0_408, %c5_409, %c0_410, %c0_411] : memref<1x1x10x9x64xbf16, #tpu.memory_space<vmem>>, vector<1x1x1x9x64xbf16>
    %572 = vector.shape_cast %571 : vector<1x1x1x9x64xbf16> to vector<9x64xbf16>
    %573 = arith.extf %572 : vector<9x64xbf16> to vector<9x64xf32>
    %574 = vector.extract_strided_slice %573 {offsets = [0, 0], sizes = [1, 64], strides = [1, 1]} : vector<9x64xf32> to vector<1x64xf32>
    %575 = vector.shape_cast %574 : vector<1x64xf32> to vector<1x64xf32>
    %576 = vector.broadcast %575 : vector<1x64xf32> to vector<8x64xf32>
    %577 = vector.extract_strided_slice %573 {offsets = [1, 0], sizes = [1, 64], strides = [1, 1]} : vector<9x64xf32> to vector<1x64xf32>
    %578 = vector.shape_cast %577 : vector<1x64xf32> to vector<1x64xf32>
    %579 = vector.broadcast %578 : vector<1x64xf32> to vector<8x64xf32>
    %580 = vector.extract_strided_slice %573 {offsets = [2, 0], sizes = [1, 64], strides = [1, 1]} : vector<9x64xf32> to vector<1x64xf32>
    %581 = vector.shape_cast %580 : vector<1x64xf32> to vector<1x64xf32>
    %582 = vector.broadcast %581 : vector<1x64xf32> to vector<8x64xf32>
    %583 = vector.extract_strided_slice %573 {offsets = [3, 0], sizes = [1, 64], strides = [1, 1]} : vector<9x64xf32> to vector<1x64xf32>
    %584 = vector.shape_cast %583 : vector<1x64xf32> to vector<1x64xf32>
    %585 = vector.broadcast %584 : vector<1x64xf32> to vector<8x64xf32>
    %586 = vector.extract_strided_slice %573 {offsets = [4, 0], sizes = [1, 64], strides = [1, 1]} : vector<9x64xf32> to vector<1x64xf32>
    %587 = vector.shape_cast %586 : vector<1x64xf32> to vector<1x64xf32>
    %588 = vector.broadcast %587 : vector<1x64xf32> to vector<8x64xf32>
    %589 = vector.extract_strided_slice %573 {offsets = [5, 0], sizes = [1, 64], strides = [1, 1]} : vector<9x64xf32> to vector<1x64xf32>
    %590 = vector.shape_cast %589 : vector<1x64xf32> to vector<1x64xf32>
    %591 = vector.broadcast %590 : vector<1x64xf32> to vector<8x64xf32>
    %592 = vector.extract_strided_slice %573 {offsets = [6, 0], sizes = [1, 64], strides = [1, 1]} : vector<9x64xf32> to vector<1x64xf32>
    %593 = vector.shape_cast %592 : vector<1x64xf32> to vector<1x64xf32>
    %594 = vector.broadcast %593 : vector<1x64xf32> to vector<8x64xf32>
    %595 = vector.extract_strided_slice %573 {offsets = [7, 0], sizes = [1, 64], strides = [1, 1]} : vector<9x64xf32> to vector<1x64xf32>
    %596 = vector.shape_cast %595 : vector<1x64xf32> to vector<1x64xf32>
    %597 = vector.broadcast %596 : vector<1x64xf32> to vector<8x64xf32>
    %598 = vector.extract_strided_slice %573 {offsets = [8, 0], sizes = [1, 64], strides = [1, 1]} : vector<9x64xf32> to vector<1x64xf32>
    %599 = vector.shape_cast %598 : vector<1x64xf32> to vector<1x64xf32>
    %600 = vector.broadcast %599 : vector<1x64xf32> to vector<8x64xf32>
    %c0_412 = arith.constant 0 : index
    %c18_413 = arith.constant 18 : index
    %c0_414 = arith.constant 0 : index
    %c0_415 = arith.constant 0 : index
    %601 = vector.load %arg3[%c0_412, %c18_413, %c0_414, %c0_415] : memref<1x27x8x64xf32, #tpu.memory_space<vmem>>, vector<1x1x8x64xf32>
    %602 = vector.shape_cast %601 : vector<1x1x8x64xf32> to vector<8x64xf32>
    %603 = arith.mulf %602, %576 : vector<8x64xf32>
    %604 = arith.addf %570, %603 : vector<8x64xf32>
    %c0_416 = arith.constant 0 : index
    %c19_417 = arith.constant 19 : index
    %c0_418 = arith.constant 0 : index
    %c0_419 = arith.constant 0 : index
    %605 = vector.load %arg3[%c0_416, %c19_417, %c0_418, %c0_419] : memref<1x27x8x64xf32, #tpu.memory_space<vmem>>, vector<1x1x8x64xf32>
    %606 = vector.shape_cast %605 : vector<1x1x8x64xf32> to vector<8x64xf32>
    %607 = arith.mulf %606, %579 : vector<8x64xf32>
    %608 = arith.addf %604, %607 : vector<8x64xf32>
    %c0_420 = arith.constant 0 : index
    %c20_421 = arith.constant 20 : index
    %c0_422 = arith.constant 0 : index
    %c0_423 = arith.constant 0 : index
    %609 = vector.load %arg3[%c0_420, %c20_421, %c0_422, %c0_423] : memref<1x27x8x64xf32, #tpu.memory_space<vmem>>, vector<1x1x8x64xf32>
    %610 = vector.shape_cast %609 : vector<1x1x8x64xf32> to vector<8x64xf32>
    %611 = arith.mulf %610, %582 : vector<8x64xf32>
    %612 = arith.addf %608, %611 : vector<8x64xf32>
    %c0_424 = arith.constant 0 : index
    %c21_425 = arith.constant 21 : index
    %c0_426 = arith.constant 0 : index
    %c0_427 = arith.constant 0 : index
    %613 = vector.load %arg3[%c0_424, %c21_425, %c0_426, %c0_427] : memref<1x27x8x64xf32, #tpu.memory_space<vmem>>, vector<1x1x8x64xf32>
    %614 = vector.shape_cast %613 : vector<1x1x8x64xf32> to vector<8x64xf32>
    %615 = arith.mulf %614, %585 : vector<8x64xf32>
    %616 = arith.addf %612, %615 : vector<8x64xf32>
    %c0_428 = arith.constant 0 : index
    %c22_429 = arith.constant 22 : index
    %c0_430 = arith.constant 0 : index
    %c0_431 = arith.constant 0 : index
    %617 = vector.load %arg3[%c0_428, %c22_429, %c0_430, %c0_431] : memref<1x27x8x64xf32, #tpu.memory_space<vmem>>, vector<1x1x8x64xf32>
    %618 = vector.shape_cast %617 : vector<1x1x8x64xf32> to vector<8x64xf32>
    %619 = arith.mulf %618, %588 : vector<8x64xf32>
    %620 = arith.addf %616, %619 : vector<8x64xf32>
    %c0_432 = arith.constant 0 : index
    %c23_433 = arith.constant 23 : index
    %c0_434 = arith.constant 0 : index
    %c0_435 = arith.constant 0 : index
    %621 = vector.load %arg3[%c0_432, %c23_433, %c0_434, %c0_435] : memref<1x27x8x64xf32, #tpu.memory_space<vmem>>, vector<1x1x8x64xf32>
    %622 = vector.shape_cast %621 : vector<1x1x8x64xf32> to vector<8x64xf32>
    %623 = arith.mulf %622, %591 : vector<8x64xf32>
    %624 = arith.addf %620, %623 : vector<8x64xf32>
    %c0_436 = arith.constant 0 : index
    %c24_437 = arith.constant 24 : index
    %c0_438 = arith.constant 0 : index
    %c0_439 = arith.constant 0 : index
    %625 = vector.load %arg3[%c0_436, %c24_437, %c0_438, %c0_439] : memref<1x27x8x64xf32, #tpu.memory_space<vmem>>, vector<1x1x8x64xf32>
    %626 = vector.shape_cast %625 : vector<1x1x8x64xf32> to vector<8x64xf32>
    %627 = arith.mulf %626, %594 : vector<8x64xf32>
    %628 = arith.addf %624, %627 : vector<8x64xf32>
    %c0_440 = arith.constant 0 : index
    %c25_441 = arith.constant 25 : index
    %c0_442 = arith.constant 0 : index
    %c0_443 = arith.constant 0 : index
    %629 = vector.load %arg3[%c0_440, %c25_441, %c0_442, %c0_443] : memref<1x27x8x64xf32, #tpu.memory_space<vmem>>, vector<1x1x8x64xf32>
    %630 = vector.shape_cast %629 : vector<1x1x8x64xf32> to vector<8x64xf32>
    %631 = arith.mulf %630, %597 : vector<8x64xf32>
    %632 = arith.addf %628, %631 : vector<8x64xf32>
    %c0_444 = arith.constant 0 : index
    %c26_445 = arith.constant 26 : index
    %c0_446 = arith.constant 0 : index
    %c0_447 = arith.constant 0 : index
    %633 = vector.load %arg3[%c0_444, %c26_445, %c0_446, %c0_447] : memref<1x27x8x64xf32, #tpu.memory_space<vmem>>, vector<1x1x8x64xf32>
    %634 = vector.shape_cast %633 : vector<1x1x8x64xf32> to vector<8x64xf32>
    %635 = arith.mulf %634, %600 : vector<8x64xf32>
    %636 = arith.addf %632, %635 : vector<8x64xf32>
    %637 = arith.addf %636, %1 : vector<8x64xf32>
    %cst_448 = arith.constant 0.000000e+00 : f32
    %638 = vector.broadcast %cst_448 : f32 to vector<8x64xf32>
    %639 = arith.maximumf %637, %638 : vector<8x64xf32>
    %cst_449 = arith.constant dense<0.000000e+00> : vector<8xf32>
    %640 = vector.multi_reduction <add>, %639, %cst_449 [1] : vector<8x64xf32> to vector<8xf32>
    %641 = vector.shape_cast %640 : vector<8xf32> to vector<8x1xf32>
    %642 = arith.addf %497, %641 : vector<8x1xf32>
    %cst_450 = arith.constant 0.000000e+00 : f32
    %643 = vector.broadcast %cst_450 : f32 to vector<8x64xf32>
    %c0_451 = arith.constant 0 : index
    %c0_452 = arith.constant 0 : index
    %c0_453 = arith.constant 0 : index
    %c0_454 = arith.constant 0 : index
    %644 = vector.load %arg3[%c0_451, %c0_452, %c0_453, %c0_454] : memref<1x27x8x64xf32, #tpu.memory_space<vmem>>, vector<1x1x8x64xf32>
    %645 = vector.shape_cast %644 : vector<1x1x8x64xf32> to vector<8x64xf32>
    %646 = arith.mulf %645, %431 : vector<8x64xf32>
    %647 = arith.addf %643, %646 : vector<8x64xf32>
    %c0_455 = arith.constant 0 : index
    %c1_456 = arith.constant 1 : index
    %c0_457 = arith.constant 0 : index
    %c0_458 = arith.constant 0 : index
    %648 = vector.load %arg3[%c0_455, %c1_456, %c0_457, %c0_458] : memref<1x27x8x64xf32, #tpu.memory_space<vmem>>, vector<1x1x8x64xf32>
    %649 = vector.shape_cast %648 : vector<1x1x8x64xf32> to vector<8x64xf32>
    %650 = arith.mulf %649, %434 : vector<8x64xf32>
    %651 = arith.addf %647, %650 : vector<8x64xf32>
    %c0_459 = arith.constant 0 : index
    %c2_460 = arith.constant 2 : index
    %c0_461 = arith.constant 0 : index
    %c0_462 = arith.constant 0 : index
    %652 = vector.load %arg3[%c0_459, %c2_460, %c0_461, %c0_462] : memref<1x27x8x64xf32, #tpu.memory_space<vmem>>, vector<1x1x8x64xf32>
    %653 = vector.shape_cast %652 : vector<1x1x8x64xf32> to vector<8x64xf32>
    %654 = arith.mulf %653, %437 : vector<8x64xf32>
    %655 = arith.addf %651, %654 : vector<8x64xf32>
    %c0_463 = arith.constant 0 : index
    %c3_464 = arith.constant 3 : index
    %c0_465 = arith.constant 0 : index
    %c0_466 = arith.constant 0 : index
    %656 = vector.load %arg3[%c0_463, %c3_464, %c0_465, %c0_466] : memref<1x27x8x64xf32, #tpu.memory_space<vmem>>, vector<1x1x8x64xf32>
    %657 = vector.shape_cast %656 : vector<1x1x8x64xf32> to vector<8x64xf32>
    %658 = arith.mulf %657, %440 : vector<8x64xf32>
    %659 = arith.addf %655, %658 : vector<8x64xf32>
    %c0_467 = arith.constant 0 : index
    %c4_468 = arith.constant 4 : index
    %c0_469 = arith.constant 0 : index
    %c0_470 = arith.constant 0 : index
    %660 = vector.load %arg3[%c0_467, %c4_468, %c0_469, %c0_470] : memref<1x27x8x64xf32, #tpu.memory_space<vmem>>, vector<1x1x8x64xf32>
    %661 = vector.shape_cast %660 : vector<1x1x8x64xf32> to vector<8x64xf32>
    %662 = arith.mulf %661, %443 : vector<8x64xf32>
    %663 = arith.addf %659, %662 : vector<8x64xf32>
    %c0_471 = arith.constant 0 : index
    %c5_472 = arith.constant 5 : index
    %c0_473 = arith.constant 0 : index
    %c0_474 = arith.constant 0 : index
    %664 = vector.load %arg3[%c0_471, %c5_472, %c0_473, %c0_474] : memref<1x27x8x64xf32, #tpu.memory_space<vmem>>, vector<1x1x8x64xf32>
    %665 = vector.shape_cast %664 : vector<1x1x8x64xf32> to vector<8x64xf32>
    %666 = arith.mulf %665, %446 : vector<8x64xf32>
    %667 = arith.addf %663, %666 : vector<8x64xf32>
    %c0_475 = arith.constant 0 : index
    %c6_476 = arith.constant 6 : index
    %c0_477 = arith.constant 0 : index
    %c0_478 = arith.constant 0 : index
    %668 = vector.load %arg3[%c0_475, %c6_476, %c0_477, %c0_478] : memref<1x27x8x64xf32, #tpu.memory_space<vmem>>, vector<1x1x8x64xf32>
    %669 = vector.shape_cast %668 : vector<1x1x8x64xf32> to vector<8x64xf32>
    %670 = arith.mulf %669, %449 : vector<8x64xf32>
    %671 = arith.addf %667, %670 : vector<8x64xf32>
    %c0_479 = arith.constant 0 : index
    %c7_480 = arith.constant 7 : index
    %c0_481 = arith.constant 0 : index
    %c0_482 = arith.constant 0 : index
    %672 = vector.load %arg3[%c0_479, %c7_480, %c0_481, %c0_482] : memref<1x27x8x64xf32, #tpu.memory_space<vmem>>, vector<1x1x8x64xf32>
    %673 = vector.shape_cast %672 : vector<1x1x8x64xf32> to vector<8x64xf32>
    %674 = arith.mulf %673, %452 : vector<8x64xf32>
    %675 = arith.addf %671, %674 : vector<8x64xf32>
    %c0_483 = arith.constant 0 : index
    %c8_484 = arith.constant 8 : index
    %c0_485 = arith.constant 0 : index
    %c0_486 = arith.constant 0 : index
    %676 = vector.load %arg3[%c0_483, %c8_484, %c0_485, %c0_486] : memref<1x27x8x64xf32, #tpu.memory_space<vmem>>, vector<1x1x8x64xf32>
    %677 = vector.shape_cast %676 : vector<1x1x8x64xf32> to vector<8x64xf32>
    %678 = arith.mulf %677, %455 : vector<8x64xf32>
    %679 = arith.addf %675, %678 : vector<8x64xf32>
    %c0_487 = arith.constant 0 : index
    %c9_488 = arith.constant 9 : index
    %c0_489 = arith.constant 0 : index
    %c0_490 = arith.constant 0 : index
    %680 = vector.load %arg3[%c0_487, %c9_488, %c0_489, %c0_490] : memref<1x27x8x64xf32, #tpu.memory_space<vmem>>, vector<1x1x8x64xf32>
    %681 = vector.shape_cast %680 : vector<1x1x8x64xf32> to vector<8x64xf32>
    %682 = arith.mulf %681, %576 : vector<8x64xf32>
    %683 = arith.addf %679, %682 : vector<8x64xf32>
    %c0_491 = arith.constant 0 : index
    %c10_492 = arith.constant 10 : index
    %c0_493 = arith.constant 0 : index
    %c0_494 = arith.constant 0 : index
    %684 = vector.load %arg3[%c0_491, %c10_492, %c0_493, %c0_494] : memref<1x27x8x64xf32, #tpu.memory_space<vmem>>, vector<1x1x8x64xf32>
    %685 = vector.shape_cast %684 : vector<1x1x8x64xf32> to vector<8x64xf32>
    %686 = arith.mulf %685, %579 : vector<8x64xf32>
    %687 = arith.addf %683, %686 : vector<8x64xf32>
    %c0_495 = arith.constant 0 : index
    %c11_496 = arith.constant 11 : index
    %c0_497 = arith.constant 0 : index
    %c0_498 = arith.constant 0 : index
    %688 = vector.load %arg3[%c0_495, %c11_496, %c0_497, %c0_498] : memref<1x27x8x64xf32, #tpu.memory_space<vmem>>, vector<1x1x8x64xf32>
    %689 = vector.shape_cast %688 : vector<1x1x8x64xf32> to vector<8x64xf32>
    %690 = arith.mulf %689, %582 : vector<8x64xf32>
    %691 = arith.addf %687, %690 : vector<8x64xf32>
    %c0_499 = arith.constant 0 : index
    %c12_500 = arith.constant 12 : index
    %c0_501 = arith.constant 0 : index
    %c0_502 = arith.constant 0 : index
    %692 = vector.load %arg3[%c0_499, %c12_500, %c0_501, %c0_502] : memref<1x27x8x64xf32, #tpu.memory_space<vmem>>, vector<1x1x8x64xf32>
    %693 = vector.shape_cast %692 : vector<1x1x8x64xf32> to vector<8x64xf32>
    %694 = arith.mulf %693, %585 : vector<8x64xf32>
    %695 = arith.addf %691, %694 : vector<8x64xf32>
    %c0_503 = arith.constant 0 : index
    %c13_504 = arith.constant 13 : index
    %c0_505 = arith.constant 0 : index
    %c0_506 = arith.constant 0 : index
    %696 = vector.load %arg3[%c0_503, %c13_504, %c0_505, %c0_506] : memref<1x27x8x64xf32, #tpu.memory_space<vmem>>, vector<1x1x8x64xf32>
    %697 = vector.shape_cast %696 : vector<1x1x8x64xf32> to vector<8x64xf32>
    %698 = arith.mulf %697, %588 : vector<8x64xf32>
    %699 = arith.addf %695, %698 : vector<8x64xf32>
    %c0_507 = arith.constant 0 : index
    %c14_508 = arith.constant 14 : index
    %c0_509 = arith.constant 0 : index
    %c0_510 = arith.constant 0 : index
    %700 = vector.load %arg3[%c0_507, %c14_508, %c0_509, %c0_510] : memref<1x27x8x64xf32, #tpu.memory_space<vmem>>, vector<1x1x8x64xf32>
    %701 = vector.shape_cast %700 : vector<1x1x8x64xf32> to vector<8x64xf32>
    %702 = arith.mulf %701, %591 : vector<8x64xf32>
    %703 = arith.addf %699, %702 : vector<8x64xf32>
    %c0_511 = arith.constant 0 : index
    %c15_512 = arith.constant 15 : index
    %c0_513 = arith.constant 0 : index
    %c0_514 = arith.constant 0 : index
    %704 = vector.load %arg3[%c0_511, %c15_512, %c0_513, %c0_514] : memref<1x27x8x64xf32, #tpu.memory_space<vmem>>, vector<1x1x8x64xf32>
    %705 = vector.shape_cast %704 : vector<1x1x8x64xf32> to vector<8x64xf32>
    %706 = arith.mulf %705, %594 : vector<8x64xf32>
    %707 = arith.addf %703, %706 : vector<8x64xf32>
    %c0_515 = arith.constant 0 : index
    %c16_516 = arith.constant 16 : index
    %c0_517 = arith.constant 0 : index
    %c0_518 = arith.constant 0 : index
    %708 = vector.load %arg3[%c0_515, %c16_516, %c0_517, %c0_518] : memref<1x27x8x64xf32, #tpu.memory_space<vmem>>, vector<1x1x8x64xf32>
    %709 = vector.shape_cast %708 : vector<1x1x8x64xf32> to vector<8x64xf32>
    %710 = arith.mulf %709, %597 : vector<8x64xf32>
    %711 = arith.addf %707, %710 : vector<8x64xf32>
    %c0_519 = arith.constant 0 : index
    %c17_520 = arith.constant 17 : index
    %c0_521 = arith.constant 0 : index
    %c0_522 = arith.constant 0 : index
    %712 = vector.load %arg3[%c0_519, %c17_520, %c0_521, %c0_522] : memref<1x27x8x64xf32, #tpu.memory_space<vmem>>, vector<1x1x8x64xf32>
    %713 = vector.shape_cast %712 : vector<1x1x8x64xf32> to vector<8x64xf32>
    %714 = arith.mulf %713, %600 : vector<8x64xf32>
    %715 = arith.addf %711, %714 : vector<8x64xf32>
    %c0_523 = arith.constant 0 : index
    %c0_524 = arith.constant 0 : index
    %c6_525 = arith.constant 6 : index
    %c0_526 = arith.constant 0 : index
    %c0_527 = arith.constant 0 : index
    %716 = vector.load %arg2[%c0_523, %c0_524, %c6_525, %c0_526, %c0_527] : memref<1x1x10x9x64xbf16, #tpu.memory_space<vmem>>, vector<1x1x1x9x64xbf16>
    %717 = vector.shape_cast %716 : vector<1x1x1x9x64xbf16> to vector<9x64xbf16>
    %718 = arith.extf %717 : vector<9x64xbf16> to vector<9x64xf32>
    %719 = vector.extract_strided_slice %718 {offsets = [0, 0], sizes = [1, 64], strides = [1, 1]} : vector<9x64xf32> to vector<1x64xf32>
    %720 = vector.shape_cast %719 : vector<1x64xf32> to vector<1x64xf32>
    %721 = vector.broadcast %720 : vector<1x64xf32> to vector<8x64xf32>
    %722 = vector.extract_strided_slice %718 {offsets = [1, 0], sizes = [1, 64], strides = [1, 1]} : vector<9x64xf32> to vector<1x64xf32>
    %723 = vector.shape_cast %722 : vector<1x64xf32> to vector<1x64xf32>
    %724 = vector.broadcast %723 : vector<1x64xf32> to vector<8x64xf32>
    %725 = vector.extract_strided_slice %718 {offsets = [2, 0], sizes = [1, 64], strides = [1, 1]} : vector<9x64xf32> to vector<1x64xf32>
    %726 = vector.shape_cast %725 : vector<1x64xf32> to vector<1x64xf32>
    %727 = vector.broadcast %726 : vector<1x64xf32> to vector<8x64xf32>
    %728 = vector.extract_strided_slice %718 {offsets = [3, 0], sizes = [1, 64], strides = [1, 1]} : vector<9x64xf32> to vector<1x64xf32>
    %729 = vector.shape_cast %728 : vector<1x64xf32> to vector<1x64xf32>
    %730 = vector.broadcast %729 : vector<1x64xf32> to vector<8x64xf32>
    %731 = vector.extract_strided_slice %718 {offsets = [4, 0], sizes = [1, 64], strides = [1, 1]} : vector<9x64xf32> to vector<1x64xf32>
    %732 = vector.shape_cast %731 : vector<1x64xf32> to vector<1x64xf32>
    %733 = vector.broadcast %732 : vector<1x64xf32> to vector<8x64xf32>
    %734 = vector.extract_strided_slice %718 {offsets = [5, 0], sizes = [1, 64], strides = [1, 1]} : vector<9x64xf32> to vector<1x64xf32>
    %735 = vector.shape_cast %734 : vector<1x64xf32> to vector<1x64xf32>
    %736 = vector.broadcast %735 : vector<1x64xf32> to vector<8x64xf32>
    %737 = vector.extract_strided_slice %718 {offsets = [6, 0], sizes = [1, 64], strides = [1, 1]} : vector<9x64xf32> to vector<1x64xf32>
    %738 = vector.shape_cast %737 : vector<1x64xf32> to vector<1x64xf32>
    %739 = vector.broadcast %738 : vector<1x64xf32> to vector<8x64xf32>
    %740 = vector.extract_strided_slice %718 {offsets = [7, 0], sizes = [1, 64], strides = [1, 1]} : vector<9x64xf32> to vector<1x64xf32>
    %741 = vector.shape_cast %740 : vector<1x64xf32> to vector<1x64xf32>
    %742 = vector.broadcast %741 : vector<1x64xf32> to vector<8x64xf32>
    %743 = vector.extract_strided_slice %718 {offsets = [8, 0], sizes = [1, 64], strides = [1, 1]} : vector<9x64xf32> to vector<1x64xf32>
    %744 = vector.shape_cast %743 : vector<1x64xf32> to vector<1x64xf32>
    %745 = vector.broadcast %744 : vector<1x64xf32> to vector<8x64xf32>
    %c0_528 = arith.constant 0 : index
    %c18_529 = arith.constant 18 : index
    %c0_530 = arith.constant 0 : index
    %c0_531 = arith.constant 0 : index
    %746 = vector.load %arg3[%c0_528, %c18_529, %c0_530, %c0_531] : memref<1x27x8x64xf32, #tpu.memory_space<vmem>>, vector<1x1x8x64xf32>
    %747 = vector.shape_cast %746 : vector<1x1x8x64xf32> to vector<8x64xf32>
    %748 = arith.mulf %747, %721 : vector<8x64xf32>
    %749 = arith.addf %715, %748 : vector<8x64xf32>
    %c0_532 = arith.constant 0 : index
    %c19_533 = arith.constant 19 : index
    %c0_534 = arith.constant 0 : index
    %c0_535 = arith.constant 0 : index
    %750 = vector.load %arg3[%c0_532, %c19_533, %c0_534, %c0_535] : memref<1x27x8x64xf32, #tpu.memory_space<vmem>>, vector<1x1x8x64xf32>
    %751 = vector.shape_cast %750 : vector<1x1x8x64xf32> to vector<8x64xf32>
    %752 = arith.mulf %751, %724 : vector<8x64xf32>
    %753 = arith.addf %749, %752 : vector<8x64xf32>
    %c0_536 = arith.constant 0 : index
    %c20_537 = arith.constant 20 : index
    %c0_538 = arith.constant 0 : index
    %c0_539 = arith.constant 0 : index
    %754 = vector.load %arg3[%c0_536, %c20_537, %c0_538, %c0_539] : memref<1x27x8x64xf32, #tpu.memory_space<vmem>>, vector<1x1x8x64xf32>
    %755 = vector.shape_cast %754 : vector<1x1x8x64xf32> to vector<8x64xf32>
    %756 = arith.mulf %755, %727 : vector<8x64xf32>
    %757 = arith.addf %753, %756 : vector<8x64xf32>
    %c0_540 = arith.constant 0 : index
    %c21_541 = arith.constant 21 : index
    %c0_542 = arith.constant 0 : index
    %c0_543 = arith.constant 0 : index
    %758 = vector.load %arg3[%c0_540, %c21_541, %c0_542, %c0_543] : memref<1x27x8x64xf32, #tpu.memory_space<vmem>>, vector<1x1x8x64xf32>
    %759 = vector.shape_cast %758 : vector<1x1x8x64xf32> to vector<8x64xf32>
    %760 = arith.mulf %759, %730 : vector<8x64xf32>
    %761 = arith.addf %757, %760 : vector<8x64xf32>
    %c0_544 = arith.constant 0 : index
    %c22_545 = arith.constant 22 : index
    %c0_546 = arith.constant 0 : index
    %c0_547 = arith.constant 0 : index
    %762 = vector.load %arg3[%c0_544, %c22_545, %c0_546, %c0_547] : memref<1x27x8x64xf32, #tpu.memory_space<vmem>>, vector<1x1x8x64xf32>
    %763 = vector.shape_cast %762 : vector<1x1x8x64xf32> to vector<8x64xf32>
    %764 = arith.mulf %763, %733 : vector<8x64xf32>
    %765 = arith.addf %761, %764 : vector<8x64xf32>
    %c0_548 = arith.constant 0 : index
    %c23_549 = arith.constant 23 : index
    %c0_550 = arith.constant 0 : index
    %c0_551 = arith.constant 0 : index
    %766 = vector.load %arg3[%c0_548, %c23_549, %c0_550, %c0_551] : memref<1x27x8x64xf32, #tpu.memory_space<vmem>>, vector<1x1x8x64xf32>
    %767 = vector.shape_cast %766 : vector<1x1x8x64xf32> to vector<8x64xf32>
    %768 = arith.mulf %767, %736 : vector<8x64xf32>
    %769 = arith.addf %765, %768 : vector<8x64xf32>
    %c0_552 = arith.constant 0 : index
    %c24_553 = arith.constant 24 : index
    %c0_554 = arith.constant 0 : index
    %c0_555 = arith.constant 0 : index
    %770 = vector.load %arg3[%c0_552, %c24_553, %c0_554, %c0_555] : memref<1x27x8x64xf32, #tpu.memory_space<vmem>>, vector<1x1x8x64xf32>
    %771 = vector.shape_cast %770 : vector<1x1x8x64xf32> to vector<8x64xf32>
    %772 = arith.mulf %771, %739 : vector<8x64xf32>
    %773 = arith.addf %769, %772 : vector<8x64xf32>
    %c0_556 = arith.constant 0 : index
    %c25_557 = arith.constant 25 : index
    %c0_558 = arith.constant 0 : index
    %c0_559 = arith.constant 0 : index
    %774 = vector.load %arg3[%c0_556, %c25_557, %c0_558, %c0_559] : memref<1x27x8x64xf32, #tpu.memory_space<vmem>>, vector<1x1x8x64xf32>
    %775 = vector.shape_cast %774 : vector<1x1x8x64xf32> to vector<8x64xf32>
    %776 = arith.mulf %775, %742 : vector<8x64xf32>
    %777 = arith.addf %773, %776 : vector<8x64xf32>
    %c0_560 = arith.constant 0 : index
    %c26_561 = arith.constant 26 : index
    %c0_562 = arith.constant 0 : index
    %c0_563 = arith.constant 0 : index
    %778 = vector.load %arg3[%c0_560, %c26_561, %c0_562, %c0_563] : memref<1x27x8x64xf32, #tpu.memory_space<vmem>>, vector<1x1x8x64xf32>
    %779 = vector.shape_cast %778 : vector<1x1x8x64xf32> to vector<8x64xf32>
    %780 = arith.mulf %779, %745 : vector<8x64xf32>
    %781 = arith.addf %777, %780 : vector<8x64xf32>
    %782 = arith.addf %781, %1 : vector<8x64xf32>
    %cst_564 = arith.constant 0.000000e+00 : f32
    %783 = vector.broadcast %cst_564 : f32 to vector<8x64xf32>
    %784 = arith.maximumf %782, %783 : vector<8x64xf32>
    %cst_565 = arith.constant dense<0.000000e+00> : vector<8xf32>
    %785 = vector.multi_reduction <add>, %784, %cst_565 [1] : vector<8x64xf32> to vector<8xf32>
    %786 = vector.shape_cast %785 : vector<8xf32> to vector<8x1xf32>
    %787 = arith.addf %642, %786 : vector<8x1xf32>
    %cst_566 = arith.constant 0.000000e+00 : f32
    %788 = vector.broadcast %cst_566 : f32 to vector<8x64xf32>
    %c0_567 = arith.constant 0 : index
    %c0_568 = arith.constant 0 : index
    %c0_569 = arith.constant 0 : index
    %c0_570 = arith.constant 0 : index
    %789 = vector.load %arg3[%c0_567, %c0_568, %c0_569, %c0_570] : memref<1x27x8x64xf32, #tpu.memory_space<vmem>>, vector<1x1x8x64xf32>
    %790 = vector.shape_cast %789 : vector<1x1x8x64xf32> to vector<8x64xf32>
    %791 = arith.mulf %790, %576 : vector<8x64xf32>
    %792 = arith.addf %788, %791 : vector<8x64xf32>
    %c0_571 = arith.constant 0 : index
    %c1_572 = arith.constant 1 : index
    %c0_573 = arith.constant 0 : index
    %c0_574 = arith.constant 0 : index
    %793 = vector.load %arg3[%c0_571, %c1_572, %c0_573, %c0_574] : memref<1x27x8x64xf32, #tpu.memory_space<vmem>>, vector<1x1x8x64xf32>
    %794 = vector.shape_cast %793 : vector<1x1x8x64xf32> to vector<8x64xf32>
    %795 = arith.mulf %794, %579 : vector<8x64xf32>
    %796 = arith.addf %792, %795 : vector<8x64xf32>
    %c0_575 = arith.constant 0 : index
    %c2_576 = arith.constant 2 : index
    %c0_577 = arith.constant 0 : index
    %c0_578 = arith.constant 0 : index
    %797 = vector.load %arg3[%c0_575, %c2_576, %c0_577, %c0_578] : memref<1x27x8x64xf32, #tpu.memory_space<vmem>>, vector<1x1x8x64xf32>
    %798 = vector.shape_cast %797 : vector<1x1x8x64xf32> to vector<8x64xf32>
    %799 = arith.mulf %798, %582 : vector<8x64xf32>
    %800 = arith.addf %796, %799 : vector<8x64xf32>
    %c0_579 = arith.constant 0 : index
    %c3_580 = arith.constant 3 : index
    %c0_581 = arith.constant 0 : index
    %c0_582 = arith.constant 0 : index
    %801 = vector.load %arg3[%c0_579, %c3_580, %c0_581, %c0_582] : memref<1x27x8x64xf32, #tpu.memory_space<vmem>>, vector<1x1x8x64xf32>
    %802 = vector.shape_cast %801 : vector<1x1x8x64xf32> to vector<8x64xf32>
    %803 = arith.mulf %802, %585 : vector<8x64xf32>
    %804 = arith.addf %800, %803 : vector<8x64xf32>
    %c0_583 = arith.constant 0 : index
    %c4_584 = arith.constant 4 : index
    %c0_585 = arith.constant 0 : index
    %c0_586 = arith.constant 0 : index
    %805 = vector.load %arg3[%c0_583, %c4_584, %c0_585, %c0_586] : memref<1x27x8x64xf32, #tpu.memory_space<vmem>>, vector<1x1x8x64xf32>
    %806 = vector.shape_cast %805 : vector<1x1x8x64xf32> to vector<8x64xf32>
    %807 = arith.mulf %806, %588 : vector<8x64xf32>
    %808 = arith.addf %804, %807 : vector<8x64xf32>
    %c0_587 = arith.constant 0 : index
    %c5_588 = arith.constant 5 : index
    %c0_589 = arith.constant 0 : index
    %c0_590 = arith.constant 0 : index
    %809 = vector.load %arg3[%c0_587, %c5_588, %c0_589, %c0_590] : memref<1x27x8x64xf32, #tpu.memory_space<vmem>>, vector<1x1x8x64xf32>
    %810 = vector.shape_cast %809 : vector<1x1x8x64xf32> to vector<8x64xf32>
    %811 = arith.mulf %810, %591 : vector<8x64xf32>
    %812 = arith.addf %808, %811 : vector<8x64xf32>
    %c0_591 = arith.constant 0 : index
    %c6_592 = arith.constant 6 : index
    %c0_593 = arith.constant 0 : index
    %c0_594 = arith.constant 0 : index
    %813 = vector.load %arg3[%c0_591, %c6_592, %c0_593, %c0_594] : memref<1x27x8x64xf32, #tpu.memory_space<vmem>>, vector<1x1x8x64xf32>
    %814 = vector.shape_cast %813 : vector<1x1x8x64xf32> to vector<8x64xf32>
    %815 = arith.mulf %814, %594 : vector<8x64xf32>
    %816 = arith.addf %812, %815 : vector<8x64xf32>
    %c0_595 = arith.constant 0 : index
    %c7_596 = arith.constant 7 : index
    %c0_597 = arith.constant 0 : index
    %c0_598 = arith.constant 0 : index
    %817 = vector.load %arg3[%c0_595, %c7_596, %c0_597, %c0_598] : memref<1x27x8x64xf32, #tpu.memory_space<vmem>>, vector<1x1x8x64xf32>
    %818 = vector.shape_cast %817 : vector<1x1x8x64xf32> to vector<8x64xf32>
    %819 = arith.mulf %818, %597 : vector<8x64xf32>
    %820 = arith.addf %816, %819 : vector<8x64xf32>
    %c0_599 = arith.constant 0 : index
    %c8_600 = arith.constant 8 : index
    %c0_601 = arith.constant 0 : index
    %c0_602 = arith.constant 0 : index
    %821 = vector.load %arg3[%c0_599, %c8_600, %c0_601, %c0_602] : memref<1x27x8x64xf32, #tpu.memory_space<vmem>>, vector<1x1x8x64xf32>
    %822 = vector.shape_cast %821 : vector<1x1x8x64xf32> to vector<8x64xf32>
    %823 = arith.mulf %822, %600 : vector<8x64xf32>
    %824 = arith.addf %820, %823 : vector<8x64xf32>
    %c0_603 = arith.constant 0 : index
    %c9_604 = arith.constant 9 : index
    %c0_605 = arith.constant 0 : index
    %c0_606 = arith.constant 0 : index
    %825 = vector.load %arg3[%c0_603, %c9_604, %c0_605, %c0_606] : memref<1x27x8x64xf32, #tpu.memory_space<vmem>>, vector<1x1x8x64xf32>
    %826 = vector.shape_cast %825 : vector<1x1x8x64xf32> to vector<8x64xf32>
    %827 = arith.mulf %826, %721 : vector<8x64xf32>
    %828 = arith.addf %824, %827 : vector<8x64xf32>
    %c0_607 = arith.constant 0 : index
    %c10_608 = arith.constant 10 : index
    %c0_609 = arith.constant 0 : index
    %c0_610 = arith.constant 0 : index
    %829 = vector.load %arg3[%c0_607, %c10_608, %c0_609, %c0_610] : memref<1x27x8x64xf32, #tpu.memory_space<vmem>>, vector<1x1x8x64xf32>
    %830 = vector.shape_cast %829 : vector<1x1x8x64xf32> to vector<8x64xf32>
    %831 = arith.mulf %830, %724 : vector<8x64xf32>
    %832 = arith.addf %828, %831 : vector<8x64xf32>
    %c0_611 = arith.constant 0 : index
    %c11_612 = arith.constant 11 : index
    %c0_613 = arith.constant 0 : index
    %c0_614 = arith.constant 0 : index
    %833 = vector.load %arg3[%c0_611, %c11_612, %c0_613, %c0_614] : memref<1x27x8x64xf32, #tpu.memory_space<vmem>>, vector<1x1x8x64xf32>
    %834 = vector.shape_cast %833 : vector<1x1x8x64xf32> to vector<8x64xf32>
    %835 = arith.mulf %834, %727 : vector<8x64xf32>
    %836 = arith.addf %832, %835 : vector<8x64xf32>
    %c0_615 = arith.constant 0 : index
    %c12_616 = arith.constant 12 : index
    %c0_617 = arith.constant 0 : index
    %c0_618 = arith.constant 0 : index
    %837 = vector.load %arg3[%c0_615, %c12_616, %c0_617, %c0_618] : memref<1x27x8x64xf32, #tpu.memory_space<vmem>>, vector<1x1x8x64xf32>
    %838 = vector.shape_cast %837 : vector<1x1x8x64xf32> to vector<8x64xf32>
    %839 = arith.mulf %838, %730 : vector<8x64xf32>
    %840 = arith.addf %836, %839 : vector<8x64xf32>
    %c0_619 = arith.constant 0 : index
    %c13_620 = arith.constant 13 : index
    %c0_621 = arith.constant 0 : index
    %c0_622 = arith.constant 0 : index
    %841 = vector.load %arg3[%c0_619, %c13_620, %c0_621, %c0_622] : memref<1x27x8x64xf32, #tpu.memory_space<vmem>>, vector<1x1x8x64xf32>
    %842 = vector.shape_cast %841 : vector<1x1x8x64xf32> to vector<8x64xf32>
    %843 = arith.mulf %842, %733 : vector<8x64xf32>
    %844 = arith.addf %840, %843 : vector<8x64xf32>
    %c0_623 = arith.constant 0 : index
    %c14_624 = arith.constant 14 : index
    %c0_625 = arith.constant 0 : index
    %c0_626 = arith.constant 0 : index
    %845 = vector.load %arg3[%c0_623, %c14_624, %c0_625, %c0_626] : memref<1x27x8x64xf32, #tpu.memory_space<vmem>>, vector<1x1x8x64xf32>
    %846 = vector.shape_cast %845 : vector<1x1x8x64xf32> to vector<8x64xf32>
    %847 = arith.mulf %846, %736 : vector<8x64xf32>
    %848 = arith.addf %844, %847 : vector<8x64xf32>
    %c0_627 = arith.constant 0 : index
    %c15_628 = arith.constant 15 : index
    %c0_629 = arith.constant 0 : index
    %c0_630 = arith.constant 0 : index
    %849 = vector.load %arg3[%c0_627, %c15_628, %c0_629, %c0_630] : memref<1x27x8x64xf32, #tpu.memory_space<vmem>>, vector<1x1x8x64xf32>
    %850 = vector.shape_cast %849 : vector<1x1x8x64xf32> to vector<8x64xf32>
    %851 = arith.mulf %850, %739 : vector<8x64xf32>
    %852 = arith.addf %848, %851 : vector<8x64xf32>
    %c0_631 = arith.constant 0 : index
    %c16_632 = arith.constant 16 : index
    %c0_633 = arith.constant 0 : index
    %c0_634 = arith.constant 0 : index
    %853 = vector.load %arg3[%c0_631, %c16_632, %c0_633, %c0_634] : memref<1x27x8x64xf32, #tpu.memory_space<vmem>>, vector<1x1x8x64xf32>
    %854 = vector.shape_cast %853 : vector<1x1x8x64xf32> to vector<8x64xf32>
    %855 = arith.mulf %854, %742 : vector<8x64xf32>
    %856 = arith.addf %852, %855 : vector<8x64xf32>
    %c0_635 = arith.constant 0 : index
    %c17_636 = arith.constant 17 : index
    %c0_637 = arith.constant 0 : index
    %c0_638 = arith.constant 0 : index
    %857 = vector.load %arg3[%c0_635, %c17_636, %c0_637, %c0_638] : memref<1x27x8x64xf32, #tpu.memory_space<vmem>>, vector<1x1x8x64xf32>
    %858 = vector.shape_cast %857 : vector<1x1x8x64xf32> to vector<8x64xf32>
    %859 = arith.mulf %858, %745 : vector<8x64xf32>
    %860 = arith.addf %856, %859 : vector<8x64xf32>
    %c0_639 = arith.constant 0 : index
    %c0_640 = arith.constant 0 : index
    %c7_641 = arith.constant 7 : index
    %c0_642 = arith.constant 0 : index
    %c0_643 = arith.constant 0 : index
    %861 = vector.load %arg2[%c0_639, %c0_640, %c7_641, %c0_642, %c0_643] : memref<1x1x10x9x64xbf16, #tpu.memory_space<vmem>>, vector<1x1x1x9x64xbf16>
    %862 = vector.shape_cast %861 : vector<1x1x1x9x64xbf16> to vector<9x64xbf16>
    %863 = arith.extf %862 : vector<9x64xbf16> to vector<9x64xf32>
    %864 = vector.extract_strided_slice %863 {offsets = [0, 0], sizes = [1, 64], strides = [1, 1]} : vector<9x64xf32> to vector<1x64xf32>
    %865 = vector.shape_cast %864 : vector<1x64xf32> to vector<1x64xf32>
    %866 = vector.broadcast %865 : vector<1x64xf32> to vector<8x64xf32>
    %867 = vector.extract_strided_slice %863 {offsets = [1, 0], sizes = [1, 64], strides = [1, 1]} : vector<9x64xf32> to vector<1x64xf32>
    %868 = vector.shape_cast %867 : vector<1x64xf32> to vector<1x64xf32>
    %869 = vector.broadcast %868 : vector<1x64xf32> to vector<8x64xf32>
    %870 = vector.extract_strided_slice %863 {offsets = [2, 0], sizes = [1, 64], strides = [1, 1]} : vector<9x64xf32> to vector<1x64xf32>
    %871 = vector.shape_cast %870 : vector<1x64xf32> to vector<1x64xf32>
    %872 = vector.broadcast %871 : vector<1x64xf32> to vector<8x64xf32>
    %873 = vector.extract_strided_slice %863 {offsets = [3, 0], sizes = [1, 64], strides = [1, 1]} : vector<9x64xf32> to vector<1x64xf32>
    %874 = vector.shape_cast %873 : vector<1x64xf32> to vector<1x64xf32>
    %875 = vector.broadcast %874 : vector<1x64xf32> to vector<8x64xf32>
    %876 = vector.extract_strided_slice %863 {offsets = [4, 0], sizes = [1, 64], strides = [1, 1]} : vector<9x64xf32> to vector<1x64xf32>
    %877 = vector.shape_cast %876 : vector<1x64xf32> to vector<1x64xf32>
    %878 = vector.broadcast %877 : vector<1x64xf32> to vector<8x64xf32>
    %879 = vector.extract_strided_slice %863 {offsets = [5, 0], sizes = [1, 64], strides = [1, 1]} : vector<9x64xf32> to vector<1x64xf32>
    %880 = vector.shape_cast %879 : vector<1x64xf32> to vector<1x64xf32>
    %881 = vector.broadcast %880 : vector<1x64xf32> to vector<8x64xf32>
    %882 = vector.extract_strided_slice %863 {offsets = [6, 0], sizes = [1, 64], strides = [1, 1]} : vector<9x64xf32> to vector<1x64xf32>
    %883 = vector.shape_cast %882 : vector<1x64xf32> to vector<1x64xf32>
    %884 = vector.broadcast %883 : vector<1x64xf32> to vector<8x64xf32>
    %885 = vector.extract_strided_slice %863 {offsets = [7, 0], sizes = [1, 64], strides = [1, 1]} : vector<9x64xf32> to vector<1x64xf32>
    %886 = vector.shape_cast %885 : vector<1x64xf32> to vector<1x64xf32>
    %887 = vector.broadcast %886 : vector<1x64xf32> to vector<8x64xf32>
    %888 = vector.extract_strided_slice %863 {offsets = [8, 0], sizes = [1, 64], strides = [1, 1]} : vector<9x64xf32> to vector<1x64xf32>
    %889 = vector.shape_cast %888 : vector<1x64xf32> to vector<1x64xf32>
    %890 = vector.broadcast %889 : vector<1x64xf32> to vector<8x64xf32>
    %c0_644 = arith.constant 0 : index
    %c18_645 = arith.constant 18 : index
    %c0_646 = arith.constant 0 : index
    %c0_647 = arith.constant 0 : index
    %891 = vector.load %arg3[%c0_644, %c18_645, %c0_646, %c0_647] : memref<1x27x8x64xf32, #tpu.memory_space<vmem>>, vector<1x1x8x64xf32>
    %892 = vector.shape_cast %891 : vector<1x1x8x64xf32> to vector<8x64xf32>
    %893 = arith.mulf %892, %866 : vector<8x64xf32>
    %894 = arith.addf %860, %893 : vector<8x64xf32>
    %c0_648 = arith.constant 0 : index
    %c19_649 = arith.constant 19 : index
    %c0_650 = arith.constant 0 : index
    %c0_651 = arith.constant 0 : index
    %895 = vector.load %arg3[%c0_648, %c19_649, %c0_650, %c0_651] : memref<1x27x8x64xf32, #tpu.memory_space<vmem>>, vector<1x1x8x64xf32>
    %896 = vector.shape_cast %895 : vector<1x1x8x64xf32> to vector<8x64xf32>
    %897 = arith.mulf %896, %869 : vector<8x64xf32>
    %898 = arith.addf %894, %897 : vector<8x64xf32>
    %c0_652 = arith.constant 0 : index
    %c20_653 = arith.constant 20 : index
    %c0_654 = arith.constant 0 : index
    %c0_655 = arith.constant 0 : index
    %899 = vector.load %arg3[%c0_652, %c20_653, %c0_654, %c0_655] : memref<1x27x8x64xf32, #tpu.memory_space<vmem>>, vector<1x1x8x64xf32>
    %900 = vector.shape_cast %899 : vector<1x1x8x64xf32> to vector<8x64xf32>
    %901 = arith.mulf %900, %872 : vector<8x64xf32>
    %902 = arith.addf %898, %901 : vector<8x64xf32>
    %c0_656 = arith.constant 0 : index
    %c21_657 = arith.constant 21 : index
    %c0_658 = arith.constant 0 : index
    %c0_659 = arith.constant 0 : index
    %903 = vector.load %arg3[%c0_656, %c21_657, %c0_658, %c0_659] : memref<1x27x8x64xf32, #tpu.memory_space<vmem>>, vector<1x1x8x64xf32>
    %904 = vector.shape_cast %903 : vector<1x1x8x64xf32> to vector<8x64xf32>
    %905 = arith.mulf %904, %875 : vector<8x64xf32>
    %906 = arith.addf %902, %905 : vector<8x64xf32>
    %c0_660 = arith.constant 0 : index
    %c22_661 = arith.constant 22 : index
    %c0_662 = arith.constant 0 : index
    %c0_663 = arith.constant 0 : index
    %907 = vector.load %arg3[%c0_660, %c22_661, %c0_662, %c0_663] : memref<1x27x8x64xf32, #tpu.memory_space<vmem>>, vector<1x1x8x64xf32>
    %908 = vector.shape_cast %907 : vector<1x1x8x64xf32> to vector<8x64xf32>
    %909 = arith.mulf %908, %878 : vector<8x64xf32>
    %910 = arith.addf %906, %909 : vector<8x64xf32>
    %c0_664 = arith.constant 0 : index
    %c23_665 = arith.constant 23 : index
    %c0_666 = arith.constant 0 : index
    %c0_667 = arith.constant 0 : index
    %911 = vector.load %arg3[%c0_664, %c23_665, %c0_666, %c0_667] : memref<1x27x8x64xf32, #tpu.memory_space<vmem>>, vector<1x1x8x64xf32>
    %912 = vector.shape_cast %911 : vector<1x1x8x64xf32> to vector<8x64xf32>
    %913 = arith.mulf %912, %881 : vector<8x64xf32>
    %914 = arith.addf %910, %913 : vector<8x64xf32>
    %c0_668 = arith.constant 0 : index
    %c24_669 = arith.constant 24 : index
    %c0_670 = arith.constant 0 : index
    %c0_671 = arith.constant 0 : index
    %915 = vector.load %arg3[%c0_668, %c24_669, %c0_670, %c0_671] : memref<1x27x8x64xf32, #tpu.memory_space<vmem>>, vector<1x1x8x64xf32>
    %916 = vector.shape_cast %915 : vector<1x1x8x64xf32> to vector<8x64xf32>
    %917 = arith.mulf %916, %884 : vector<8x64xf32>
    %918 = arith.addf %914, %917 : vector<8x64xf32>
    %c0_672 = arith.constant 0 : index
    %c25_673 = arith.constant 25 : index
    %c0_674 = arith.constant 0 : index
    %c0_675 = arith.constant 0 : index
    %919 = vector.load %arg3[%c0_672, %c25_673, %c0_674, %c0_675] : memref<1x27x8x64xf32, #tpu.memory_space<vmem>>, vector<1x1x8x64xf32>
    %920 = vector.shape_cast %919 : vector<1x1x8x64xf32> to vector<8x64xf32>
    %921 = arith.mulf %920, %887 : vector<8x64xf32>
    %922 = arith.addf %918, %921 : vector<8x64xf32>
    %c0_676 = arith.constant 0 : index
    %c26_677 = arith.constant 26 : index
    %c0_678 = arith.constant 0 : index
    %c0_679 = arith.constant 0 : index
    %923 = vector.load %arg3[%c0_676, %c26_677, %c0_678, %c0_679] : memref<1x27x8x64xf32, #tpu.memory_space<vmem>>, vector<1x1x8x64xf32>
    %924 = vector.shape_cast %923 : vector<1x1x8x64xf32> to vector<8x64xf32>
    %925 = arith.mulf %924, %890 : vector<8x64xf32>
    %926 = arith.addf %922, %925 : vector<8x64xf32>
    %927 = arith.addf %926, %1 : vector<8x64xf32>
    %cst_680 = arith.constant 0.000000e+00 : f32
    %928 = vector.broadcast %cst_680 : f32 to vector<8x64xf32>
    %929 = arith.maximumf %927, %928 : vector<8x64xf32>
    %cst_681 = arith.constant dense<0.000000e+00> : vector<8xf32>
    %930 = vector.multi_reduction <add>, %929, %cst_681 [1] : vector<8x64xf32> to vector<8xf32>
    %931 = vector.shape_cast %930 : vector<8xf32> to vector<8x1xf32>
    %932 = arith.addf %787, %931 : vector<8x1xf32>
    %cst_682 = arith.constant 0.000000e+00 : f32
    %933 = vector.broadcast %cst_682 : f32 to vector<8x64xf32>
    %c0_683 = arith.constant 0 : index
    %c0_684 = arith.constant 0 : index
    %c0_685 = arith.constant 0 : index
    %c0_686 = arith.constant 0 : index
    %934 = vector.load %arg3[%c0_683, %c0_684, %c0_685, %c0_686] : memref<1x27x8x64xf32, #tpu.memory_space<vmem>>, vector<1x1x8x64xf32>
    %935 = vector.shape_cast %934 : vector<1x1x8x64xf32> to vector<8x64xf32>
    %936 = arith.mulf %935, %721 : vector<8x64xf32>
    %937 = arith.addf %933, %936 : vector<8x64xf32>
    %c0_687 = arith.constant 0 : index
    %c1_688 = arith.constant 1 : index
    %c0_689 = arith.constant 0 : index
    %c0_690 = arith.constant 0 : index
    %938 = vector.load %arg3[%c0_687, %c1_688, %c0_689, %c0_690] : memref<1x27x8x64xf32, #tpu.memory_space<vmem>>, vector<1x1x8x64xf32>
    %939 = vector.shape_cast %938 : vector<1x1x8x64xf32> to vector<8x64xf32>
    %940 = arith.mulf %939, %724 : vector<8x64xf32>
    %941 = arith.addf %937, %940 : vector<8x64xf32>
    %c0_691 = arith.constant 0 : index
    %c2_692 = arith.constant 2 : index
    %c0_693 = arith.constant 0 : index
    %c0_694 = arith.constant 0 : index
    %942 = vector.load %arg3[%c0_691, %c2_692, %c0_693, %c0_694] : memref<1x27x8x64xf32, #tpu.memory_space<vmem>>, vector<1x1x8x64xf32>
    %943 = vector.shape_cast %942 : vector<1x1x8x64xf32> to vector<8x64xf32>
    %944 = arith.mulf %943, %727 : vector<8x64xf32>
    %945 = arith.addf %941, %944 : vector<8x64xf32>
    %c0_695 = arith.constant 0 : index
    %c3_696 = arith.constant 3 : index
    %c0_697 = arith.constant 0 : index
    %c0_698 = arith.constant 0 : index
    %946 = vector.load %arg3[%c0_695, %c3_696, %c0_697, %c0_698] : memref<1x27x8x64xf32, #tpu.memory_space<vmem>>, vector<1x1x8x64xf32>
    %947 = vector.shape_cast %946 : vector<1x1x8x64xf32> to vector<8x64xf32>
    %948 = arith.mulf %947, %730 : vector<8x64xf32>
    %949 = arith.addf %945, %948 : vector<8x64xf32>
    %c0_699 = arith.constant 0 : index
    %c4_700 = arith.constant 4 : index
    %c0_701 = arith.constant 0 : index
    %c0_702 = arith.constant 0 : index
    %950 = vector.load %arg3[%c0_699, %c4_700, %c0_701, %c0_702] : memref<1x27x8x64xf32, #tpu.memory_space<vmem>>, vector<1x1x8x64xf32>
    %951 = vector.shape_cast %950 : vector<1x1x8x64xf32> to vector<8x64xf32>
    %952 = arith.mulf %951, %733 : vector<8x64xf32>
    %953 = arith.addf %949, %952 : vector<8x64xf32>
    %c0_703 = arith.constant 0 : index
    %c5_704 = arith.constant 5 : index
    %c0_705 = arith.constant 0 : index
    %c0_706 = arith.constant 0 : index
    %954 = vector.load %arg3[%c0_703, %c5_704, %c0_705, %c0_706] : memref<1x27x8x64xf32, #tpu.memory_space<vmem>>, vector<1x1x8x64xf32>
    %955 = vector.shape_cast %954 : vector<1x1x8x64xf32> to vector<8x64xf32>
    %956 = arith.mulf %955, %736 : vector<8x64xf32>
    %957 = arith.addf %953, %956 : vector<8x64xf32>
    %c0_707 = arith.constant 0 : index
    %c6_708 = arith.constant 6 : index
    %c0_709 = arith.constant 0 : index
    %c0_710 = arith.constant 0 : index
    %958 = vector.load %arg3[%c0_707, %c6_708, %c0_709, %c0_710] : memref<1x27x8x64xf32, #tpu.memory_space<vmem>>, vector<1x1x8x64xf32>
    %959 = vector.shape_cast %958 : vector<1x1x8x64xf32> to vector<8x64xf32>
    %960 = arith.mulf %959, %739 : vector<8x64xf32>
    %961 = arith.addf %957, %960 : vector<8x64xf32>
    %c0_711 = arith.constant 0 : index
    %c7_712 = arith.constant 7 : index
    %c0_713 = arith.constant 0 : index
    %c0_714 = arith.constant 0 : index
    %962 = vector.load %arg3[%c0_711, %c7_712, %c0_713, %c0_714] : memref<1x27x8x64xf32, #tpu.memory_space<vmem>>, vector<1x1x8x64xf32>
    %963 = vector.shape_cast %962 : vector<1x1x8x64xf32> to vector<8x64xf32>
    %964 = arith.mulf %963, %742 : vector<8x64xf32>
    %965 = arith.addf %961, %964 : vector<8x64xf32>
    %c0_715 = arith.constant 0 : index
    %c8_716 = arith.constant 8 : index
    %c0_717 = arith.constant 0 : index
    %c0_718 = arith.constant 0 : index
    %966 = vector.load %arg3[%c0_715, %c8_716, %c0_717, %c0_718] : memref<1x27x8x64xf32, #tpu.memory_space<vmem>>, vector<1x1x8x64xf32>
    %967 = vector.shape_cast %966 : vector<1x1x8x64xf32> to vector<8x64xf32>
    %968 = arith.mulf %967, %745 : vector<8x64xf32>
    %969 = arith.addf %965, %968 : vector<8x64xf32>
    %c0_719 = arith.constant 0 : index
    %c9_720 = arith.constant 9 : index
    %c0_721 = arith.constant 0 : index
    %c0_722 = arith.constant 0 : index
    %970 = vector.load %arg3[%c0_719, %c9_720, %c0_721, %c0_722] : memref<1x27x8x64xf32, #tpu.memory_space<vmem>>, vector<1x1x8x64xf32>
    %971 = vector.shape_cast %970 : vector<1x1x8x64xf32> to vector<8x64xf32>
    %972 = arith.mulf %971, %866 : vector<8x64xf32>
    %973 = arith.addf %969, %972 : vector<8x64xf32>
    %c0_723 = arith.constant 0 : index
    %c10_724 = arith.constant 10 : index
    %c0_725 = arith.constant 0 : index
    %c0_726 = arith.constant 0 : index
    %974 = vector.load %arg3[%c0_723, %c10_724, %c0_725, %c0_726] : memref<1x27x8x64xf32, #tpu.memory_space<vmem>>, vector<1x1x8x64xf32>
    %975 = vector.shape_cast %974 : vector<1x1x8x64xf32> to vector<8x64xf32>
    %976 = arith.mulf %975, %869 : vector<8x64xf32>
    %977 = arith.addf %973, %976 : vector<8x64xf32>
    %c0_727 = arith.constant 0 : index
    %c11_728 = arith.constant 11 : index
    %c0_729 = arith.constant 0 : index
    %c0_730 = arith.constant 0 : index
    %978 = vector.load %arg3[%c0_727, %c11_728, %c0_729, %c0_730] : memref<1x27x8x64xf32, #tpu.memory_space<vmem>>, vector<1x1x8x64xf32>
    %979 = vector.shape_cast %978 : vector<1x1x8x64xf32> to vector<8x64xf32>
    %980 = arith.mulf %979, %872 : vector<8x64xf32>
    %981 = arith.addf %977, %980 : vector<8x64xf32>
    %c0_731 = arith.constant 0 : index
    %c12_732 = arith.constant 12 : index
    %c0_733 = arith.constant 0 : index
    %c0_734 = arith.constant 0 : index
    %982 = vector.load %arg3[%c0_731, %c12_732, %c0_733, %c0_734] : memref<1x27x8x64xf32, #tpu.memory_space<vmem>>, vector<1x1x8x64xf32>
    %983 = vector.shape_cast %982 : vector<1x1x8x64xf32> to vector<8x64xf32>
    %984 = arith.mulf %983, %875 : vector<8x64xf32>
    %985 = arith.addf %981, %984 : vector<8x64xf32>
    %c0_735 = arith.constant 0 : index
    %c13_736 = arith.constant 13 : index
    %c0_737 = arith.constant 0 : index
    %c0_738 = arith.constant 0 : index
    %986 = vector.load %arg3[%c0_735, %c13_736, %c0_737, %c0_738] : memref<1x27x8x64xf32, #tpu.memory_space<vmem>>, vector<1x1x8x64xf32>
    %987 = vector.shape_cast %986 : vector<1x1x8x64xf32> to vector<8x64xf32>
    %988 = arith.mulf %987, %878 : vector<8x64xf32>
    %989 = arith.addf %985, %988 : vector<8x64xf32>
    %c0_739 = arith.constant 0 : index
    %c14_740 = arith.constant 14 : index
    %c0_741 = arith.constant 0 : index
    %c0_742 = arith.constant 0 : index
    %990 = vector.load %arg3[%c0_739, %c14_740, %c0_741, %c0_742] : memref<1x27x8x64xf32, #tpu.memory_space<vmem>>, vector<1x1x8x64xf32>
    %991 = vector.shape_cast %990 : vector<1x1x8x64xf32> to vector<8x64xf32>
    %992 = arith.mulf %991, %881 : vector<8x64xf32>
    %993 = arith.addf %989, %992 : vector<8x64xf32>
    %c0_743 = arith.constant 0 : index
    %c15_744 = arith.constant 15 : index
    %c0_745 = arith.constant 0 : index
    %c0_746 = arith.constant 0 : index
    %994 = vector.load %arg3[%c0_743, %c15_744, %c0_745, %c0_746] : memref<1x27x8x64xf32, #tpu.memory_space<vmem>>, vector<1x1x8x64xf32>
    %995 = vector.shape_cast %994 : vector<1x1x8x64xf32> to vector<8x64xf32>
    %996 = arith.mulf %995, %884 : vector<8x64xf32>
    %997 = arith.addf %993, %996 : vector<8x64xf32>
    %c0_747 = arith.constant 0 : index
    %c16_748 = arith.constant 16 : index
    %c0_749 = arith.constant 0 : index
    %c0_750 = arith.constant 0 : index
    %998 = vector.load %arg3[%c0_747, %c16_748, %c0_749, %c0_750] : memref<1x27x8x64xf32, #tpu.memory_space<vmem>>, vector<1x1x8x64xf32>
    %999 = vector.shape_cast %998 : vector<1x1x8x64xf32> to vector<8x64xf32>
    %1000 = arith.mulf %999, %887 : vector<8x64xf32>
    %1001 = arith.addf %997, %1000 : vector<8x64xf32>
    %c0_751 = arith.constant 0 : index
    %c17_752 = arith.constant 17 : index
    %c0_753 = arith.constant 0 : index
    %c0_754 = arith.constant 0 : index
    %1002 = vector.load %arg3[%c0_751, %c17_752, %c0_753, %c0_754] : memref<1x27x8x64xf32, #tpu.memory_space<vmem>>, vector<1x1x8x64xf32>
    %1003 = vector.shape_cast %1002 : vector<1x1x8x64xf32> to vector<8x64xf32>
    %1004 = arith.mulf %1003, %890 : vector<8x64xf32>
    %1005 = arith.addf %1001, %1004 : vector<8x64xf32>
    %c0_755 = arith.constant 0 : index
    %c0_756 = arith.constant 0 : index
    %c8_757 = arith.constant 8 : index
    %c0_758 = arith.constant 0 : index
    %c0_759 = arith.constant 0 : index
    %1006 = vector.load %arg2[%c0_755, %c0_756, %c8_757, %c0_758, %c0_759] : memref<1x1x10x9x64xbf16, #tpu.memory_space<vmem>>, vector<1x1x1x9x64xbf16>
    %1007 = vector.shape_cast %1006 : vector<1x1x1x9x64xbf16> to vector<9x64xbf16>
    %1008 = arith.extf %1007 : vector<9x64xbf16> to vector<9x64xf32>
    %1009 = vector.extract_strided_slice %1008 {offsets = [0, 0], sizes = [1, 64], strides = [1, 1]} : vector<9x64xf32> to vector<1x64xf32>
    %1010 = vector.shape_cast %1009 : vector<1x64xf32> to vector<1x64xf32>
    %1011 = vector.broadcast %1010 : vector<1x64xf32> to vector<8x64xf32>
    %1012 = vector.extract_strided_slice %1008 {offsets = [1, 0], sizes = [1, 64], strides = [1, 1]} : vector<9x64xf32> to vector<1x64xf32>
    %1013 = vector.shape_cast %1012 : vector<1x64xf32> to vector<1x64xf32>
    %1014 = vector.broadcast %1013 : vector<1x64xf32> to vector<8x64xf32>
    %1015 = vector.extract_strided_slice %1008 {offsets = [2, 0], sizes = [1, 64], strides = [1, 1]} : vector<9x64xf32> to vector<1x64xf32>
    %1016 = vector.shape_cast %1015 : vector<1x64xf32> to vector<1x64xf32>
    %1017 = vector.broadcast %1016 : vector<1x64xf32> to vector<8x64xf32>
    %1018 = vector.extract_strided_slice %1008 {offsets = [3, 0], sizes = [1, 64], strides = [1, 1]} : vector<9x64xf32> to vector<1x64xf32>
    %1019 = vector.shape_cast %1018 : vector<1x64xf32> to vector<1x64xf32>
    %1020 = vector.broadcast %1019 : vector<1x64xf32> to vector<8x64xf32>
    %1021 = vector.extract_strided_slice %1008 {offsets = [4, 0], sizes = [1, 64], strides = [1, 1]} : vector<9x64xf32> to vector<1x64xf32>
    %1022 = vector.shape_cast %1021 : vector<1x64xf32> to vector<1x64xf32>
    %1023 = vector.broadcast %1022 : vector<1x64xf32> to vector<8x64xf32>
    %1024 = vector.extract_strided_slice %1008 {offsets = [5, 0], sizes = [1, 64], strides = [1, 1]} : vector<9x64xf32> to vector<1x64xf32>
    %1025 = vector.shape_cast %1024 : vector<1x64xf32> to vector<1x64xf32>
    %1026 = vector.broadcast %1025 : vector<1x64xf32> to vector<8x64xf32>
    %1027 = vector.extract_strided_slice %1008 {offsets = [6, 0], sizes = [1, 64], strides = [1, 1]} : vector<9x64xf32> to vector<1x64xf32>
    %1028 = vector.shape_cast %1027 : vector<1x64xf32> to vector<1x64xf32>
    %1029 = vector.broadcast %1028 : vector<1x64xf32> to vector<8x64xf32>
    %1030 = vector.extract_strided_slice %1008 {offsets = [7, 0], sizes = [1, 64], strides = [1, 1]} : vector<9x64xf32> to vector<1x64xf32>
    %1031 = vector.shape_cast %1030 : vector<1x64xf32> to vector<1x64xf32>
    %1032 = vector.broadcast %1031 : vector<1x64xf32> to vector<8x64xf32>
    %1033 = vector.extract_strided_slice %1008 {offsets = [8, 0], sizes = [1, 64], strides = [1, 1]} : vector<9x64xf32> to vector<1x64xf32>
    %1034 = vector.shape_cast %1033 : vector<1x64xf32> to vector<1x64xf32>
    %1035 = vector.broadcast %1034 : vector<1x64xf32> to vector<8x64xf32>
    %c0_760 = arith.constant 0 : index
    %c18_761 = arith.constant 18 : index
    %c0_762 = arith.constant 0 : index
    %c0_763 = arith.constant 0 : index
    %1036 = vector.load %arg3[%c0_760, %c18_761, %c0_762, %c0_763] : memref<1x27x8x64xf32, #tpu.memory_space<vmem>>, vector<1x1x8x64xf32>
    %1037 = vector.shape_cast %1036 : vector<1x1x8x64xf32> to vector<8x64xf32>
    %1038 = arith.mulf %1037, %1011 : vector<8x64xf32>
    %1039 = arith.addf %1005, %1038 : vector<8x64xf32>
    %c0_764 = arith.constant 0 : index
    %c19_765 = arith.constant 19 : index
    %c0_766 = arith.constant 0 : index
    %c0_767 = arith.constant 0 : index
    %1040 = vector.load %arg3[%c0_764, %c19_765, %c0_766, %c0_767] : memref<1x27x8x64xf32, #tpu.memory_space<vmem>>, vector<1x1x8x64xf32>
    %1041 = vector.shape_cast %1040 : vector<1x1x8x64xf32> to vector<8x64xf32>
    %1042 = arith.mulf %1041, %1014 : vector<8x64xf32>
    %1043 = arith.addf %1039, %1042 : vector<8x64xf32>
    %c0_768 = arith.constant 0 : index
    %c20_769 = arith.constant 20 : index
    %c0_770 = arith.constant 0 : index
    %c0_771 = arith.constant 0 : index
    %1044 = vector.load %arg3[%c0_768, %c20_769, %c0_770, %c0_771] : memref<1x27x8x64xf32, #tpu.memory_space<vmem>>, vector<1x1x8x64xf32>
    %1045 = vector.shape_cast %1044 : vector<1x1x8x64xf32> to vector<8x64xf32>
    %1046 = arith.mulf %1045, %1017 : vector<8x64xf32>
    %1047 = arith.addf %1043, %1046 : vector<8x64xf32>
    %c0_772 = arith.constant 0 : index
    %c21_773 = arith.constant 21 : index
    %c0_774 = arith.constant 0 : index
    %c0_775 = arith.constant 0 : index
    %1048 = vector.load %arg3[%c0_772, %c21_773, %c0_774, %c0_775] : memref<1x27x8x64xf32, #tpu.memory_space<vmem>>, vector<1x1x8x64xf32>
    %1049 = vector.shape_cast %1048 : vector<1x1x8x64xf32> to vector<8x64xf32>
    %1050 = arith.mulf %1049, %1020 : vector<8x64xf32>
    %1051 = arith.addf %1047, %1050 : vector<8x64xf32>
    %c0_776 = arith.constant 0 : index
    %c22_777 = arith.constant 22 : index
    %c0_778 = arith.constant 0 : index
    %c0_779 = arith.constant 0 : index
    %1052 = vector.load %arg3[%c0_776, %c22_777, %c0_778, %c0_779] : memref<1x27x8x64xf32, #tpu.memory_space<vmem>>, vector<1x1x8x64xf32>
    %1053 = vector.shape_cast %1052 : vector<1x1x8x64xf32> to vector<8x64xf32>
    %1054 = arith.mulf %1053, %1023 : vector<8x64xf32>
    %1055 = arith.addf %1051, %1054 : vector<8x64xf32>
    %c0_780 = arith.constant 0 : index
    %c23_781 = arith.constant 23 : index
    %c0_782 = arith.constant 0 : index
    %c0_783 = arith.constant 0 : index
    %1056 = vector.load %arg3[%c0_780, %c23_781, %c0_782, %c0_783] : memref<1x27x8x64xf32, #tpu.memory_space<vmem>>, vector<1x1x8x64xf32>
    %1057 = vector.shape_cast %1056 : vector<1x1x8x64xf32> to vector<8x64xf32>
    %1058 = arith.mulf %1057, %1026 : vector<8x64xf32>
    %1059 = arith.addf %1055, %1058 : vector<8x64xf32>
    %c0_784 = arith.constant 0 : index
    %c24_785 = arith.constant 24 : index
    %c0_786 = arith.constant 0 : index
    %c0_787 = arith.constant 0 : index
    %1060 = vector.load %arg3[%c0_784, %c24_785, %c0_786, %c0_787] : memref<1x27x8x64xf32, #tpu.memory_space<vmem>>, vector<1x1x8x64xf32>
    %1061 = vector.shape_cast %1060 : vector<1x1x8x64xf32> to vector<8x64xf32>
    %1062 = arith.mulf %1061, %1029 : vector<8x64xf32>
    %1063 = arith.addf %1059, %1062 : vector<8x64xf32>
    %c0_788 = arith.constant 0 : index
    %c25_789 = arith.constant 25 : index
    %c0_790 = arith.constant 0 : index
    %c0_791 = arith.constant 0 : index
    %1064 = vector.load %arg3[%c0_788, %c25_789, %c0_790, %c0_791] : memref<1x27x8x64xf32, #tpu.memory_space<vmem>>, vector<1x1x8x64xf32>
    %1065 = vector.shape_cast %1064 : vector<1x1x8x64xf32> to vector<8x64xf32>
    %1066 = arith.mulf %1065, %1032 : vector<8x64xf32>
    %1067 = arith.addf %1063, %1066 : vector<8x64xf32>
    %c0_792 = arith.constant 0 : index
    %c26_793 = arith.constant 26 : index
    %c0_794 = arith.constant 0 : index
    %c0_795 = arith.constant 0 : index
    %1068 = vector.load %arg3[%c0_792, %c26_793, %c0_794, %c0_795] : memref<1x27x8x64xf32, #tpu.memory_space<vmem>>, vector<1x1x8x64xf32>
    %1069 = vector.shape_cast %1068 : vector<1x1x8x64xf32> to vector<8x64xf32>
    %1070 = arith.mulf %1069, %1035 : vector<8x64xf32>
    %1071 = arith.addf %1067, %1070 : vector<8x64xf32>
    %1072 = arith.addf %1071, %1 : vector<8x64xf32>
    %cst_796 = arith.constant 0.000000e+00 : f32
    %1073 = vector.broadcast %cst_796 : f32 to vector<8x64xf32>
    %1074 = arith.maximumf %1072, %1073 : vector<8x64xf32>
    %cst_797 = arith.constant dense<0.000000e+00> : vector<8xf32>
    %1075 = vector.multi_reduction <add>, %1074, %cst_797 [1] : vector<8x64xf32> to vector<8xf32>
    %1076 = vector.shape_cast %1075 : vector<8xf32> to vector<8x1xf32>
    %1077 = arith.addf %932, %1076 : vector<8x1xf32>
    %cst_798 = arith.constant 0.000000e+00 : f32
    %1078 = vector.broadcast %cst_798 : f32 to vector<8x64xf32>
    %c0_799 = arith.constant 0 : index
    %c0_800 = arith.constant 0 : index
    %c0_801 = arith.constant 0 : index
    %c0_802 = arith.constant 0 : index
    %1079 = vector.load %arg3[%c0_799, %c0_800, %c0_801, %c0_802] : memref<1x27x8x64xf32, #tpu.memory_space<vmem>>, vector<1x1x8x64xf32>
    %1080 = vector.shape_cast %1079 : vector<1x1x8x64xf32> to vector<8x64xf32>
    %1081 = arith.mulf %1080, %866 : vector<8x64xf32>
    %1082 = arith.addf %1078, %1081 : vector<8x64xf32>
    %c0_803 = arith.constant 0 : index
    %c1_804 = arith.constant 1 : index
    %c0_805 = arith.constant 0 : index
    %c0_806 = arith.constant 0 : index
    %1083 = vector.load %arg3[%c0_803, %c1_804, %c0_805, %c0_806] : memref<1x27x8x64xf32, #tpu.memory_space<vmem>>, vector<1x1x8x64xf32>
    %1084 = vector.shape_cast %1083 : vector<1x1x8x64xf32> to vector<8x64xf32>
    %1085 = arith.mulf %1084, %869 : vector<8x64xf32>
    %1086 = arith.addf %1082, %1085 : vector<8x64xf32>
    %c0_807 = arith.constant 0 : index
    %c2_808 = arith.constant 2 : index
    %c0_809 = arith.constant 0 : index
    %c0_810 = arith.constant 0 : index
    %1087 = vector.load %arg3[%c0_807, %c2_808, %c0_809, %c0_810] : memref<1x27x8x64xf32, #tpu.memory_space<vmem>>, vector<1x1x8x64xf32>
    %1088 = vector.shape_cast %1087 : vector<1x1x8x64xf32> to vector<8x64xf32>
    %1089 = arith.mulf %1088, %872 : vector<8x64xf32>
    %1090 = arith.addf %1086, %1089 : vector<8x64xf32>
    %c0_811 = arith.constant 0 : index
    %c3_812 = arith.constant 3 : index
    %c0_813 = arith.constant 0 : index
    %c0_814 = arith.constant 0 : index
    %1091 = vector.load %arg3[%c0_811, %c3_812, %c0_813, %c0_814] : memref<1x27x8x64xf32, #tpu.memory_space<vmem>>, vector<1x1x8x64xf32>
    %1092 = vector.shape_cast %1091 : vector<1x1x8x64xf32> to vector<8x64xf32>
    %1093 = arith.mulf %1092, %875 : vector<8x64xf32>
    %1094 = arith.addf %1090, %1093 : vector<8x64xf32>
    %c0_815 = arith.constant 0 : index
    %c4_816 = arith.constant 4 : index
    %c0_817 = arith.constant 0 : index
    %c0_818 = arith.constant 0 : index
    %1095 = vector.load %arg3[%c0_815, %c4_816, %c0_817, %c0_818] : memref<1x27x8x64xf32, #tpu.memory_space<vmem>>, vector<1x1x8x64xf32>
    %1096 = vector.shape_cast %1095 : vector<1x1x8x64xf32> to vector<8x64xf32>
    %1097 = arith.mulf %1096, %878 : vector<8x64xf32>
    %1098 = arith.addf %1094, %1097 : vector<8x64xf32>
    %c0_819 = arith.constant 0 : index
    %c5_820 = arith.constant 5 : index
    %c0_821 = arith.constant 0 : index
    %c0_822 = arith.constant 0 : index
    %1099 = vector.load %arg3[%c0_819, %c5_820, %c0_821, %c0_822] : memref<1x27x8x64xf32, #tpu.memory_space<vmem>>, vector<1x1x8x64xf32>
    %1100 = vector.shape_cast %1099 : vector<1x1x8x64xf32> to vector<8x64xf32>
    %1101 = arith.mulf %1100, %881 : vector<8x64xf32>
    %1102 = arith.addf %1098, %1101 : vector<8x64xf32>
    %c0_823 = arith.constant 0 : index
    %c6_824 = arith.constant 6 : index
    %c0_825 = arith.constant 0 : index
    %c0_826 = arith.constant 0 : index
    %1103 = vector.load %arg3[%c0_823, %c6_824, %c0_825, %c0_826] : memref<1x27x8x64xf32, #tpu.memory_space<vmem>>, vector<1x1x8x64xf32>
    %1104 = vector.shape_cast %1103 : vector<1x1x8x64xf32> to vector<8x64xf32>
    %1105 = arith.mulf %1104, %884 : vector<8x64xf32>
    %1106 = arith.addf %1102, %1105 : vector<8x64xf32>
    %c0_827 = arith.constant 0 : index
    %c7_828 = arith.constant 7 : index
    %c0_829 = arith.constant 0 : index
    %c0_830 = arith.constant 0 : index
    %1107 = vector.load %arg3[%c0_827, %c7_828, %c0_829, %c0_830] : memref<1x27x8x64xf32, #tpu.memory_space<vmem>>, vector<1x1x8x64xf32>
    %1108 = vector.shape_cast %1107 : vector<1x1x8x64xf32> to vector<8x64xf32>
    %1109 = arith.mulf %1108, %887 : vector<8x64xf32>
    %1110 = arith.addf %1106, %1109 : vector<8x64xf32>
    %c0_831 = arith.constant 0 : index
    %c8_832 = arith.constant 8 : index
    %c0_833 = arith.constant 0 : index
    %c0_834 = arith.constant 0 : index
    %1111 = vector.load %arg3[%c0_831, %c8_832, %c0_833, %c0_834] : memref<1x27x8x64xf32, #tpu.memory_space<vmem>>, vector<1x1x8x64xf32>
    %1112 = vector.shape_cast %1111 : vector<1x1x8x64xf32> to vector<8x64xf32>
    %1113 = arith.mulf %1112, %890 : vector<8x64xf32>
    %1114 = arith.addf %1110, %1113 : vector<8x64xf32>
    %c0_835 = arith.constant 0 : index
    %c9_836 = arith.constant 9 : index
    %c0_837 = arith.constant 0 : index
    %c0_838 = arith.constant 0 : index
    %1115 = vector.load %arg3[%c0_835, %c9_836, %c0_837, %c0_838] : memref<1x27x8x64xf32, #tpu.memory_space<vmem>>, vector<1x1x8x64xf32>
    %1116 = vector.shape_cast %1115 : vector<1x1x8x64xf32> to vector<8x64xf32>
    %1117 = arith.mulf %1116, %1011 : vector<8x64xf32>
    %1118 = arith.addf %1114, %1117 : vector<8x64xf32>
    %c0_839 = arith.constant 0 : index
    %c10_840 = arith.constant 10 : index
    %c0_841 = arith.constant 0 : index
    %c0_842 = arith.constant 0 : index
    %1119 = vector.load %arg3[%c0_839, %c10_840, %c0_841, %c0_842] : memref<1x27x8x64xf32, #tpu.memory_space<vmem>>, vector<1x1x8x64xf32>
    %1120 = vector.shape_cast %1119 : vector<1x1x8x64xf32> to vector<8x64xf32>
    %1121 = arith.mulf %1120, %1014 : vector<8x64xf32>
    %1122 = arith.addf %1118, %1121 : vector<8x64xf32>
    %c0_843 = arith.constant 0 : index
    %c11_844 = arith.constant 11 : index
    %c0_845 = arith.constant 0 : index
    %c0_846 = arith.constant 0 : index
    %1123 = vector.load %arg3[%c0_843, %c11_844, %c0_845, %c0_846] : memref<1x27x8x64xf32, #tpu.memory_space<vmem>>, vector<1x1x8x64xf32>
    %1124 = vector.shape_cast %1123 : vector<1x1x8x64xf32> to vector<8x64xf32>
    %1125 = arith.mulf %1124, %1017 : vector<8x64xf32>
    %1126 = arith.addf %1122, %1125 : vector<8x64xf32>
    %c0_847 = arith.constant 0 : index
    %c12_848 = arith.constant 12 : index
    %c0_849 = arith.constant 0 : index
    %c0_850 = arith.constant 0 : index
    %1127 = vector.load %arg3[%c0_847, %c12_848, %c0_849, %c0_850] : memref<1x27x8x64xf32, #tpu.memory_space<vmem>>, vector<1x1x8x64xf32>
    %1128 = vector.shape_cast %1127 : vector<1x1x8x64xf32> to vector<8x64xf32>
    %1129 = arith.mulf %1128, %1020 : vector<8x64xf32>
    %1130 = arith.addf %1126, %1129 : vector<8x64xf32>
    %c0_851 = arith.constant 0 : index
    %c13_852 = arith.constant 13 : index
    %c0_853 = arith.constant 0 : index
    %c0_854 = arith.constant 0 : index
    %1131 = vector.load %arg3[%c0_851, %c13_852, %c0_853, %c0_854] : memref<1x27x8x64xf32, #tpu.memory_space<vmem>>, vector<1x1x8x64xf32>
    %1132 = vector.shape_cast %1131 : vector<1x1x8x64xf32> to vector<8x64xf32>
    %1133 = arith.mulf %1132, %1023 : vector<8x64xf32>
    %1134 = arith.addf %1130, %1133 : vector<8x64xf32>
    %c0_855 = arith.constant 0 : index
    %c14_856 = arith.constant 14 : index
    %c0_857 = arith.constant 0 : index
    %c0_858 = arith.constant 0 : index
    %1135 = vector.load %arg3[%c0_855, %c14_856, %c0_857, %c0_858] : memref<1x27x8x64xf32, #tpu.memory_space<vmem>>, vector<1x1x8x64xf32>
    %1136 = vector.shape_cast %1135 : vector<1x1x8x64xf32> to vector<8x64xf32>
    %1137 = arith.mulf %1136, %1026 : vector<8x64xf32>
    %1138 = arith.addf %1134, %1137 : vector<8x64xf32>
    %c0_859 = arith.constant 0 : index
    %c15_860 = arith.constant 15 : index
    %c0_861 = arith.constant 0 : index
    %c0_862 = arith.constant 0 : index
    %1139 = vector.load %arg3[%c0_859, %c15_860, %c0_861, %c0_862] : memref<1x27x8x64xf32, #tpu.memory_space<vmem>>, vector<1x1x8x64xf32>
    %1140 = vector.shape_cast %1139 : vector<1x1x8x64xf32> to vector<8x64xf32>
    %1141 = arith.mulf %1140, %1029 : vector<8x64xf32>
    %1142 = arith.addf %1138, %1141 : vector<8x64xf32>
    %c0_863 = arith.constant 0 : index
    %c16_864 = arith.constant 16 : index
    %c0_865 = arith.constant 0 : index
    %c0_866 = arith.constant 0 : index
    %1143 = vector.load %arg3[%c0_863, %c16_864, %c0_865, %c0_866] : memref<1x27x8x64xf32, #tpu.memory_space<vmem>>, vector<1x1x8x64xf32>
    %1144 = vector.shape_cast %1143 : vector<1x1x8x64xf32> to vector<8x64xf32>
    %1145 = arith.mulf %1144, %1032 : vector<8x64xf32>
    %1146 = arith.addf %1142, %1145 : vector<8x64xf32>
    %c0_867 = arith.constant 0 : index
    %c17_868 = arith.constant 17 : index
    %c0_869 = arith.constant 0 : index
    %c0_870 = arith.constant 0 : index
    %1147 = vector.load %arg3[%c0_867, %c17_868, %c0_869, %c0_870] : memref<1x27x8x64xf32, #tpu.memory_space<vmem>>, vector<1x1x8x64xf32>
    %1148 = vector.shape_cast %1147 : vector<1x1x8x64xf32> to vector<8x64xf32>
    %1149 = arith.mulf %1148, %1035 : vector<8x64xf32>
    %1150 = arith.addf %1146, %1149 : vector<8x64xf32>
    %c0_871 = arith.constant 0 : index
    %c0_872 = arith.constant 0 : index
    %c9_873 = arith.constant 9 : index
    %c0_874 = arith.constant 0 : index
    %c0_875 = arith.constant 0 : index
    %1151 = vector.load %arg2[%c0_871, %c0_872, %c9_873, %c0_874, %c0_875] : memref<1x1x10x9x64xbf16, #tpu.memory_space<vmem>>, vector<1x1x1x9x64xbf16>
    %1152 = vector.shape_cast %1151 : vector<1x1x1x9x64xbf16> to vector<9x64xbf16>
    %1153 = arith.extf %1152 : vector<9x64xbf16> to vector<9x64xf32>
    %1154 = vector.extract_strided_slice %1153 {offsets = [0, 0], sizes = [1, 64], strides = [1, 1]} : vector<9x64xf32> to vector<1x64xf32>
    %1155 = vector.shape_cast %1154 : vector<1x64xf32> to vector<1x64xf32>
    %1156 = vector.broadcast %1155 : vector<1x64xf32> to vector<8x64xf32>
    %1157 = vector.extract_strided_slice %1153 {offsets = [1, 0], sizes = [1, 64], strides = [1, 1]} : vector<9x64xf32> to vector<1x64xf32>
    %1158 = vector.shape_cast %1157 : vector<1x64xf32> to vector<1x64xf32>
    %1159 = vector.broadcast %1158 : vector<1x64xf32> to vector<8x64xf32>
    %1160 = vector.extract_strided_slice %1153 {offsets = [2, 0], sizes = [1, 64], strides = [1, 1]} : vector<9x64xf32> to vector<1x64xf32>
    %1161 = vector.shape_cast %1160 : vector<1x64xf32> to vector<1x64xf32>
    %1162 = vector.broadcast %1161 : vector<1x64xf32> to vector<8x64xf32>
    %1163 = vector.extract_strided_slice %1153 {offsets = [3, 0], sizes = [1, 64], strides = [1, 1]} : vector<9x64xf32> to vector<1x64xf32>
    %1164 = vector.shape_cast %1163 : vector<1x64xf32> to vector<1x64xf32>
    %1165 = vector.broadcast %1164 : vector<1x64xf32> to vector<8x64xf32>
    %1166 = vector.extract_strided_slice %1153 {offsets = [4, 0], sizes = [1, 64], strides = [1, 1]} : vector<9x64xf32> to vector<1x64xf32>
    %1167 = vector.shape_cast %1166 : vector<1x64xf32> to vector<1x64xf32>
    %1168 = vector.broadcast %1167 : vector<1x64xf32> to vector<8x64xf32>
    %1169 = vector.extract_strided_slice %1153 {offsets = [5, 0], sizes = [1, 64], strides = [1, 1]} : vector<9x64xf32> to vector<1x64xf32>
    %1170 = vector.shape_cast %1169 : vector<1x64xf32> to vector<1x64xf32>
    %1171 = vector.broadcast %1170 : vector<1x64xf32> to vector<8x64xf32>
    %1172 = vector.extract_strided_slice %1153 {offsets = [6, 0], sizes = [1, 64], strides = [1, 1]} : vector<9x64xf32> to vector<1x64xf32>
    %1173 = vector.shape_cast %1172 : vector<1x64xf32> to vector<1x64xf32>
    %1174 = vector.broadcast %1173 : vector<1x64xf32> to vector<8x64xf32>
    %1175 = vector.extract_strided_slice %1153 {offsets = [7, 0], sizes = [1, 64], strides = [1, 1]} : vector<9x64xf32> to vector<1x64xf32>
    %1176 = vector.shape_cast %1175 : vector<1x64xf32> to vector<1x64xf32>
    %1177 = vector.broadcast %1176 : vector<1x64xf32> to vector<8x64xf32>
    %1178 = vector.extract_strided_slice %1153 {offsets = [8, 0], sizes = [1, 64], strides = [1, 1]} : vector<9x64xf32> to vector<1x64xf32>
    %1179 = vector.shape_cast %1178 : vector<1x64xf32> to vector<1x64xf32>
    %1180 = vector.broadcast %1179 : vector<1x64xf32> to vector<8x64xf32>
    %c0_876 = arith.constant 0 : index
    %c18_877 = arith.constant 18 : index
    %c0_878 = arith.constant 0 : index
    %c0_879 = arith.constant 0 : index
    %1181 = vector.load %arg3[%c0_876, %c18_877, %c0_878, %c0_879] : memref<1x27x8x64xf32, #tpu.memory_space<vmem>>, vector<1x1x8x64xf32>
    %1182 = vector.shape_cast %1181 : vector<1x1x8x64xf32> to vector<8x64xf32>
    %1183 = arith.mulf %1182, %1156 : vector<8x64xf32>
    %1184 = arith.addf %1150, %1183 : vector<8x64xf32>
    %c0_880 = arith.constant 0 : index
    %c19_881 = arith.constant 19 : index
    %c0_882 = arith.constant 0 : index
    %c0_883 = arith.constant 0 : index
    %1185 = vector.load %arg3[%c0_880, %c19_881, %c0_882, %c0_883] : memref<1x27x8x64xf32, #tpu.memory_space<vmem>>, vector<1x1x8x64xf32>
    %1186 = vector.shape_cast %1185 : vector<1x1x8x64xf32> to vector<8x64xf32>
    %1187 = arith.mulf %1186, %1159 : vector<8x64xf32>
    %1188 = arith.addf %1184, %1187 : vector<8x64xf32>
    %c0_884 = arith.constant 0 : index
    %c20_885 = arith.constant 20 : index
    %c0_886 = arith.constant 0 : index
    %c0_887 = arith.constant 0 : index
    %1189 = vector.load %arg3[%c0_884, %c20_885, %c0_886, %c0_887] : memref<1x27x8x64xf32, #tpu.memory_space<vmem>>, vector<1x1x8x64xf32>
    %1190 = vector.shape_cast %1189 : vector<1x1x8x64xf32> to vector<8x64xf32>
    %1191 = arith.mulf %1190, %1162 : vector<8x64xf32>
    %1192 = arith.addf %1188, %1191 : vector<8x64xf32>
    %c0_888 = arith.constant 0 : index
    %c21_889 = arith.constant 21 : index
    %c0_890 = arith.constant 0 : index
    %c0_891 = arith.constant 0 : index
    %1193 = vector.load %arg3[%c0_888, %c21_889, %c0_890, %c0_891] : memref<1x27x8x64xf32, #tpu.memory_space<vmem>>, vector<1x1x8x64xf32>
    %1194 = vector.shape_cast %1193 : vector<1x1x8x64xf32> to vector<8x64xf32>
    %1195 = arith.mulf %1194, %1165 : vector<8x64xf32>
    %1196 = arith.addf %1192, %1195 : vector<8x64xf32>
    %c0_892 = arith.constant 0 : index
    %c22_893 = arith.constant 22 : index
    %c0_894 = arith.constant 0 : index
    %c0_895 = arith.constant 0 : index
    %1197 = vector.load %arg3[%c0_892, %c22_893, %c0_894, %c0_895] : memref<1x27x8x64xf32, #tpu.memory_space<vmem>>, vector<1x1x8x64xf32>
    %1198 = vector.shape_cast %1197 : vector<1x1x8x64xf32> to vector<8x64xf32>
    %1199 = arith.mulf %1198, %1168 : vector<8x64xf32>
    %1200 = arith.addf %1196, %1199 : vector<8x64xf32>
    %c0_896 = arith.constant 0 : index
    %c23_897 = arith.constant 23 : index
    %c0_898 = arith.constant 0 : index
    %c0_899 = arith.constant 0 : index
    %1201 = vector.load %arg3[%c0_896, %c23_897, %c0_898, %c0_899] : memref<1x27x8x64xf32, #tpu.memory_space<vmem>>, vector<1x1x8x64xf32>
    %1202 = vector.shape_cast %1201 : vector<1x1x8x64xf32> to vector<8x64xf32>
    %1203 = arith.mulf %1202, %1171 : vector<8x64xf32>
    %1204 = arith.addf %1200, %1203 : vector<8x64xf32>
    %c0_900 = arith.constant 0 : index
    %c24_901 = arith.constant 24 : index
    %c0_902 = arith.constant 0 : index
    %c0_903 = arith.constant 0 : index
    %1205 = vector.load %arg3[%c0_900, %c24_901, %c0_902, %c0_903] : memref<1x27x8x64xf32, #tpu.memory_space<vmem>>, vector<1x1x8x64xf32>
    %1206 = vector.shape_cast %1205 : vector<1x1x8x64xf32> to vector<8x64xf32>
    %1207 = arith.mulf %1206, %1174 : vector<8x64xf32>
    %1208 = arith.addf %1204, %1207 : vector<8x64xf32>
    %c0_904 = arith.constant 0 : index
    %c25_905 = arith.constant 25 : index
    %c0_906 = arith.constant 0 : index
    %c0_907 = arith.constant 0 : index
    %1209 = vector.load %arg3[%c0_904, %c25_905, %c0_906, %c0_907] : memref<1x27x8x64xf32, #tpu.memory_space<vmem>>, vector<1x1x8x64xf32>
    %1210 = vector.shape_cast %1209 : vector<1x1x8x64xf32> to vector<8x64xf32>
    %1211 = arith.mulf %1210, %1177 : vector<8x64xf32>
    %1212 = arith.addf %1208, %1211 : vector<8x64xf32>
    %c0_908 = arith.constant 0 : index
    %c26_909 = arith.constant 26 : index
    %c0_910 = arith.constant 0 : index
    %c0_911 = arith.constant 0 : index
    %1213 = vector.load %arg3[%c0_908, %c26_909, %c0_910, %c0_911] : memref<1x27x8x64xf32, #tpu.memory_space<vmem>>, vector<1x1x8x64xf32>
    %1214 = vector.shape_cast %1213 : vector<1x1x8x64xf32> to vector<8x64xf32>
    %1215 = arith.mulf %1214, %1180 : vector<8x64xf32>
    %1216 = arith.addf %1212, %1215 : vector<8x64xf32>
    %1217 = arith.addf %1216, %1 : vector<8x64xf32>
    %cst_912 = arith.constant 0.000000e+00 : f32
    %1218 = vector.broadcast %cst_912 : f32 to vector<8x64xf32>
    %1219 = arith.maximumf %1217, %1218 : vector<8x64xf32>
    %cst_913 = arith.constant dense<0.000000e+00> : vector<8xf32>
    %1220 = vector.multi_reduction <add>, %1219, %cst_913 [1] : vector<8x64xf32> to vector<8xf32>
    %1221 = vector.shape_cast %1220 : vector<8xf32> to vector<8x1xf32>
    %1222 = arith.addf %1077, %1221 : vector<8x1xf32>
    %cst_914 = arith.constant 0.001953125 : f32
    %1223 = vector.broadcast %cst_914 : f32 to vector<8x1xf32>
    %1224 = arith.mulf %1222, %1223 : vector<8x1xf32>
    %1225 = vector.shape_cast %1224 : vector<8x1xf32> to vector<1x1x8x1xf32>
    %c0_915 = arith.constant 0 : index
    %c0_916 = arith.constant 0 : index
    %c0_917 = arith.constant 0 : index
    %c0_918 = arith.constant 0 : index
    %1226 = vector.load %arg5[%c0_915, %c0_916, %c0_917, %c0_918] : memref<1x1x8x1xf32, #tpu.memory_space<vmem>>, vector<1x1x8x1xf32>
    tpu.vector_store %arg5[%c0_915, %c0_916, %c0_917, %c0_918], %1225 {strides = array<i32>} : memref<1x1x8x1xf32, #tpu.memory_space<vmem>>, vector<1x1x8x1xf32>,
    return
  }
  func.func @transform_0(%arg0: i32, %arg1: i32) -> (i32, i32, i32, i32, i32) {
    %c0_i32 = arith.constant 0 : i32
    %c0_i32_0 = arith.constant 0 : i32
    %c0_i32_1 = arith.constant 0 : i32
    %c0_i32_2 = arith.constant 0 : i32
    return %arg0, %arg1, %c0_i32, %c0_i32_0, %c0_i32_1 : i32, i32, i32, i32, i32
  }
  func.func @transform_1(%arg0: i32, %arg1: i32) -> (i32, i32, i32, i32) {
    %c0_i32 = arith.constant 0 : i32
    %c0_i32_0 = arith.constant 0 : i32
    %c0_i32_1 = arith.constant 0 : i32
    %c0_i32_2 = arith.constant 0 : i32
    return %arg0, %c0_i32, %c0_i32_0, %c0_i32_1 : i32, i32, i32, i32
  }
  func.func @transform_2(%arg0: i32, %arg1: i32) -> (i32, i32, i32) {
    %c0_i32 = arith.constant 0 : i32
    %c0_i32_0 = arith.constant 0 : i32
    %c0_i32_1 = arith.constant 0 : i32
    return %arg0, %c0_i32, %c0_i32_0 : i32, i32, i32
  }
  func.func @transform_3(%arg0: i32, %arg1: i32) -> (i32, i32, i32, i32) {
    %c0_i32 = arith.constant 0 : i32
    %c0_i32_0 = arith.constant 0 : i32
    %c0_i32_1 = arith.constant 0 : i32
    return %arg0, %arg1, %c0_i32, %c0_i32_0 : i32, i32, i32, i32
  }
}

</mosaic_0001>

<bundles_post_ra>
// kernel: model_cnn_forward.1
= control target key start
LH: loop header
LB: loop body
LE: loop exit
PB: predicated region body
PF: predicated region fallthrough
CT: control target
= control target key end

     0   :  { %s1462_s12 = smov 0   ;;  %s1464_s13 = smov 0   ;;  %s2182_s0 = inlined_call_operand.vmem [shape: bf16[2,2,10,9,64], index: 0, kind: input, shape index: {}]   ;;  %s2183_s1 = inlined_call_operand.vmem [shape: f32[2,27,8,64], index: 1, kind: input, shape index: {}]   ;;  %s2184_s2 = inlined_call_operand.vmem [shape: f32[2,8,64], index: 2, kind: input, shape index: {}]   ;;  %s2185_s3 = inlined_call_operand.vmem [shape: f32[2,2,8,1], index: 3, kind: output, shape index: {}]  }
   0x1   :  { %s1466_s14 = smov 0   ;;  %s1468_s15 = smov 0  }
   0x2   :  { %s1470_s16 = smov 0  }
   0x3 LB: > { %s22_s17 = sadd.s32 1, %s1432_s14  ;;  %s25_s18 = sadd.s32 1, %s1436_s15  ;;  %s1440_s16 = sphi %s1470_s16, %s13_s16   ;;  %s1436_s15 = sphi %s1468_s15, %s2344_s15   ;;  %s1432_s14 = sphi %s1466_s14, %s2343_s14   ;;  %s1428_s13 = sphi %s1464_s13, %s2342_s13   ;;  %s1424_s12 = sphi %s1462_s12, %s2341_s12  }
   0x4   : > { %p23_p0 = scmp.ge.s32.totalorder %s22_s17, 2  ;;  %p1306_p1 = scmp.ge.s32.totalorder %s1440_s16, 1 }
   0x5   : > { %p176_p2 = scmp.lt.s32.totalorder %s1440_s16, 5 }
   0x6   : > { %s2346_s17 = smov (%p23_p0, %s22_s17), 0  ;;  %s2348_s18 = smov (!%p23_p0, %s25_s18), %s1436_s15 }
   0x7   : > { %p177_p3 = pnand %p1306_p1, %p176_p2  ;;  %p27_p4 = scmp.ge.s32.totalorder %s2348_s18, 2 }
   0x9   : > { %s2350_s18 = smov (%p27_p4, %s2348_s18), 0  ;;  %180 = sbr.rel (%p177_p3) target bundleno = 338 (0x152), region = 32 }
  0x10   : > { %p216_p5 = scmp.lt.s32.totalorder %s1428_s13, 1  ;;  %p218_p6 = scmp.lt.s32.totalorder %s1424_s12, 1  ;;  %v247_v0 = vlaneseq  ;;  %vm474_vm0 = vcmask 523264   ;;  %vm1187_vm1 = vcmask 7168  }
  0x12   : > { %s2352_s13 = smov (!%p216_p5, %s1428_s13), 1  ;;  %s2354_s12 = smov (!%p218_p6, %s1424_s12), 1  ;;  %v248_v1 = vshrl.u32 %v247_v0, 7 }
  0x13   : > { %s1359_s19 = smul.u32 40, %s2352_s13  ;;  %s1309_s30 = sshll.u32 %s2352_s13, 3 }
  0x14   : > { %s1358_s20 = smul.u32 20, %s2354_s12  ;;  %v1499_v2 = vsub.s32 0, %v248_v1  ;;  %v1501_v3 = vsub.s32 1, %v248_v1  ;;  %v1513_v4 = vsub.s32 2, %v248_v1  ;;  %v1515_v5 = vsub.s32 3, %v248_v1  ;;  %s233_s6 = scalar_lea.vmem %s2184_s2, %s1309_s30 }
  0x15   : > { %s1360_s21 = smul.u32 216, %s2352_s13  ;;  %v1517_v6 = vsub.s32 4, %v248_v1  ;;  %v1519_v7 = vsub.s32 5, %v248_v1  ;;  %v1523_v10 = vsub.s32 6, %v248_v1  ;;  %v1525_v11 = vsub.s32 7, %v248_v1  ;;  %s1310_s7 = sshll.u32 %s2352_s13, 1 }
  0x16   : > { %s222_s22 = sadd.s32 %s1359_s19, %s1358_s20  ;;  %2240 = vst [vmem:[#allocation2_spill] sm:$0xff] %v1515_v5  ;;  %s239_s8 = sadd.s32 %s1310_s7, %s2354_s12 }
  0x17   : > { %s1307_s23 = sshll.u32 %s222_s22, 2  ;;  %s1511_s29 = scalar_lea.vmem %s2183_s1, %s1360_s21  ;;  %2241 = vst [vmem:[#allocation3_spill] sm:$0xff] %v1517_v6  ;;  %2242 = vst [vmem:[#allocation4_spill] sm:$0xff] %v1519_v7 }
  0x18   : > { %s1506_s26 = scalar_lea.vmem %s2182_s0, %s1307_s23  ;;  %2243 = vst [vmem:[#allocation5_spill] sm:$0xff] %v1523_v10  ;;  %2244 = vst [vmem:[#allocation6_spill] sm:$0xff] %v1525_v11  ;;  %v1528_v14 = vld [vmem:[%s1511_s29] sm:$0xff]  ;;  %v1531_v15 = vld [vmem:[%s1511_s29 + $0x8] sm:$0xff]  ;;  %s1311_s9 = sshll.u32 %s239_s8, 3 }
  0x19   : > { %v243_v8 = vld [vmem:[%s1506_s26] ss:$8 sps:$4 sm:$0xff]   ;;  %v244_v9 = vld [vmem:[%s1506_s26 + $0x4] sm:$0x1]  ;;  %2245 = vst [vmem:[#allocation7_spill] sm:$0xff] %v1531_v15  ;;  %v1534_v16 = vld [vmem:[%s1511_s29 + $0x10] sm:$0xff]  ;;  %s241_s19 = scalar_lea.vmem %s2185_s3, %s1311_s9 }
  0x1a   : > { %v245_v12 = vunpack.c.l.bf16 %v243_v8  ;;  %v246_v13 = vunpack.c.l.bf16 %v244_v9  ;;  %2246 = vst [vmem:[#allocation8_spill] sm:$0xff] %v1534_v16  ;;  %v1545_v25 = vld [vmem:[%s1511_s29 + $0x18] sm:$0xff]  ;;  %v1552_v30 = vld [vmem:[%s1511_s29 + $0x20] sm:$0xff]  ;;  %v1555_v31 = vld [vmem:[%s1511_s29 + $0x28] sm:$0xff]  ;;  %v321_v36 = vunpack.c.h.bf16 %v243_v8 }
  0x1b   : > { %2247 = vst [vmem:[#allocation9_spill] sm:$0xff] %v1552_v30  ;;  %v1321_v32 = vld [vmem:[%s1506_s26 + $0xc] sm:$0x1]  ;;  %v1559_v33 = vld [vmem:[%s1511_s29 + $0x30] sm:$0xff]  ;;  %v1562_v34 = vld [vmem:[%s1511_s29 + $0x38] sm:$0xff] }
  0x1c   : > { %v250_v17 = vrot.slane %v245_v12, %v1499_v2  ;;  %v254_v18 = vrot.slane %v245_v12, %v1501_v3  ;;  %v258_v19 = vrot.slane %v245_v12, %v1513_v4  ;;  %v262_v20 = vrot.slane %v245_v12, %v1515_v5  ;;  %v1565_v35 = vld [vmem:[%s1511_s29 + $0x40] sm:$0xff]  ;;  %v1576_v46 = vld [vmem:[%s1511_s29 + $0x48] sm:$0xff]  ;;  %v1579_v47 = vld [vmem:[%s1511_s29 + $0x50] sm:$0xff] }
  0x1d   : > { %v266_v21 = vrot.slane %v245_v12, %v1517_v6  ;;  %v270_v22 = vrot.slane %v245_v12, %v1519_v7  ;;  %v274_v23 = vrot.slane %v245_v12, %v1523_v10  ;;  %v278_v24 = vrot.slane %v245_v12, %v1525_v11  ;;  %v1582_v48 = vld [vmem:[%s1511_s29 + $0x58] sm:$0xff]  ;;  %v1589_v53 = vld [vmem:[%s1511_s29 + $0x60] sm:$0xff]  ;;  %v1592_v54 = vld [vmem:[%s1511_s29 + $0x68] sm:$0xff] }
  0x1e   : > { %v282_v26 = vrot.slane %v246_v13, %v1499_v2  ;;  %v284_v27 = vmul.f32 %v1528_v14, %v250_v17  ;;  %v288_v28 = vmul.f32 %v1531_v15, %v254_v18  ;;  %v292_v29 = vmul.f32 %v1534_v16, %v258_v19  ;;  %2248 = vst [vmem:[#allocation10_spill] sm:$0xff] %v1582_v48  ;;  %v1595_v55 = vld [vmem:[%s1506_s26 + $0x10] ss:$8 sps:$4 sm:$0xff]   ;;  %v1607_v62 = vld [vmem:[%s1511_s29 + $0x80] sm:$0xff]  ;;  %v1614_v9 = vld [vmem:[%s1511_s29 + $0x88] sm:$0xff] }
  0x1f   : > { %v296_v38 = vmul.f32 %v1545_v25, %v262_v20  ;;  %v300_v39 = vmul.f32 %v1552_v30, %v266_v21  ;;  %v304_v40 = vmul.f32 %v1555_v31, %v270_v22  ;;  %v322_v41 = vunpack.c.l.bf16 %v1321_v32  ;;  %2249 = vst [vmem:[#allocation11_spill] sm:$0xff] %v1589_v53  ;;  %2250 = vst [vmem:[#allocation12_spill] sm:$0xff] %v1592_v54  ;;  %v1601_v60 = vld [vmem:[%s1511_s29 + $0x70] sm:$0xff]  ;;  %v1604_v61 = vld [vmem:[%s1511_s29 + $0x78] sm:$0xff] }
  0x20   : > { %v289_v37 = vadd.f32 %v288_v28, %v284_v27  ;;  %v308_v43 = vmul.f32 %v1559_v33, %v274_v23  ;;  %v312_v44 = vmul.f32 %v1562_v34, %v278_v24  ;;  %v1573_v45 = vmul.f32 %v1565_v35, %v282_v26  ;;  %2251 = vst [vmem:[#allocation13_spill] sm:$0xff] %v1601_v60  ;;  %v1332_v12 = vld [vmem:[%s1506_s26 + $0x14] sm:$0x1] }
  0x21   : > { %v326_v49 = vrot.slane %v321_v36, %v1499_v2  ;;  %v330_v50 = vrot.slane %v321_v36, %v1501_v3  ;;  %v334_v51 = vrot.slane %v321_v36, %v1513_v4  ;;  %v338_v52 = vrot.slane %v321_v36, %v1515_v5  ;;  %2252 = vst [vmem:[#allocation14_spill] sm:$0xff] %v1607_v62 }
  0x22   : > { %v293_v42 = vadd.f32 %v292_v29, %v289_v37  ;;  %v342_v57 = vrot.slane %v321_v36, %v1517_v6  ;;  %v346_v58 = vrot.slane %v321_v36, %v1519_v7  ;;  %v350_v59 = vrot.slane %v321_v36, %v1523_v10  ;;  %v1641_v29 = vld [vmem:[%s1511_s29 + $0x90] sm:$0xff] }
  0x23   : > { %v354_v63 = vrot.slane %v321_v36, %v1525_v11  ;;  %v358_v0 = vrot.slane %v322_v41, %v1499_v2  ;;  %v361_v1 = vmul.f32 %v1576_v46, %v326_v49  ;;  %v365_v8 = vmul.f32 %v1579_v47, %v330_v50 }
  0x24   : > { %v297_v56 = vadd.f32 %v296_v38, %v293_v42  ;;  %v1618_v17 = vmul.f32 %v1582_v48, %v334_v51  ;;  %v1621_v18 = vmul.f32 %v1589_v53, %v338_v52  ;;  %v398_v19 = vunpack.c.l.bf16 %v1595_v55 }
  0x25   : > { %v1625_v20 = vmul.f32 %v1592_v54, %v342_v57  ;;  %v1628_v21 = vmul.f32 %v1601_v60, %v346_v58  ;;  %v1631_v22 = vmul.f32 %v1604_v61, %v350_v59  ;;  %v1634_v23 = vmul.f32 %v1607_v62, %v354_v63 }
  0x26   : > { %v301_v13 = vadd.f32 %v300_v39, %v297_v56  ;;  %v1637_v26 = vmul.f32 %v1614_v9, %v358_v0  ;;  %v399_v27 = vunpack.c.l.bf16 %v1332_v12  ;;  %v479_v28 = vmul.f32 %v326_v49, %v1528_v14  ;;  %v1651_v49 = vld [vmem:[%s1511_s29 + $0x98] sm:$0xff]  ;;  %v1657_v56 = vld [vmem:[%s1511_s29 + $0xa8] sm:$0xff]  ;;  %v1664_v12 = vld [vmem:[%s1511_s29 + $0xb0] sm:$0xff] }
  0x27   : > { %2253 = vst [vmem:[#allocation15_spill] sm:$0xff] %v1625_v20  ;;  %2254 = vst [vmem:[#allocation16_spill] sm:$0xff] %v1628_v21  ;;  %v481_v32 = vmul.f32 %v1531_v15, %v330_v50  ;;  %v483_v36 = vmul.f32 %v1534_v16, %v334_v51  ;;  %v485_v37 = vmul.f32 %v1545_v25, %v338_v52  ;;  %v1654_v50 = vld [vmem:[%s1511_s29 + $0xa0] sm:$0xff] }
  0x28   : > { %2255 = vst [vmem:[#allocation17_spill] sm:$0xff] %v1631_v22  ;;  %2256 = vst [vmem:[#allocation18_spill] sm:$0xff] %v1634_v23  ;;  %v305_v24 = vadd.f32 %v304_v40, %v301_v13  ;;  %v487_v38 = vmul.f32 %v1552_v30, %v342_v57  ;;  %v403_v40 = vrot.slane %v398_v19, %v1499_v2  ;;  %v1667_v13 = vld [vmem:[%s1511_s29 + $0xb8] sm:$0xff] }
  0x29   : > { %2257 = vst [vmem:[#allocation19_spill] sm:$0xff] %v1637_v26  ;;  %v407_v41 = vrot.slane %v398_v19, %v1501_v3  ;;  %v411_v42 = vrot.slane %v398_v19, %v1513_v4  ;;  %2258 = vst [vmem:[#allocation20_spill] sm:$0xff] %v1651_v49  ;;  %v415_v51 = vrot.slane %v398_v19, %v1515_v5 }
  0x2a   : > { %v309_v39 = vadd.f32 %v308_v43, %v305_v24  ;;  %2259 = vst [vmem:[#allocation21_spill] sm:$0xff] %v1657_v56  ;;  %v419_v52 = vrot.slane %v398_v19, %v1517_v6  ;;  %v423_v43 = vrot.slane %v398_v19, %v1519_v7  ;;  %v427_v57 = vrot.slane %v398_v19, %v1523_v10  ;;  %v1670_v24 = vld [vmem:[%s1511_s29 + $0xc0] sm:$0xff]  ;;  %v1682_v6 = vld [vmem:[%s1511_s29 + $0xc8] sm:$0xff]  ;;  %v1685_v7 = vld [vmem:[%s1511_s29 + $0xd0] sm:$0xff] }
  0x2b   : > { %2260 = vst [vmem:[#allocation22_spill] sm:$0xff] %v1664_v12  ;;  %2261 = vst [vmem:[#allocation23_spill] sm:$0xff] %v1667_v13  ;;  %v1673_v23 = vrot.slane %v398_v19, %v1525_v11  ;;  %v1676_v22 = vrot.slane %v399_v27, %v1499_v2  ;;  %v1679_v21 = vmul.f32 %v1641_v29, %v403_v40 }
  0x2c   : > { %2262 = vst [vmem:[#allocation24_spill] sm:$0xff] %v1670_v24  ;;  %v313_v26 = vadd.f32 %v312_v44, %v309_v39  ;;  %2264 = vst [vmem:[#allocation26_spill] sm:$0xff] %v1682_v6  ;;  %v1688_v10 = vmul.f32 %v1651_v49, %v407_v41  ;;  %v1691_v20 = vmul.f32 %v1654_v50, %v411_v42 }
  0x2d   : > { %2263 = vst [vmem:[#allocation25_spill] sm:$0xff] %v1679_v21  ;;  %2265 = vst [vmem:[#allocation27_spill] sm:$0xff] %v1685_v7  ;;  %v1694_v44 = vmul.f32 %v1657_v56, %v415_v51  ;;  %v482_v19 = vadd.f32 %v481_v32, %v479_v28  ;;  %v1698_v39 = vmul.f32 %v1664_v12, %v419_v52 }
  0x2e   : > { %v317_v27 = vadd.f32 %v1573_v45, %v313_v26  ;;  %v1701_v21 = vmul.f32 %v1667_v13, %v423_v43  ;;  %v1704_v11 = vmul.f32 %v1670_v24, %v427_v57  ;;  %v1708_v49 = vmul.f32 %v1682_v6, %v1673_v23 }
  0x2f   : > { %v1712_v56 = vmul.f32 %v1685_v7, %v1676_v22  ;;  %v484_v28 = vadd.f32 %v483_v36, %v482_v19  ;;  %v489_v45 = vmul.f32 %v1555_v31, %v346_v58  ;;  %v491_v32 = vmul.f32 %v1559_v33, %v350_v59 }
  0x30   : > { %2266 = vst [vmem:[#allocation28_spill] sm:$0xff] %v1701_v21  ;;  %2267 = vst [vmem:[#allocation29_spill] sm:$0xff] %v1704_v11  ;;  %v362_v26 = vadd.f32 %v361_v1, %v317_v27  ;;  %v493_v13 = vmul.f32 %v1562_v34, %v354_v63  ;;  %v495_v12 = vmul.f32 %v1565_v35, %v358_v0 }
  0x31   : > { %2268 = vst [vmem:[#allocation30_spill] sm:$0xff] %v1708_v49  ;;  %2269 = vst [vmem:[#allocation31_spill] sm:$0xff] %v1712_v56  ;;  %v486_v24 = vadd.f32 %v485_v37, %v484_v28  ;;  %v497_v11 = vmul.f32 %v1576_v46, %v403_v40  ;;  %v499_v6 = vmul.f32 %v1579_v47, %v407_v41  ;;  %v518_v49 = vunpack.c.h.bf16 %v1595_v55 }
  0x32   : > { %v366_v21 = vadd.f32 %v365_v8, %v362_v26  ;;  %v580_v56 = vmul.f32 %v403_v40, %v1528_v14  ;;  %v582_v36 = vmul.f32 %v1531_v15, %v407_v41  ;;  %v584_v58 = vmul.f32 %v1534_v16, %v411_v42 }
  0x33   : > { %v488_v1 = vadd.f32 %v487_v38, %v486_v24  ;;  %v501_v59 = vmul.f32 %v1582_v48, %v411_v42  ;;  %v1726_v63 = vmul.f32 %v1589_v53, %v415_v51  ;;  %v1729_v0 = vmul.f32 %v1592_v54, %v419_v52 }
  0x34   : > { %v370_v37 = vadd.f32 %v1618_v17, %v366_v21  ;;  %v1733_v55 = vmul.f32 %v1601_v60, %v423_v43  ;;  %v1736_v8 = vmul.f32 %v1604_v61, %v427_v57  ;;  %v583_v40 = vadd.f32 %v582_v36, %v580_v56  ;;  %v2276_v36 = vld [vmem:[#allocation3_spill] sm:$0xff] }
  0x35   : > { %v490_v41 = vadd.f32 %v489_v45, %v488_v1  ;;  %v523_v38 = vrot.slane %v518_v49, %v1499_v2  ;;  %v1740_v42 = vrot.slane %v518_v49, %v1501_v3  ;;  %v586_v24 = vmul.f32 %v1545_v25, %v415_v51 }
  0x36   : > { %v374_v19 = vadd.f32 %v1621_v18, %v370_v37  ;;  %v1745_v27 = vrot.slane %v518_v49, %v1513_v4  ;;  %v585_v17 = vadd.f32 %v584_v58, %v583_v40  ;;  %v588_v21 = vmul.f32 %v1552_v30, %v419_v52  ;;  %v2275_v18 = vld [vmem:[#allocation15_spill] sm:$0xff] }
  0x37   : > { %2270 = vst [vmem:[#allocation32_spill] sm:$0xff] %v1740_v42  ;;  %v492_v28 = vadd.f32 %v491_v32, %v490_v41  ;;  %v1750_v56 = vmul.f32 %v1607_v62, %v1673_v23  ;;  %v1754_v45 = vmul.f32 %v1614_v9, %v1676_v22  ;;  %v1757_v51 = vrot.slane %v518_v49, %v1515_v5 }
  0x38   : > { %2271 = vst [vmem:[#allocation33_spill] sm:$0xff] %v1745_v27  ;;  %v378_v26 = vadd.f32 %v2275_v18, %v374_v19  ;;  %v1761_v1 = vrot.slane %v518_v49, %v2276_v36  ;;  %v587_v58 = vadd.f32 %v586_v24, %v585_v17  ;;  %v590_v52 = vmul.f32 %v1555_v31, %v423_v43  ;;  %v1343_v24 = vld [vmem:[%s1506_s26 + $0x1c] sm:$0x1] }
  0x39   : > { %2272 = vst [vmem:[#allocation34_spill] sm:$0xff] %v1750_v56  ;;  %2273 = vst [vmem:[#allocation35_spill] sm:$0xff] %v1754_v45  ;;  %v494_v32 = vadd.f32 %v493_v13, %v492_v28  ;;  %v1765_v37 = vmul.f32 %v1641_v29, %v523_v38  ;;  %v592_v40 = vmul.f32 %v1559_v33, %v427_v57  ;;  %v2279_v45 = vld [vmem:[#allocation16_spill] sm:$0xff]  ;;  %v2280_v28 = vld [vmem:[#allocation17_spill] sm:$0xff] }
  0x3a   : > { %2274 = vst [vmem:[#allocation36_spill] sm:$0xff] %v1757_v51  ;;  %2277 = vst [vmem:[#allocation15_spill] sm:$0xff] %v1761_v1  ;;  %v681_v41 = vmul.f32 %v523_v38, %v1528_v14  ;;  %v382_v7 = vadd.f32 %v2279_v45, %v378_v26  ;;  %v589_v56 = vadd.f32 %v588_v21, %v587_v58 }
  0x3b   : > { %2278 = vst [vmem:[#allocation37_spill] sm:$0xff] %v1765_v37  ;;  %v683_v19 = vmul.f32 %v1531_v15, %v1740_v42  ;;  %v685_v18 = vmul.f32 %v1534_v16, %v1745_v27  ;;  %v496_v17 = vadd.f32 %v495_v12, %v494_v32  ;;  %v594_v43 = vmul.f32 %v1562_v34, %v1673_v23  ;;  %v2281_v16 = vld [vmem:[#allocation18_spill] sm:$0xff] }
  0x3c   : > { %v596_v57 = vmul.f32 %v1565_v35, %v1676_v22  ;;  %v598_v13 = vmul.f32 %v1576_v46, %v523_v38  ;;  %v386_v45 = vadd.f32 %v2280_v28, %v382_v7  ;;  %v591_v21 = vadd.f32 %v590_v52, %v589_v56  ;;  %v1791_v56 = vld [vmem:[%s1506_s26 + $0x20] ss:$8 sps:$4 sm:$0xff]  }
  0x3d   : > { %v600_v26 = vmul.f32 %v1579_v47, %v1740_v42  ;;  %v684_v58 = vadd.f32 %v683_v19, %v681_v41  ;;  %v498_v37 = vadd.f32 %v497_v11, %v496_v17  ;;  %v602_v12 = vmul.f32 %v1582_v48, %v1745_v27  ;;  %v2282_v19 = vld [vmem:[#allocation4_spill] sm:$0xff]  ;;  %v2289_v27 = vld [vmem:[#allocation25_spill] sm:$0xff] }
  0x3e   : > { %v687_v23 = vmul.f32 %v1545_v25, %v1757_v51  ;;  %v519_v32 = vunpack.c.l.bf16 %v1343_v24  ;;  %v390_v22 = vadd.f32 %v2281_v16, %v386_v45  ;;  %v593_v15 = vadd.f32 %v592_v40, %v591_v21  ;;  %v2283_v24 = vld [vmem:[#allocation19_spill] sm:$0xff]  ;;  %v2284_v40 = vld [vmem:[#allocation5_spill] sm:$0xff]  ;;  %v2286_v21 = vld [vmem:[#allocation6_spill] sm:$0xff] }
  0x3f   : > { %v604_v7 = vmul.f32 %v1589_v53, %v1757_v51  ;;  %v686_v38 = vadd.f32 %v685_v18, %v684_v58  ;;  %v500_v52 = vadd.f32 %v499_v6, %v498_v37  ;;  %v606_v11 = vmul.f32 %v1592_v54, %v1761_v1  ;;  %v1345_v58 = vld [vmem:[%s1506_s26 + $0x24] sm:$0x1] }
  0x40   : > { %v689_v41 = vmul.f32 %v1552_v30, %v1761_v1  ;;  %v1798_v17 = vrot.slane %v518_v49, %v2282_v19  ;;  %v394_v28 = vadd.f32 %v2283_v24, %v390_v22  ;;  %v595_v16 = vadd.f32 %v594_v43, %v593_v15 }
  0x41   : > { %v1802_v45 = vrot.slane %v518_v49, %v2284_v40  ;;  %v1805_v18 = vrot.slane %v518_v49, %v2286_v21  ;;  %v502_v6 = vadd.f32 %v501_v59, %v500_v52  ;;  %v688_v37 = vadd.f32 %v687_v23, %v686_v38 }
  0x42   : > { %v1809_v51 = vrot.slane %v519_v32, %v1499_v2  ;;  %v619_v1 = vunpack.c.l.bf16 %v1791_v56  ;;  %v439_v42 = vadd.f32 %v2289_v27, %v394_v28  ;;  %v597_v30 = vadd.f32 %v596_v57, %v595_v16 }
  0x43   : > { %2285 = vst [vmem:[#allocation16_spill] sm:$0xff] %v1802_v45  ;;  %2287 = vst [vmem:[#allocation17_spill] sm:$0xff] %v1805_v18  ;;  %v608_v15 = vmul.f32 %v1601_v60, %v1798_v17  ;;  %v610_v43 = vmul.f32 %v1604_v61, %v1802_v45  ;;  %v504_v49 = vadd.f32 %v1726_v63, %v502_v6  ;;  %v620_v32 = vunpack.c.l.bf16 %v1345_v58 }
  0x44   : > { %2288 = vst [vmem:[#allocation18_spill] sm:$0xff] %v1809_v51  ;;  %v1820_v59 = vmul.f32 %v1607_v62, %v1805_v18  ;;  %v1824_v23 = vmul.f32 %v1614_v9, %v1809_v51  ;;  %v443_v27 = vadd.f32 %v1688_v10, %v439_v42  ;;  %v599_v57 = vadd.f32 %v598_v13, %v597_v30 }
  0x45   : > { %v691_v22 = vmul.f32 %v1555_v31, %v1798_v17  ;;  %v693_v38 = vmul.f32 %v1559_v33, %v1802_v45  ;;  %v506_v63 = vadd.f32 %v1729_v0, %v504_v49  ;;  %v690_v52 = vadd.f32 %v689_v41, %v688_v37 }
  0x46   : > { %v624_v24 = vrot.slane %v619_v1, %v1499_v2  ;;  %v628_v28 = vrot.slane %v619_v1, %v1501_v3  ;;  %v447_v16 = vadd.f32 %v1691_v20, %v443_v27  ;;  %v601_v6 = vadd.f32 %v600_v26, %v599_v57  ;;  %v2290_v27 = vld [vmem:[#allocation20_spill] sm:$0xff] }
  0x47   : > { %v632_v58 = vrot.slane %v619_v1, %v1513_v4  ;;  %v636_v10 = vrot.slane %v619_v1, %v1515_v5  ;;  %v508_v30 = vadd.f32 %v1733_v55, %v506_v63  ;;  %v640_v42 = vrot.slane %v619_v1, %v2276_v36  ;;  %v2302_v5 = vld [vmem:[#allocation27_spill] sm:$0xff] }
  0x48   : > { %v1840_v13 = vrot.slane %v619_v1, %v2282_v19  ;;  %v1843_v0 = vrot.slane %v619_v1, %v2284_v40  ;;  %v451_v41 = vadd.f32 %v1694_v44, %v447_v16  ;;  %v603_v37 = vadd.f32 %v602_v12, %v601_v6  ;;  %v2291_v12 = vld [vmem:[#allocation34_spill] sm:$0xff]  ;;  %v2292_v16 = vld [vmem:[#allocation21_spill] sm:$0xff] }
  0x49   : > { %v1847_v20 = vrot.slane %v619_v1, %v2286_v21  ;;  %v1850_v26 = vrot.slane %v620_v32, %v1499_v2  ;;  %v510_v55 = vadd.f32 %v1736_v8, %v508_v30  ;;  %v657_v49 = vmul.f32 %v1641_v29, %v624_v24 }
  0x4a   : > { %v1855_v57 = vmul.f32 %v2290_v27, %v628_v28  ;;  %v692_v63 = vadd.f32 %v691_v22, %v690_v52  ;;  %v455_v40 = vadd.f32 %v1698_v39, %v451_v41  ;;  %v605_v19 = vadd.f32 %v604_v7, %v603_v37  ;;  %v2293_v22 = vld [vmem:[#allocation28_spill] sm:$0xff]  ;;  %v2294_v7 = vld [vmem:[#allocation22_spill] sm:$0xff]  ;;  %v2295_v37 = vld [vmem:[#allocation23_spill] sm:$0xff] }
  0x4b   : > { %v1859_v44 = vmul.f32 %v1654_v50, %v632_v58  ;;  %v695_v1 = vmul.f32 %v1562_v34, %v1805_v18  ;;  %v512_v32 = vadd.f32 %v2291_v12, %v510_v55  ;;  %v1866_v8 = vmul.f32 %v2292_v16, %v636_v10  ;;  %v2297_v55 = vld [vmem:[#allocation24_spill] sm:$0xff] }
  0x4c   : > { %v694_v6 = vadd.f32 %v693_v38, %v692_v63  ;;  %v697_v30 = vmul.f32 %v1565_v35, %v1809_v51  ;;  %v459_v52 = vadd.f32 %v2293_v22, %v455_v40  ;;  %v607_v39 = vadd.f32 %v606_v11, %v605_v19  ;;  %v2299_v38 = vld [vmem:[#allocation26_spill] sm:$0xff]  ;;  %v2301_v11 = vld [vmem:[#allocation29_spill] sm:$0xff]  ;;  %v2304_v51 = vld [vmem:[#allocation35_spill] sm:$0xff] }
  0x4d   : > { %v1872_v41 = vmul.f32 %v2294_v7, %v640_v42  ;;  %v1876_v21 = vmul.f32 %v2295_v37, %v1840_v13  ;;  %v1880_v12 = vmul.f32 %v2297_v55, %v1843_v0  ;;  %v1884_v63 = vmul.f32 %v2299_v38, %v1847_v20 }
  0x4e   : > { %v696_v36 = vadd.f32 %v695_v1, %v694_v6  ;;  %v699_v40 = vmul.f32 %v1576_v46, %v624_v24  ;;  %v463_v19 = vadd.f32 %v2301_v11, %v459_v52  ;;  %v609_v22 = vadd.f32 %v608_v15, %v607_v39  ;;  %v2306_v52 = vld [vmem:[#allocation7_spill] sm:$0xff]  ;;  %v1902_v39 = vld [vmem:[%s233_s6] sm:$0xff] }
  0x4f   : > { %2296 = vst [vmem:[#allocation19_spill] sm:$0xff] %v1876_v21  ;;  %2298 = vst [vmem:[#allocation25_spill] sm:$0xff] %v1880_v12  ;;  %v1893_v21 = vmul.f32 %v2302_v5, %v1850_v26  ;;  %v701_v12 = vmul.f32 %v1579_v47, %v628_v28  ;;  %v514_v18 = vadd.f32 %v2304_v51, %v512_v32  ;;  %v2307_v32 = vld [vmem:[#allocation31_spill] sm:$0xff] }
  0x50   : > { %2300 = vst [vmem:[#allocation20_spill] sm:$0xff] %v1884_v63  ;;  %v698_v38 = vadd.f32 %v697_v30, %v696_v36  ;;  %v703_v1 = vmul.f32 %v1582_v48, %v632_v58  ;;  %v705_v6 = vmul.f32 %v1589_v53, %v636_v10  ;;  %v2305_v63 = vld [vmem:[#allocation30_spill] sm:$0xff]  ;;  %v611_v45 = vadd.f32 %v610_v43, %v609_v22 }
  0x51   : > { %2303 = vst [vmem:[#allocation34_spill] sm:$0xff] %v1893_v21  ;;  %v467_v55 = vadd.f32 %v2305_v63, %v463_v19  ;;  %v782_v37 = vmul.f32 %v624_v24, %v1528_v14  ;;  %v784_v15 = vmul.f32 %v2306_v52, %v628_v28  ;;  %v707_v21 = vmul.f32 %v1592_v54, %v640_v42  ;;  %v2308_v19 = vld [vmem:[#allocation8_spill] sm:$0xff] }
  0x52   : > { %v700_v11 = vadd.f32 %v699_v40, %v698_v38  ;;  %v709_v51 = vmul.f32 %v1601_v60, %v1840_v13  ;;  %v1908_v36 = vunpack.c.h.bf16 %v1791_v56  ;;  %v613_v63 = vadd.f32 %v1820_v59, %v611_v45  ;;  %v2310_v45 = vld [vmem:[#allocation37_spill] sm:$0xff] }
  0x53   : > { %v471_v30 = vadd.f32 %v2307_v32, %v467_v55  ;;  %v785_v43 = vadd.f32 %v784_v15, %v782_v37  ;;  %v786_v24 = vmul.f32 %v2308_v19, %v632_v58  ;;  %v711_v28 = vmul.f32 %v1604_v61, %v1843_v0  ;;  %v2309_v55 = vld [vmem:[#allocation9_spill] sm:$0xff] }
  0x54   : > { %v702_v22 = vadd.f32 %v701_v12, %v700_v11  ;;  %v713_v38 = vmul.f32 %v1607_v62, %v1847_v20  ;;  %v788_v40 = vmul.f32 %v1545_v25, %v636_v10  ;;  %v615_v56 = vadd.f32 %v1824_v23, %v613_v63 }
  0x55   : > { %v472_v60 = vadd.f32 %v471_v30, %v1902_v39  ;;  %v787_v54 = vadd.f32 %v786_v24, %v785_v43  ;;  %v790_v32 = vmul.f32 %v2309_v55, %v640_v42  ;;  %v557_v59 = vadd.f32 %v2310_v45, %v514_v18  ;;  %v2312_v24 = vld [vmem:[#allocation33_spill] sm:$0xff] }
  0x56   : > { %v704_v37 = vadd.f32 %v703_v1, %v702_v22  ;;  %v715_v58 = vmul.f32 %v1614_v9, %v1850_v26  ;;  %v725_v12 = vrot.slane %v1908_v36, %v1499_v2  ;;  %v658_v11 = vadd.f32 %v657_v49, %v615_v56 }
  0x57   : > { %v473_v15 = vmax.f32 %v472_v60, 0.0  ;;  %v789_v62 = vadd.f32 %v788_v40, %v787_v54  ;;  %v792_v10 = vmul.f32 %v1555_v31, %v1840_v13  ;;  %v729_v23 = vrot.slane %v1908_v36, %v1501_v3 }
  0x58   : > { %v706_v30 = vadd.f32 %v705_v6, %v704_v37  ;;  %v1932_v18 = vrot.slane %v1908_v36, %v1513_v4  ;;  %v758_v42 = vmul.f32 %v1641_v29, %v725_v12  ;;  %v660_v63 = vadd.f32 %v1855_v57, %v658_v11  ;;  %v2311_v6 = vld [vmem:[#allocation32_spill] sm:$0xff] }
  0x59   : > { %v475_v1 = vsel %vm474_vm0, %v473_v15, 0.0  ;;  %v791_v60 = vadd.f32 %v790_v32, %v789_v62  ;;  %v794_v54 = vmul.f32 %v1559_v33, %v1843_v0  ;;  %v796_v49 = vmul.f32 %v1562_v34, %v1847_v20  ;;  %v2313_v20 = vld [vmem:[#allocation36_spill] sm:$0xff] }
  0x5a   : > { %476 = vadd.xlane.f32.xlu0 %v475_v1  ;;  %v708_v13 = vadd.f32 %v707_v21, %v706_v30  ;;  %v558_v43 = vmul.f32 %v2290_v27, %v2311_v6  ;;  %v560_v22 = vmul.f32 %v1654_v50, %v2312_v24  ;;  %v662_v40 = vadd.f32 %v1859_v44, %v660_v63  ;;  %v2314_v1 = vld [vmem:[#allocation15_spill] sm:$0xff]  ;;  %v2317_v6 = vld [vmem:[#allocation24_spill] sm:$0xff] }
  0x5b   : > { %v793_v56 = vadd.f32 %v792_v10, %v791_v60  ;;  %v798_v62 = vmul.f32 %v1565_v35, %v1850_v26  ;;  %v800_v0 = vmul.f32 %v1576_v46, %v725_v12  ;;  %v802_v21 = vmul.f32 %v1579_v47, %v729_v23  ;;  %v1347_v63 = vld [vmem:[%s1506_s26 + $0x2c] sm:$0x1] }
  0x5c   : > { %v710_v57 = vadd.f32 %v709_v51, %v708_v13  ;;  %v559_v32 = vadd.f32 %v558_v43, %v557_v59  ;;  %v562_v45 = vmul.f32 %v2292_v16, %v2313_v20  ;;  %v664_v37 = vadd.f32 %v1866_v8, %v662_v40  ;;  %v2315_v13 = vld [vmem:[#allocation23_spill] sm:$0xff] }
  0x5d   : > { %v795_v15 = vadd.f32 %v794_v54, %v793_v56  ;;  %v804_v44 = vmul.f32 %v1582_v48, %v1932_v18  ;;  %v883_v11 = vmul.f32 %v725_v12, %v1528_v14  ;;  %v885_v26 = vmul.f32 %v2306_v52, %v729_v23  ;;  %v2316_v54 = vld [vmem:[#allocation16_spill] sm:$0xff]  ;;  %v2318_v12 = vld [vmem:[#allocation17_spill] sm:$0xff] }
  0x5e   : > { %v712_v10 = vadd.f32 %v711_v28, %v710_v57  ;;  %v561_v30 = vadd.f32 %v560_v22, %v559_v32  ;;  %v564_v51 = vmul.f32 %v2294_v7, %v2314_v1  ;;  %v666_v59 = vadd.f32 %v1872_v41, %v664_v37  ;;  %v2319_v28 = vld [vmem:[#allocation26_spill] sm:$0xff]  ;;  %v2321_v32 = vld [vmem:[#allocation19_spill] sm:$0xff]  ;;  %v2326_v52 = vld [vmem:[#allocation5_spill] sm:$0xff] }
  0x5f   : > { %v797_v60 = vadd.f32 %v796_v49, %v795_v15  ;;  %v566_v8 = vmul.f32 %v2315_v13, %v1798_v17  ;;  %v568_v43 = vmul.f32 %v2317_v6, %v2316_v54  ;;  %v570_v56 = vmul.f32 %v2319_v28, %v2318_v12  ;;  %v2320_v57 = vld [vmem:[#allocation18_spill] sm:$0xff]  ;;  %v2323_v15 = vld [vmem:[#allocation3_spill] sm:$0xff]  ;;  %v2325_v12 = vld [vmem:[#allocation4_spill] sm:$0xff] }
  0x60   : > { %v714_v24 = vadd.f32 %v713_v38, %v712_v10  ;;  %v563_v40 = vadd.f32 %v562_v45, %v561_v30  ;;  %v572_v22 = vmul.f32 %v2302_v5, %v2320_v57  ;;  %v668_v20 = vadd.f32 %v2321_v32, %v666_v59  ;;  %v2322_v41 = vld [vmem:[#allocation2_spill] sm:$0xff]  ;;  %v2324_v45 = vld [vmem:[#allocation25_spill] sm:$0xff] }
  0x61   : > { %v799_v1 = vadd.f32 %v798_v62, %v797_v60  ;;  %v721_v48 = vunpack.c.l.bf16 %v1347_v63  ;;  %v737_v49 = vrot.slane %v1908_v36, %v2322_v41  ;;  %v741_v54 = vrot.slane %v1908_v36, %v2323_v15  ;;  %v2327_v60 = vld [vmem:[#allocation6_spill] sm:$0xff] }
  0x62   : > { %v716_v37 = vadd.f32 %v715_v58, %v714_v24  ;;  %v565_v17 = vadd.f32 %v564_v51, %v563_v40  ;;  %v760_v38 = vmul.f32 %v2290_v27, %v729_v23  ;;  %v670_v10 = vadd.f32 %v2324_v45, %v668_v20  ;;  %v2328_v24 = vld [vmem:[#allocation20_spill] sm:$0xff] }
  0x63   : > { %v801_v30 = vadd.f32 %v800_v0, %v799_v1  ;;  %v745_v57 = vrot.slane %v1908_v36, %v2325_v12  ;;  %v749_v62 = vrot.slane %v1908_v36, %v2326_v52  ;;  %v753_v58 = vrot.slane %v1908_v36, %v2327_v60  ;;  %v2330_v60 = vld [vmem:[#allocation12_spill] sm:$0xff] }
  0x64   : > { %v759_v63 = vadd.f32 %v758_v42, %v716_v37  ;;  %v567_v59 = vadd.f32 %v566_v8, %v565_v17  ;;  %v762_v51 = vmul.f32 %v1654_v50, %v1932_v18  ;;  %v672_v23 = vadd.f32 %v2328_v24, %v670_v10  ;;  %v2329_v8 = vld [vmem:[#allocation34_spill] sm:$0xff]  ;;  %v1993_v12 = vld [vmem:[%s1506_s26 + $0x30] ss:$8 sps:$4 sm:$0xff]  }
  0x65   : > { %v803_v40 = vadd.f32 %v802_v21, %v801_v30  ;;  %v757_v0 = vrot.slane %v721_v48, %v1499_v2  ;;  %v806_v32 = vmul.f32 %v1589_v53, %v737_v49  ;;  %v764_v45 = vmul.f32 %v2292_v16, %v737_v49  ;;  %v2331_v48 = vld [vmem:[#allocation13_spill] sm:$0xff] }
  0x66   : > { %v569_v20 = vadd.f32 %v568_v43, %v567_v59  ;;  %v761_v1 = vadd.f32 %v760_v38, %v759_v63  ;;  %v766_v42 = vmul.f32 %v2294_v7, %v741_v54  ;;  %v674_v37 = vadd.f32 %v2329_v8, %v672_v23 }
  0x67   : > { %v805_v17 = vadd.f32 %v804_v44, %v803_v40  ;;  %v768_v36 = vmul.f32 %v2315_v13, %v745_v57  ;;  %v808_v52 = vmul.f32 %v2330_v60, %v741_v54  ;;  %v810_v30 = vmul.f32 %v2331_v48, %v745_v57 }
  0x68   : > { %v571_v21 = vadd.f32 %v570_v56, %v569_v20  ;;  %v763_v10 = vadd.f32 %v762_v51, %v761_v1  ;;  %v886_v24 = vadd.f32 %v885_v26, %v883_v11  ;;  %v675_v43 = vadd.f32 %v674_v37, %v1902_v39 }
  0x69   : > { %v807_v38 = vadd.f32 %v806_v32, %v805_v17  ;;  %v887_v63 = vmul.f32 %v2308_v19, %v1932_v18  ;;  %v889_v59 = vmul.f32 %v1545_v25, %v737_v49  ;;  %v812_v40 = vmul.f32 %v1604_v61, %v749_v62  ;;  %v2332_v18 = vld [vmem:[#allocation14_spill] sm:$0xff] }
  0x6a   : > { %v573_v44 = vadd.f32 %v572_v22, %v571_v21  ;;  %v765_v23 = vadd.f32 %v764_v45, %v763_v10  ;;  %v2002_v8 = vunpack.c.l.bf16 %v1993_v12  ;;  %v676_v56 = vmax.f32 %v675_v43, 0.0 }
  0x6b   : > { %v809_v51 = vadd.f32 %v808_v52, %v807_v38  ;;  %v888_v20 = vadd.f32 %v887_v63, %v886_v24  ;;  %v891_v11 = vmul.f32 %v2309_v55, %v741_v54  ;;  %v770_v1 = vmul.f32 %v2317_v6, %v749_v62 }
  0x6c   : > { %v574_v26 = vadd.f32 %v573_v44, %v1902_v39  ;;  %v767_v32 = vadd.f32 %v766_v42, %v765_v23  ;;  %v814_v37 = vmul.f32 %v2332_v18, %v753_v58  ;;  %v677_v22 = vsel %vm474_vm0, %v676_v56, 0.0 }
  0x6d   : > { %v811_v49 = vadd.f32 %v810_v30, %v809_v51  ;;  %v890_v45 = vadd.f32 %v889_v59, %v888_v20  ;;  %v893_v17 = vmul.f32 %v1555_v31, %v745_v57  ;;  %678 = vadd.xlane.f32.xlu1 %v677_v22  ;;  %v772_v52 = vmul.f32 %v2319_v28, %v753_v58 }
  0x6e   : > { %v575_v21 = vmax.f32 %v574_v26, 0.0  ;;  %v769_v10 = vadd.f32 %v768_v36, %v767_v32  ;;  %v816_v54 = vmul.f32 %v1614_v9, %v757_v0  ;;  %v826_v42 = vrot.slane %v2002_v8, %v1499_v2 }
  0x6f   : > { %v813_v24 = vadd.f32 %v812_v40, %v811_v49  ;;  %v892_v43 = vadd.f32 %v891_v11, %v890_v45  ;;  %v895_v38 = vmul.f32 %v1559_v33, %v749_v62  ;;  %v774_v59 = vmul.f32 %v2302_v5, %v757_v0  ;;  %v1349_v49 = vld [vmem:[%s1506_s26 + $0x34] sm:$0x1] }
  0x70   : > { %v576_v63 = vsel %vm474_vm0, %v575_v21, 0.0  ;;  %v771_v30 = vadd.f32 %v770_v1, %v769_v10  ;;  %v859_v36 = vmul.f32 %v1641_v29, %v826_v42  ;;  %v897_v23 = vmul.f32 %v1562_v34, %v753_v58  ;;  %v2333_v10 = vld [vmem:[#allocation7_spill] sm:$0xff] }
  0x71   : > { %577 = vadd.xlane.f32.xlu0 %v576_v63  ;;  %v815_v57 = vadd.f32 %v814_v37, %v813_v24  ;;  %v894_v44 = vadd.f32 %v893_v17, %v892_v43  ;;  %v830_v56 = vrot.slane %v2002_v8, %v1501_v3  ;;  %v899_v62 = vmul.f32 %v1565_v35, %v757_v0 }
  0x72   : > { %v773_v40 = vadd.f32 %v772_v52, %v771_v30  ;;  %v834_v11 = vrot.slane %v2002_v8, %v1513_v4  ;;  %v901_v32 = vmul.f32 %v1576_v46, %v826_v42  ;;  %v838_v58 = vrot.slane %v2002_v8, %v2322_v41 }
  0x73   : > { %v817_v51 = vadd.f32 %v816_v54, %v815_v57  ;;  %v896_v20 = vadd.f32 %v895_v38, %v894_v44  ;;  %v861_v1 = vmul.f32 %v2290_v27, %v830_v56  ;;  %v903_v0 = vmul.f32 %v1579_v47, %v830_v56 }
  0x74   : > { %v775_v26 = vadd.f32 %v774_v59, %v773_v40  ;;  %v863_v45 = vmul.f32 %v1654_v50, %v834_v11  ;;  %v984_v21 = vmul.f32 %v826_v42, %v1528_v14  ;;  %v986_v52 = vmul.f32 %v2333_v10, %v830_v56  ;;  %v2334_v59 = vld [vmem:[#allocation4_spill] sm:$0xff]  ;;  %v2336_v56 = vld [vmem:[#allocation10_spill] sm:$0xff] }
  0x75   : > { %v860_v37 = vadd.f32 %v859_v36, %v817_v51  ;;  %v898_v22 = vadd.f32 %v897_v23, %v896_v20  ;;  %v842_v24 = vrot.slane %v2002_v8, %v2323_v15  ;;  %v865_v38 = vmul.f32 %v2292_v16, %v838_v58  ;;  %v2335_v36 = vld [vmem:[#allocation5_spill] sm:$0xff] }
  0x76   : > { %v776_v17 = vadd.f32 %v775_v26, %v1902_v39  ;;  %v822_v30 = vunpack.c.l.bf16 %v1349_v49  ;;  %v846_v57 = vrot.slane %v2002_v8, %v2334_v59  ;;  %v850_v44 = vrot.slane %v2002_v8, %v2335_v36 }
  0x77   : > { %v900_v54 = vadd.f32 %v899_v62, %v898_v22  ;;  %v862_v43 = vadd.f32 %v861_v1, %v860_v37  ;;  %v867_v42 = vmul.f32 %v2294_v7, %v842_v24  ;;  %v905_v51 = vmul.f32 %v2336_v56, %v834_v11 }
  0x78   : > { %v777_v63 = vmax.f32 %v776_v17, 0.0  ;;  %v869_v62 = vmul.f32 %v2315_v13, %v846_v57  ;;  %v907_v26 = vmul.f32 %v1589_v53, %v838_v58  ;;  %v987_v1 = vadd.f32 %v986_v52, %v984_v21 }
  0x79   : > { %v902_v23 = vadd.f32 %v901_v32, %v900_v54  ;;  %v864_v40 = vadd.f32 %v863_v45, %v862_v43  ;;  %v988_v49 = vmul.f32 %v2308_v19, %v834_v11  ;;  %v990_v17 = vmul.f32 %v1545_v25, %v838_v58  ;;  %v2337_v32 = vld [vmem:[#allocation6_spill] sm:$0xff] }
  0x7a   : > { %v778_v20 = vsel %vm474_vm0, %v777_v63, 0.0  ;;  %v854_v45 = vrot.slane %v2002_v8, %v2337_v32  ;;  %v871_v54 = vmul.f32 %v2317_v6, %v850_v44  ;;  %v909_v43 = vmul.f32 %v2330_v60, %v842_v24 }
  0x7b   : > { %v904_v37 = vadd.f32 %v903_v0, %v902_v23  ;;  %779 = vadd.xlane.f32.xlu1 %v778_v20  ;;  %v866_v22 = vadd.f32 %v865_v38, %v864_v40  ;;  %v989_v13 = vadd.f32 %v988_v49, %v987_v1  ;;  %v992_v53 = vmul.f32 %v2309_v55, %v842_v24 }
  0x7c   : > { %v858_v0 = vrot.slane %v822_v30, %v1499_v2  ;;  %v873_v21 = vmul.f32 %v2319_v28, %v854_v45  ;;  %v911_v11 = vmul.f32 %v2331_v48, %v846_v57  ;;  %v922_v58 = vunpack.c.h.bf16 %v1993_v12 }
  0x7d   : > { %v868_v63 = vadd.f32 %v867_v42, %v866_v22  ;;  %v906_v7 = vadd.f32 %v905_v51, %v904_v37  ;;  %v991_v8 = vadd.f32 %v990_v17, %v989_v13  ;;  %v994_v23 = vmul.f32 %v1555_v31, %v846_v57 }
  0x7e   : > { %v875_v40 = vmul.f32 %v2302_v5, %v858_v0  ;;  %v913_v42 = vmul.f32 %v1604_v61, %v850_v44  ;;  %v996_v30 = vmul.f32 %v1559_v33, %v850_v44  ;;  %v915_v1 = vmul.f32 %v2332_v18, %v854_v45 }
  0x7f   : > { %v870_v52 = vadd.f32 %v869_v62, %v868_v63  ;;  %v908_v38 = vadd.f32 %v907_v26, %v906_v7  ;;  %v993_v24 = vadd.f32 %v992_v53, %v991_v8  ;;  %v927_v37 = vrot.slane %v922_v58, %v1499_v2 }
  0x80   : > { %v931_v12 = vrot.slane %v922_v58, %v1501_v3  ;;  %v998_v57 = vmul.f32 %v1562_v34, %v854_v45  ;;  %v917_v26 = vmul.f32 %v1614_v9, %v858_v0  ;;  %v1000_v44 = vmul.f32 %v1565_v35, %v858_v0 }
  0x81   : > { %v872_v51 = vadd.f32 %v871_v54, %v870_v52  ;;  %v910_v20 = vadd.f32 %v909_v43, %v908_v38  ;;  %v995_v13 = vadd.f32 %v994_v23, %v993_v24  ;;  %v960_v22 = vmul.f32 %v1641_v29, %v927_v37 }
  0x82   : > { %v1085_v54 = vmul.f32 %v927_v37, %v1528_v14  ;;  %v1087_v43 = vmul.f32 %v2333_v10, %v931_v12  ;;  %v935_v63 = vrot.slane %v922_v58, %v1513_v4  ;;  %v1002_v38 = vmul.f32 %v1576_v46, %v927_v37 }
  0x83   : > { %v874_v62 = vadd.f32 %v873_v21, %v872_v51  ;;  %v912_v7 = vadd.f32 %v911_v11, %v910_v20  ;;  %v997_v53 = vadd.f32 %v996_v30, %v995_v13  ;;  %v939_v21 = vrot.slane %v922_v58, %v2322_v41 }
  0x84   : > { %v1004_v8 = vmul.f32 %v1579_v47, %v931_v12  ;;  %v943_v23 = vrot.slane %v922_v58, %v2323_v15  ;;  %v947_v0 = vrot.slane %v922_v58, %v2334_v59  ;;  %v962_v51 = vmul.f32 %v2290_v27, %v931_v12 }
  0x85   : > { %v876_v49 = vadd.f32 %v875_v40, %v874_v62  ;;  %v914_v17 = vadd.f32 %v913_v42, %v912_v7  ;;  %v999_v52 = vadd.f32 %v998_v57, %v997_v53  ;;  %v1351_v42 = vld [vmem:[%s1506_s26 + $0x3c] sm:$0x1]  ;;  %v964_v20 = vmul.f32 %v1654_v50, %v935_v63  ;;  %v2085_v57 = vld [vmem:[%s1506_s26 + $0x40] ss:$8 sps:$4 sm:$0xff]  }
  0x86   : > { %v1088_v24 = vadd.f32 %v1087_v43, %v1085_v54  ;;  %v1089_v30 = vmul.f32 %v2308_v19, %v935_v63  ;;  %v1006_v13 = vmul.f32 %v2336_v56, %v935_v63  ;;  %v966_v19 = vmul.f32 %v2292_v16, %v939_v21 }
  0x87   : > { %v877_v45 = vadd.f32 %v876_v49, %v1902_v39  ;;  %v916_v11 = vadd.f32 %v915_v1, %v914_v17  ;;  %v1001_v10 = vadd.f32 %v1000_v44, %v999_v52  ;;  %v1091_v1 = vmul.f32 %v1545_v25, %v939_v21  ;;  %v2338_v25 = vld [vmem:[#allocation11_spill] sm:$0xff]  ;;  %v2339_v52 = vld [vmem:[#allocation22_spill] sm:$0xff] }
  0x88   : > { %v951_v49 = vrot.slane %v922_v58, %v2335_v36  ;;  %v1090_v12 = vadd.f32 %v1089_v30, %v1088_v24  ;;  %v1093_v17 = vmul.f32 %v2309_v55, %v943_v23  ;;  %v1008_v54 = vmul.f32 %v2338_v25, %v939_v21  ;;  %v2340_v21 = vld [vmem:[#allocation23_spill] sm:$0xff] }
  0x89   : > { %v878_v14 = vmax.f32 %v877_v45, 0.0  ;;  %v918_v40 = vadd.f32 %v917_v26, %v916_v11  ;;  %v1003_v7 = vadd.f32 %v1002_v38, %v1001_v10  ;;  %v923_v26 = vunpack.c.l.bf16 %v1351_v42 }
  0x8a   : > { %v1023_v43 = vunpack.c.l.bf16 %v2085_v57  ;;  %v1092_v63 = vadd.f32 %v1091_v1, %v1090_v12  ;;  %v1095_v45 = vmul.f32 %v1555_v31, %v947_v0  ;;  %v968_v38 = vmul.f32 %v2339_v52, %v943_v23 }
  0x8b   : > { %v879_v37 = vsel %vm474_vm0, %v878_v14, 0.0  ;;  %v961_v62 = vadd.f32 %v960_v22, %v918_v40  ;;  %v1005_v53 = vadd.f32 %v1004_v8, %v1003_v7  ;;  %v955_v22 = vrot.slane %v922_v58, %v2337_v32 }
  0x8c   : > { %880 = vadd.xlane.f32.xlu0 %v879_v37  ;;  %v1010_v40 = vmul.f32 %v2330_v60, %v943_v23  ;;  %v959_v55 = vrot.slane %v923_v26, %v1499_v2  ;;  %v1094_v8 = vadd.f32 %v1093_v17, %v1092_v63  ;;  %v1097_v10 = vmul.f32 %v1559_v33, %v951_v49 }
  0x8d   : > { %v963_v44 = vadd.f32 %v962_v51, %v961_v62  ;;  %v1007_v14 = vadd.f32 %v1006_v13, %v1005_v53  ;;  %v970_v51 = vmul.f32 %v2340_v21, %v947_v0  ;;  %v1012_v24 = vmul.f32 %v2331_v48, %v947_v0 }
  0x8e   : > { %v1028_v30 = vrot.slane %v1023_v43, %v1499_v2  ;;  %v1096_v31 = vadd.f32 %v1095_v45, %v1094_v8  ;;  %v972_v37 = vmul.f32 %v2317_v6, %v951_v49  ;;  %v1014_v62 = vmul.f32 %v1604_v61, %v951_v49 }
  0x8f   : > { %v965_v11 = vadd.f32 %v964_v20, %v963_v44  ;;  %v1009_v58 = vadd.f32 %v1008_v54, %v1007_v14  ;;  %v1099_v20 = vmul.f32 %v1562_v34, %v955_v22  ;;  %v1032_v7 = vrot.slane %v1023_v43, %v1501_v3 }
  0x90   : > { %v1098_v33 = vadd.f32 %v1097_v10, %v1096_v31  ;;  %v1101_v13 = vmul.f32 %v1565_v35, %v959_v55  ;;  %v974_v12 = vmul.f32 %v2319_v28, %v955_v22  ;;  %v1016_v17 = vmul.f32 %v2332_v18, %v955_v22 }
  0x91   : > { %v967_v42 = vadd.f32 %v966_v19, %v965_v11  ;;  %v1011_v23 = vadd.f32 %v1010_v40, %v1009_v58  ;;  %v1103_v34 = vmul.f32 %v1576_v46, %v1028_v30  ;;  %v1036_v44 = vrot.slane %v1023_v43, %v1513_v4 }
  0x92   : > { %v1100_v53 = vadd.f32 %v1099_v20, %v1098_v33  ;;  %v976_v49 = vmul.f32 %v2302_v5, %v959_v55  ;;  %v1018_v63 = vmul.f32 %v1614_v9, %v959_v55  ;;  %v1105_v35 = vmul.f32 %v1579_v47, %v1032_v7 }
  0x93   : > { %v969_v1 = vadd.f32 %v968_v38, %v967_v42  ;;  %v1013_v0 = vadd.f32 %v1012_v24, %v1011_v23  ;;  %v1040_v11 = vrot.slane %v1023_v43, %v2322_v41  ;;  %v1061_v22 = vmul.f32 %v1641_v29, %v1028_v30 }
  0x94   : > { %v1102_v45 = vadd.f32 %v1101_v13, %v1100_v53  ;;  %v1044_v46 = vrot.slane %v1023_v43, %v2323_v15  ;;  %v1107_v8 = vmul.f32 %v2336_v56, %v1036_v44  ;;  %v1063_v58 = vmul.f32 %v2290_v27, %v1032_v7 }
  0x95   : > { %v971_v26 = vadd.f32 %v970_v51, %v969_v1  ;;  %v1015_v54 = vadd.f32 %v1014_v62, %v1013_v0  ;;  %v1353_v51 = vld [vmem:[%s1506_s26 + $0x44] sm:$0x1]  ;;  %v1048_v24 = vrot.slane %v1023_v43, %v2334_v59  ;;  %v1109_v47 = vmul.f32 %v2338_v25, %v1040_v11 }
  0x96   : > { %v1104_v40 = vadd.f32 %v1103_v34, %v1102_v45  ;;  %v1065_v30 = vmul.f32 %v1654_v50, %v1036_v44  ;;  %v1024_v1 = vunpack.c.l.bf16 %v1353_v51  ;;  %v1111_v56 = vmul.f32 %v2330_v60, %v1044_v46 }
  0x97   : > { %v973_v19 = vadd.f32 %v972_v37, %v971_v26  ;;  %v1017_v14 = vadd.f32 %v1016_v17, %v1015_v54  ;;  %v1052_v37 = vrot.slane %v1023_v43, %v2335_v36  ;;  %v1067_v7 = vmul.f32 %v2292_v16, %v1040_v11 }
  0x98   : > { %v1106_v55 = vadd.f32 %v1105_v35, %v1104_v40  ;;  %v1056_v13 = vrot.slane %v1023_v43, %v2337_v32  ;;  %v1113_v25 = vmul.f32 %v2331_v48, %v1048_v24  ;;  %v1069_v53 = vmul.f32 %v2339_v52, %v1044_v46 }
  0x99   : > { %v975_v38 = vadd.f32 %v974_v12, %v973_v19  ;;  %v1019_v42 = vadd.f32 %v1018_v63, %v1017_v14  ;;  %v1124_v12 = vunpack.c.h.bf16 %v2085_v57  ;;  %v1060_v34 = vrot.slane %v1024_v1, %v1499_v2 }
  0x9a   : > { %v1108_v23 = vadd.f32 %v1107_v8, %v1106_v55  ;;  %v1115_v44 = vmul.f32 %v1604_v61, %v1052_v37  ;;  %v1117_v54 = vmul.f32 %v2332_v18, %v1056_v13  ;;  %v1073_v63 = vmul.f32 %v2317_v6, %v1052_v37  ;;  %v1355_v55 = vld [vmem:[%s1506_s26 + $0x4c] sm:$0x1] }
  0x9b   : > { %v977_v10 = vadd.f32 %v976_v49, %v975_v38  ;;  %v1062_v20 = vadd.f32 %v1061_v22, %v1019_v42  ;;  %v1071_v49 = vmul.f32 %v2340_v21, %v1048_v24  ;;  %v1129_v48 = vrot.slane %v1124_v12, %v1499_v2 }
  0x9c   : > { %v1110_v26 = vadd.f32 %v1109_v47, %v1108_v23  ;;  %v1119_v35 = vmul.f32 %v1614_v9, %v1060_v34  ;;  %v1133_v11 = vrot.slane %v1124_v12, %v1501_v3  ;;  %v1075_v61 = vmul.f32 %v2319_v28, %v1056_v13  ;;  %v1401_v23 = vld [vmem:[%s1511_s29 + $0xc0] sm:$0xff] }
  0x9d   : > { %v978_v31 = vadd.f32 %v977_v10, %v1902_v39  ;;  %v1064_v33 = vadd.f32 %v1063_v58, %v1062_v20  ;;  %v1162_v22 = vmul.f32 %v1641_v29, %v1129_v48  ;;  %v1137_v40 = vrot.slane %v1124_v12, %v1513_v4 }
  0x9e   : > { %v1112_v60 = vadd.f32 %v1111_v56, %v1110_v26  ;;  %v1077_v46 = vmul.f32 %v2302_v5, %v1060_v34  ;;  %v1164_v6 = vmul.f32 %v2290_v27, %v1133_v11  ;;  %v1141_v10 = vrot.slane %v1124_v12, %v2322_v41 }
  0x9f   : > { %v979_v62 = vmax.f32 %v978_v31, 0.0  ;;  %v1066_v17 = vadd.f32 %v1065_v30, %v1064_v33  ;;  %v1145_v3 = vrot.slane %v1124_v12, %v2323_v15  ;;  %v1166_v51 = vmul.f32 %v1654_v50, %v1137_v40 }
  0xa0   : > { %v1114_v43 = vadd.f32 %v1113_v25, %v1112_v60  ;;  %v1149_v4 = vrot.slane %v1124_v12, %v2334_v59  ;;  %v1168_v29 = vmul.f32 %v2292_v16, %v1141_v10  ;;  %v1125_v31 = vunpack.c.l.bf16 %v1355_v55 }
  0xa1   : > { %v980_v0 = vsel %vm474_vm0, %v979_v62, 0.0  ;;  %v1068_v19 = vadd.f32 %v1067_v7, %v1066_v17  ;;  %v1153_v27 = vrot.slane %v1124_v12, %v2335_v36  ;;  %v1170_v20 = vmul.f32 %v2339_v52, %v1145_v3 }
  0xa2   : > { %981 = vadd.xlane.f32.xlu1 %v980_v0  ;;  %v1116_v45 = vadd.f32 %v1115_v44, %v1114_v43  ;;  %v1157_v15 = vrot.slane %v1124_v12, %v2337_v32  ;;  %v1172_v1 = vmul.f32 %v2340_v21, %v1149_v4  ;;  %v1161_v59 = vrot.slane %v1125_v31, %v1499_v2 }
  0xa3   : > { %v1070_v57 = vadd.f32 %v1069_v53, %v1068_v19  ;;  %v1174_v56 = vmul.f32 %v1401_v23, %v1153_v27 }
  0xa4   : > { %v1118_v14 = vadd.f32 %v1117_v54, %v1116_v45  ;;  %v1176_v36 = vmul.f32 %v2319_v28, %v1157_v15  ;;  %v1178_v52 = vmul.f32 %v2302_v5, %v1161_v59 }
  0xa5   : > { %v1072_v38 = vadd.f32 %v1071_v49, %v1070_v57 }
  0xa6   : > { %v1120_v8 = vadd.f32 %v1119_v35, %v1118_v14 }
  0xa7   : > { %v1074_v18 = vadd.f32 %v1073_v63, %v1072_v38 }
  0xa8   : > { %v1163_v42 = vadd.f32 %v1162_v22, %v1120_v8 }
  0xa9   : > { %v1076_v9 = vadd.f32 %v1075_v61, %v1074_v18 }
  0xaa   : > { %v1165_v24 = vadd.f32 %v1164_v6, %v1163_v42 }
  0xab   : > { %v1078_v58 = vadd.f32 %v1077_v46, %v1076_v9 }
  0xac   : > { %v1167_v41 = vadd.f32 %v1166_v51, %v1165_v24 }
  0xad   : > { %v1079_v47 = vadd.f32 %v1078_v58, %v1902_v39 }
  0xae   : > { %v1169_v50 = vadd.f32 %v1168_v29, %v1167_v41 }
  0xaf   : > { %v1080_v30 = vmax.f32 %v1079_v47, 0.0 }
  0xb0   : > { %v1171_v16 = vadd.f32 %v1170_v20, %v1169_v50 }
  0xb1   : > { %v1081_v37 = vsel %vm474_vm0, %v1080_v30, 0.0 }
  0xb2   : > { %1082 = vadd.xlane.f32.xlu0 %v1081_v37  ;;  %v1173_v62 = vadd.f32 %v1172_v1, %v1171_v16 }
  0xb4   : > { %v1175_v33 = vadd.f32 %v1174_v56, %v1173_v62 }
  0xb6   : > { %v1177_v7 = vadd.f32 %v1176_v36, %v1175_v33 }
  0xb8   : > { %v1179_v13 = vadd.f32 %v1178_v52, %v1177_v7 }
  0xba   : > { %v1180_v32 = vadd.f32 %v1179_v13, %v1902_v39 }
  0xbc   : > { %v1181_v21 = vmax.f32 %v1180_v32, 0.0 }
  0xbe   : > { %v1182_v26 = vsel %vm474_vm0, %v1181_v21, 0.0 }
  0xbf   : > { %1183 = vadd.xlane.f32.xlu1 %v1182_v26 }
  0xe7   : > { %v477_v2 = vpop.xlane.xlu0 %476 }
  0xfa   : > { %v679_v12 = vpop.xlane.xlu1 %678 }
  0xfe   : > { %v578_v25 = vpop.xlane.xlu0 %577 }
  0xff   : > { %v579_v0 = vadd.f32 %v578_v25, %v477_v2 }
 0x101   : > { %v680_v17 = vadd.f32 %v679_v12, %v579_v0 }
 0x108   : > { %v780_v53 = vpop.xlane.xlu1 %779 }
 0x109   : > { %v781_v28 = vadd.f32 %v780_v53, %v680_v17 }
 0x119   : > { %v881_v34 = vpop.xlane.xlu0 %880 }
 0x11a   : > { %v882_v60 = vadd.f32 %v881_v34, %v781_v28 }
 0x12f   : > { %v982_v5 = vpop.xlane.xlu1 %981 }
 0x130   : > { %v983_v44 = vadd.f32 %v982_v5, %v882_v60 }
 0x13f   : > { %v1083_v19 = vpop.xlane.xlu0 %1082 }
 0x140   : > { %v1084_v39 = vadd.f32 %v1083_v19, %v983_v44 }
 0x14c   : > { %v1184_v49 = vpop.xlane.xlu1 %1183 }
 0x14d   : > { %v1185_v43 = vadd.f32 %v1184_v49, %v1084_v39 }
 0x14f   : > { %v1186_v54 = vmul.f32 0.001953125, %v1185_v43 }
 0x151   : > { %1188 = vst.msk [vmem:[%s241_s19] sm:$0xff] %vm1187_vm1, %v1186_v54 }
 0x152 PF: > { %s13_s16 = sadd.s32 1, %s1440_s16   ;;  %s2341_s12 = smov %s1432_s14 }
 0x153   : > { %p10_p7 = scmp.ge.s32.totalorder %s13_s16, 6   ;;  %s2342_s13 = smov %s1436_s15 }
 0x154   : > { %s2343_s14 = smov %s2346_s17  ;;  %s2344_s15 = smov %s2350_s18 }
 0x155   :  { %12 = sbr.rel (!%p10_p7) target bundleno = 3 (0x3), region = 103 }

</bundles_post_ra>
